<compile_context>
chip_gen: v7x
topology: tpu7x:2x2x1
jax: 0.10.0
libtpu: 0.0.40
codegen_flags: <defaults>
</compile_context>

<pallas_src>
import functools

import jax
import jax.numpy as jnp
from jax.experimental import pallas as pl
from jax.experimental.pallas import tpu as pltpu


# ----------------------------------------------------------------------------
# pltpu.roll portability probe (runs once, tiny kernel).
# ----------------------------------------------------------------------------
@functools.lru_cache(maxsize=None)
def _roll_mode():
    """Pin down pltpu.roll's rotation direction.

    Returns +1 if pltpu.roll(x, s, axis) == jnp.roll(x, s, axis), -1 if it is
    the opposite convention, 0 to fall back to jnp.roll (still correct)."""
    try:
        def probe(x_ref, o_ref):
            o_ref[...] = pltpu.roll(x_ref[...], 3, axis=1)

        x = jnp.arange(8 * 128, dtype=jnp.float32).reshape(8, 128)
        out = pl.pallas_call(
            probe, out_shape=jax.ShapeDtypeStruct((8, 128), jnp.float32))(x)
        if bool(jnp.array_equal(out, jnp.roll(x, 3, axis=1))):
            return 1
        if bool(jnp.array_equal(out, jnp.roll(x, -3, axis=1))):
            return -1
    except Exception:                                  # pragma: no cover
        pass
    return 0


def _roll_lanes(x, shift, size, mode):
    """jnp.roll(x, shift, axis=-1), lowered to the XLU lane-rotate slot."""
    s = shift % size
    if s == 0:
        return x
    if mode == 1:
        return pltpu.roll(x, s, axis=1)
    if mode == -1:
        return pltpu.roll(x, size - s, axis=1)
    return jnp.roll(x, s, axis=1)                      # safe fallback


# ----------------------------------------------------------------------------
# In-kernel helpers.
# ----------------------------------------------------------------------------
def _shift_cols(h, dc, wrap_mask, width, hw, roll_mode):
    """Circular shift of the column index by +dc on a (C, H*W) array (bf16)."""
    if dc == 0:
        return h
    main = _roll_lanes(h, -dc, hw, roll_mode)                     # interior
    fix = _roll_lanes(h, -dc + (width if dc > 0 else -width), hw, roll_mode)
    return jnp.where(wrap_mask, fix, main)                        # bit-select


def _geps_layer(h, code_row, wrap_masks, patches_ref,
                w_aug_ref, bm_ref, bias_ref, *, k, pad, width, roll_mode):
    """One adapted circular conv:
         [W; A] @ im2col(h)  ->  base rows + low-rank rows,
         out = base + (Bm * code) @ low + bias
    """
    cin, hw = h.shape
    cout = bias_ref.shape[0]
    r = bm_ref.shape[1]
    nk = k * k * cin

    # ---- bf16 im2col streamed into the VMEM scratch (no concat) -------------
    h_bf = h.astype(jnp.bfloat16)
    cols = {dc: _shift_cols(h_bf, dc, wrap_masks.get(dc), width, hw, roll_mode)
            for dc in range(-pad, pad + 1)}
    for di in range(k):
        dr = di - pad
        for dj in range(k):
            tap = di * k + dj
            t_val = cols[dj - pad]
            if dr != 0:
                t_val = _roll_lanes(t_val, -dr * width, hw, roll_mode)
            patches_ref[tap * cin:(tap + 1) * cin, :] = t_val

    # ---- one fat-K bf16 MXU matmul for base conv + low-rank code rows -------
    aug = jnp.dot(w_aug_ref[...], patches_ref[0:nk, :],
                  preferred_element_type=jnp.float32)             # (cout+r, hw)
    base = aug[0:cout, :]
    low = aug[cout:cout + r, :]

    # per-sample correction (tiny K=r matmul, kept in f32)
    bm_e = bm_ref[...] * code_row                                 # (cout, r)
    corr = jnp.dot(bm_e, low, preferred_element_type=jnp.float32)
    return base + corr + bias_ref[...]                            # (cout, hw)


# ----------------------------------------------------------------------------
# Fused kernel: 4 GEPS convs + 3 adaptive swishes + final scale.  Each grid
# step processes `tb` samples (static unrolled loop); activations stay in VMEM.
# ----------------------------------------------------------------------------
def _cnn2d_fused_kernel(beta_ref, codes_ref, x_ref, *refs,
                        k, pad, width, tb, n_layers, out_scale, roll_mode):
    # beta_ref   : SMEM (B, n_layers-1)  per-sample swish slopes (scalar reads)
    # codes_ref  : VMEM (tb, 1, R)       per-sample environment codes
    # x_ref      : VMEM (tb, Cin, H*W)   channels-first, spatial flattened
    # refs       : per layer [w_aug (Cout+R, nk) bf16, Bm (Cout,R), bias (Cout,1)],
    #              then out_ref (tb, Cout_last, H*W), then patches scratch.
    w_refs = refs[:3 * n_layers]
    out_ref = refs[3 * n_layers]
    patches_ref = refs[3 * n_layers + 1]
    hw = x_ref.shape[-1]
    g = pl.program_id(0)

    # Boundary wrap masks, hoisted out of the per-sample / per-layer loops.
    jj = jax.lax.broadcasted_iota(jnp.int32, (1, hw), 1) % width
    wrap_masks = {}
    for dc in range(-pad, pad + 1):
        if dc > 0:
            wrap_masks[dc] = jj >= (width - dc)
        elif dc < 0:
            wrap_masks[dc] = jj < (-dc)

    for t in range(tb):                               # static sample loop
        code_row = codes_ref[t]                       # (1, R) f32
        h = x_ref[t]                                  # (Cin, H*W) f32
        for i in range(n_layers):
            w_aug_ref, bm_ref, bias_ref = w_refs[3 * i:3 * (i + 1)]
            acc = _geps_layer(h, code_row, wrap_masks, patches_ref,
                              w_aug_ref, bm_ref, bias_ref,
                              k=k, pad=pad, width=width, roll_mode=roll_mode)
            if i < n_layers - 1:
                beta = beta_ref[g * tb + t, i]        # SMEM scalar read (f32)
                h = acc * jax.nn.sigmoid(beta * acc)  # element-wise in f32
            else:
                out_ref[t] = (acc * out_scale).astype(out_ref.dtype)


# ----------------------------------------------------------------------------
# Wrapper: single pallas_call over the whole network.
# ----------------------------------------------------------------------------
def cnn2d_pallas(params, x_nchw, env, *, k, factor, samples_per_step=1):
    B, c_in, H, width = x_nchw.shape
    hw = H * width
    pad = k // 2
    tb = samples_per_step
    assert B % tb == 0, "batch must be divisible by samples_per_step"
    n_steps = B // tb                         # keep >= 2 on v7x (2 TensorCores)

    codes = params["codes"][env].astype(jnp.float32)              # (B, R)
    R = codes.shape[-1]
    n_layers = len(params["convs"])

    # Per-sample adaptive swish slopes -> SMEM via scalar prefetch.
    betas = jnp.stack(
        [sp["beta0"] + factor * codes @ sp["w_beta"] for sp in params["swish"]],
        axis=-1).astype(jnp.float32)                              # (B, n_layers-1)

    roll_mode = _roll_mode()

    flat_params, w_specs = [], []
    max_cin = 0
    for cp in params["convs"]:
        cout, cin_l = cp["W"].shape[0], cp["W"].shape[1]
        max_cin = max(max_cin, cin_l)
        nk = cin_l * k * k
        # Flatten with columns ordered (kh, kw, cin) to match im2col row order,
        # stack static W and low-rank A, and pre-cast to bf16 (static weight).
        wf = jnp.transpose(cp["W"], (0, 2, 3, 1)).reshape(cout, nk)
        at = jnp.transpose(cp["A"].reshape(R, cin_l, k, k),
                           (0, 2, 3, 1)).reshape(R, nk)
        w_aug = jnp.concatenate([wf, at], axis=0).astype(jnp.bfloat16)
        flat_params += [w_aug,
                        cp["B"].astype(jnp.float32),
                        cp["bias"].reshape(cout, 1).astype(jnp.float32)]
        w_specs += [
            pl.BlockSpec((cout + R, nk), lambda g, b: (0, 0)),
            pl.BlockSpec((cout, R), lambda g, b: (0, 0)),
            pl.BlockSpec((cout, 1), lambda g, b: (0, 0)),
        ]

    c_out = params["convs"][-1]["W"].shape[0]
    kernel = functools.partial(
        _cnn2d_fused_kernel, k=k, pad=pad, width=width, tb=tb,
        n_layers=n_layers, out_scale=0.0005, roll_mode=roll_mode)

    out = pl.pallas_call(
        kernel,
        out_shape=jax.ShapeDtypeStruct((B, c_out, hw), jnp.float32),
        grid_spec=pltpu.PrefetchScalarGridSpec(
            num_scalar_prefetch=1,                                  # betas
            grid=(n_steps,),
            in_specs=[
                pl.BlockSpec((tb, 1, R), lambda g, b: (g, 0, 0)),       # codes
                pl.BlockSpec((tb, c_in, hw), lambda g, b: (g, 0, 0)),   # x
            ] + w_specs,
            out_specs=pl.BlockSpec((tb, c_out, hw), lambda g, b: (g, 0, 0)),
            scratch_shapes=[pltpu.VMEM((k * k * max_cin, hw), jnp.bfloat16)],
        ),
        compiler_params=pltpu.CompilerParams(
            dimension_semantics=("parallel",),
            vmem_limit_bytes=32 * 1024 * 1024),
    )(betas, codes.reshape(B, 1, R),
      x_nchw.reshape(B, c_in, hw).astype(jnp.float32), *flat_params)

    return out.reshape(B, c_out, H, width)


# ----------------------------------------------------------------------------
# Parameter init (deterministic, PyTorch-shaped).
# ----------------------------------------------------------------------------
def init_params(key, in_dim, out_dim, k, code_dim, n_env):
    dims = [(in_dim, out_dim), (out_dim, out_dim), (out_dim, out_dim),
            (out_dim, in_dim)]
    params = {"convs": [], "swish": []}
    keys = jax.random.split(key, 4 * len(dims) + 4)
    ki = 0
    for (cin, cout) in dims:
        fan = cin * k * k
        params["convs"].append(dict(
            W=jax.random.normal(keys[ki + 0], (cout, cin, k, k),
                                jnp.float32) / jnp.sqrt(fan),
            bias=0.1 * jax.random.normal(keys[ki + 1], (cout,), jnp.float32),
            A=0.1 * jax.random.normal(keys[ki + 2], (code_dim, fan),
                                      jnp.float32),
            B=0.1 * jax.random.normal(keys[ki + 3], (cout, code_dim),
                                      jnp.float32),
        ))
        ki += 4
    for i in range(3):
        params["swish"].append(dict(
            beta0=jnp.float32(1.0),
            w_beta=0.1 * jax.random.normal(keys[ki + i], (code_dim,),
                                           jnp.float32),
        ))
    params["codes"] = 0.5 * jax.random.normal(keys[-1], (n_env, code_dim),
                                              jnp.float32)
    return params


# ----------------------------------------------------------------------------
# Pure-JAX f32 reference (mirrors PyTorch NCHW semantics).
# ----------------------------------------------------------------------------
def _geps_conv_ref(x, codes, W, bias, A, Bm, k):
    Bn, Cin, H, Wd = x.shape
    Cout = W.shape[0]
    pad = k // 2
    delta = jnp.einsum("or,br,rn->bon", Bm, codes, A,
                       precision=jax.lax.Precision.HIGHEST)
    w_e = W[None] + delta.reshape(Bn, Cout, Cin, k, k)
    out = jnp.zeros((Bn, Cout, H, Wd), jnp.float32)
    for di in range(k):
        for dj in range(k):
            xs = jnp.roll(x, (pad - di, pad - dj), axis=(2, 3))
            out = out + jnp.einsum("bchw,boc->bohw", xs,
                                   w_e[:, :, :, di, dj],
                                   precision=jax.lax.Precision.HIGHEST)
    return out + bias[None, :, None, None]


def cnn2d_ref(params, x, env, *, k, factor):
    codes = params["codes"][env]
    h = x.astype(jnp.float32)
    for i, cp in enumerate(params["convs"]):
        h = _geps_conv_ref(h, codes, cp["W"], cp["bias"], cp["A"], cp["B"], k)
        if i < 3:
            sp = params["swish"][i]
            beta = sp["beta0"] + factor * codes @ sp["w_beta"]
            h = h * jax.nn.sigmoid(beta[:, None, None, None] * h)
    return 0.0005 * h


# ----------------------------------------------------------------------------
if __name__ == "__main__":
    in_dim, out_dim, k, factor = 4, 32, 3, 1.0
    code_dim, n_env = 4, 5
    B, H, W = 2, 16, 16

    key = jax.random.PRNGKey(0)
    kp, kx = jax.random.split(key)
    params = init_params(kp, in_dim, out_dim, k, code_dim, n_env)

    x = jax.random.normal(kx, (B, in_dim, H, W), jnp.float32)   # NCHW input
    env = jnp.array([1, 3], dtype=jnp.int32)

    ref = cnn2d_ref(params, x, env, k=k, factor=factor)

    # TB=1: one sample per grid step (grid=(2,), both v7x TensorCores busy).
    out1 = jax.block_until_ready(
        cnn2d_pallas(params, x, env, k=k, factor=factor, samples_per_step=1))
    # TB=2: batched grid step (exercises the in-kernel sample loop).
    out2 = jax.block_until_ready(
        cnn2d_pallas(params, x, env, k=k, factor=factor, samples_per_step=2))

    assert out1.shape == (B, in_dim, H, W)
    assert out2.shape == (B, in_dim, H, W)

    for out in (out1, out2):
        max_abs = float(jnp.max(jnp.abs(out - ref)))
        rel_l2 = float(jnp.linalg.norm(out - ref) / jnp.linalg.norm(ref))
        # bf16 MXU operands with f32 accumulation across 4 chained layers.
        assert jnp.allclose(out, ref, rtol=3e-2, atol=2e-5), (max_abs, rel_l2)
        assert rel_l2 < 2e-2, rel_l2

    print("KERNEL_OK")
</pallas_src>

<mosaic_0001>
module attributes {stable_mosaic.version = 11 : i64} {
  func.func @probe(%arg0: memref<8x128xf32, #tpu.memory_space<vmem>>, %arg1: memref<8x128xf32, #tpu.memory_space<vmem>>) attributes {dimension_semantics = [], scalar_prefetch = 0 : i64, scratch_operands = 0 : i64, tpu.core_type = #tpu.core_type<tc>} {
    %c0 = arith.constant 0 : index
    %c0_0 = arith.constant 0 : index
    %0 = vector.load %arg0[%c0, %c0_0] : memref<8x128xf32, #tpu.memory_space<vmem>>, vector<8x128xf32>
    %c3_i32 = arith.constant 3 : i32
    %1 = tpu.dynamic_rotate %0 by %c3_i32 dim 1 : vector<8x128xf32>, i32 -> vector<8x128xf32>
    %c0_1 = arith.constant 0 : index
    %c0_2 = arith.constant 0 : index
    %2 = vector.load %arg1[%c0_1, %c0_2] : memref<8x128xf32, #tpu.memory_space<vmem>>, vector<8x128xf32>
    tpu.vector_store %arg1[%c0_1, %c0_2], %1 {strides = array<i32>} : memref<8x128xf32, #tpu.memory_space<vmem>>, vector<8x128xf32>,
    return
  }
}

module attributes {stable_mosaic.version = 11 : i64} {
  func.func @_cnn2d_fused_kernel(%arg0: i32, %arg1: memref<2x3xf32, #tpu.memory_space<smem>>, %arg2: memref<1x1x4xf32, #tpu.memory_space<vmem>>, %arg3: memref<1x4x256xf32, #tpu.memory_space<vmem>>, %arg4: memref<36x36xbf16, #tpu.memory_space<vmem>>, %arg5: memref<32x4xf32, #tpu.memory_space<vmem>>, %arg6: memref<32x1xf32, #tpu.memory_space<vmem>>, %arg7: memref<36x288xbf16, #tpu.memory_space<vmem>>, %arg8: memref<32x4xf32, #tpu.memory_space<vmem>>, %arg9: memref<32x1xf32, #tpu.memory_space<vmem>>, %arg10: memref<36x288xbf16, #tpu.memory_space<vmem>>, %arg11: memref<32x4xf32, #tpu.memory_space<vmem>>, %arg12: memref<32x1xf32, #tpu.memory_space<vmem>>, %arg13: memref<8x288xbf16, #tpu.memory_space<vmem>>, %arg14: memref<4x4xf32, #tpu.memory_space<vmem>>, %arg15: memref<4x1xf32, #tpu.memory_space<vmem>>, %arg16: memref<1x4x256xf32, #tpu.memory_space<vmem>>, %arg17: memref<288x256xbf16, #tpu.memory_space<vmem>>) attributes {dimension_semantics = [#tpu.dimension_semantics<parallel>], iteration_bounds = array<i64: 2>, scalar_prefetch = 1 : i64, scratch_operands = 1 : i64, tpu.core_type = #tpu.core_type<tc>, window_params = [{transform_indices = @transform_0, window_bounds = array<i64: 1, 1, 4>}, {transform_indices = @transform_1, window_bounds = array<i64: 1, 4, 256>}, {pipeline_mode = #tpu.pipeline_mode<synchronous>, transform_indices = @transform_2, window_bounds = array<i64: 36, 36>}, {pipeline_mode = #tpu.pipeline_mode<synchronous>, transform_indices = @transform_3, window_bounds = array<i64: 32, 4>}, {pipeline_mode = #tpu.pipeline_mode<synchronous>, transform_indices = @transform_4, window_bounds = array<i64: 32, 1>}, {pipeline_mode = #tpu.pipeline_mode<synchronous>, transform_indices = @transform_5, window_bounds = array<i64: 36, 288>}, {pipeline_mode = #tpu.pipeline_mode<synchronous>, transform_indices = @transform_6, window_bounds = array<i64: 32, 4>}, {pipeline_mode = #tpu.pipeline_mode<synchronous>, transform_indices = @transform_7, window_bounds = array<i64: 32, 1>}, {pipeline_mode = #tpu.pipeline_mode<synchronous>, transform_indices = @transform_8, window_bounds = array<i64: 36, 288>}, {pipeline_mode = #tpu.pipeline_mode<synchronous>, transform_indices = @transform_9, window_bounds = array<i64: 32, 4>}, {pipeline_mode = #tpu.pipeline_mode<synchronous>, transform_indices = @transform_10, window_bounds = array<i64: 32, 1>}, {pipeline_mode = #tpu.pipeline_mode<synchronous>, transform_indices = @transform_11, window_bounds = array<i64: 8, 288>}, {pipeline_mode = #tpu.pipeline_mode<synchronous>, transform_indices = @transform_12, window_bounds = array<i64: 4, 4>}, {pipeline_mode = #tpu.pipeline_mode<synchronous>, transform_indices = @transform_13, window_bounds = array<i64: 4, 1>}, {transform_indices = @transform_14, window_bounds = array<i64: 1, 4, 256>}]} {
    %0 = tpu.iota {dimensions = array<i32: 1>} : vector<1x256xi32>
    %c16_i32 = arith.constant 16 : i32
    %c0_i32 = arith.constant 0 : i32
    %1 = arith.cmpi eq, %c16_i32, %c0_i32 : i32
    %c1_i32 = arith.constant 1 : i32
    %2 = arith.select %1, %c1_i32, %c16_i32 : i32
    %3 = vector.broadcast %2 : i32 to vector<1x256xi32>
    %4 = arith.remsi %0, %3 : vector<1x256xi32>
    %c0_i32_0 = arith.constant 0 : i32
    %5 = vector.broadcast %c0_i32_0 : i32 to vector<1x256xi32>
    %6 = arith.cmpi ne, %4, %5 : vector<1x256xi32>
    %c0_i32_1 = arith.constant 0 : i32
    %7 = vector.broadcast %c0_i32_1 : i32 to vector<1x256xi32>
    %8 = arith.cmpi slt, %4, %7 : vector<1x256xi32>
    %c0_i32_2 = arith.constant 0 : i32
    %9 = arith.cmpi slt, %2, %c0_i32_2 : i32
    %10 = vector.broadcast %9 : i1 to vector<1x256xi1>
    %11 = vector.broadcast %10 : vector<1x256xi1> to vector<1x256xi1>
    %12 = arith.xori %8, %11 : vector<1x256xi1>
    %13 = arith.andi %12, %6 : vector<1x256xi1>
    %14 = vector.broadcast %2 : i32 to vector<1x256xi32>
    %15 = arith.addi %4, %14 : vector<1x256xi32>
    %16 = arith.select %13, %15, %4 : vector<1x256xi1>, vector<1x256xi32>
    %c1_i32_3 = arith.constant 1 : i32
    %17 = vector.broadcast %c1_i32_3 : i32 to vector<1x256xi32>
    %18 = arith.cmpi slt, %16, %17 : vector<1x256xi32>
    %c15_i32 = arith.constant 15 : i32
    %19 = vector.broadcast %c15_i32 : i32 to vector<1x256xi32>
    %20 = arith.cmpi sge, %16, %19 : vector<1x256xi32>
    %c0 = arith.constant 0 : index
    %c0_4 = arith.constant 0 : index
    %c0_5 = arith.constant 0 : index
    %21 = vector.load %arg2[%c0, %c0_4, %c0_5] : memref<1x1x4xf32, #tpu.memory_space<vmem>>, vector<1x1x4xf32>
    %22 = vector.shape_cast %21 : vector<1x1x4xf32> to vector<1x4xf32>
    %c0_6 = arith.constant 0 : index
    %c0_7 = arith.constant 0 : index
    %c0_8 = arith.constant 0 : index
    %23 = vector.load %arg3[%c0_6, %c0_7, %c0_8] : memref<1x4x256xf32, #tpu.memory_space<vmem>>, vector<1x4x256xf32>
    %24 = vector.shape_cast %23 : vector<1x4x256xf32> to vector<4x256xf32>
    %25 = arith.truncf %24 : vector<4x256xf32> to vector<4x256xbf16>
    %26 = vector.extract_strided_slice %25 {offsets = [0, 255], sizes = [4, 1], strides = [1, 1]} : vector<4x256xbf16> to vector<4x1xbf16>
    %27 = vector.extract_strided_slice %25 {offsets = [0, 0], sizes = [4, 255], strides = [1, 1]} : vector<4x256xbf16> to vector<4x255xbf16>
    %28 = tpu.concatenate %26, %27 in 1 : vector<4x1xbf16>, vector<4x255xbf16> -> vector<4x256xbf16>
    %29 = vector.extract_strided_slice %25 {offsets = [0, 15], sizes = [4, 241], strides = [1, 1]} : vector<4x256xbf16> to vector<4x241xbf16>
    %30 = vector.extract_strided_slice %25 {offsets = [0, 0], sizes = [4, 15], strides = [1, 1]} : vector<4x256xbf16> to vector<4x15xbf16>
    %31 = tpu.concatenate %29, %30 in 1 : vector<4x241xbf16>, vector<4x15xbf16> -> vector<4x256xbf16>
    %32 = vector.shape_cast %18 : vector<1x256xi1> to vector<1x256xi1>
    %33 = vector.broadcast %32 : vector<1x256xi1> to vector<4x256xi1>
    %34 = arith.select %33, %31, %28 : vector<4x256xi1>, vector<4x256xbf16>
    %35 = vector.extract_strided_slice %25 {offsets = [0, 1], sizes = [4, 255], strides = [1, 1]} : vector<4x256xbf16> to vector<4x255xbf16>
    %36 = vector.extract_strided_slice %25 {offsets = [0, 0], sizes = [4, 1], strides = [1, 1]} : vector<4x256xbf16> to vector<4x1xbf16>
    %37 = tpu.concatenate %35, %36 in 1 : vector<4x255xbf16>, vector<4x1xbf16> -> vector<4x256xbf16>
    %38 = vector.extract_strided_slice %25 {offsets = [0, 241], sizes = [4, 15], strides = [1, 1]} : vector<4x256xbf16> to vector<4x15xbf16>
    %39 = vector.extract_strided_slice %25 {offsets = [0, 0], sizes = [4, 241], strides = [1, 1]} : vector<4x256xbf16> to vector<4x241xbf16>
    %40 = tpu.concatenate %38, %39 in 1 : vector<4x15xbf16>, vector<4x241xbf16> -> vector<4x256xbf16>
    %41 = vector.shape_cast %20 : vector<1x256xi1> to vector<1x256xi1>
    %42 = vector.broadcast %41 : vector<1x256xi1> to vector<4x256xi1>
    %43 = arith.select %42, %40, %37 : vector<4x256xi1>, vector<4x256xbf16>
    %44 = vector.extract_strided_slice %34 {offsets = [0, 240], sizes = [4, 16], strides = [1, 1]} : vector<4x256xbf16> to vector<4x16xbf16>
    %45 = vector.extract_strided_slice %34 {offsets = [0, 0], sizes = [4, 240], strides = [1, 1]} : vector<4x256xbf16> to vector<4x240xbf16>
    %46 = tpu.concatenate %44, %45 in 1 : vector<4x16xbf16>, vector<4x240xbf16> -> vector<4x256xbf16>
    %c0_9 = arith.constant 0 : index
    %c0_10 = arith.constant 0 : index
    %47 = vector.load %arg17[%c0_9, %c0_10] : memref<288x256xbf16, #tpu.memory_space<vmem>>, vector<4x256xbf16>
    tpu.vector_store %arg17[%c0_9, %c0_10], %46 {strides = array<i32>} : memref<288x256xbf16, #tpu.memory_space<vmem>>, vector<4x256xbf16>,
    %48 = vector.extract_strided_slice %25 {offsets = [0, 240], sizes = [4, 16], strides = [1, 1]} : vector<4x256xbf16> to vector<4x16xbf16>
    %49 = vector.extract_strided_slice %25 {offsets = [0, 0], sizes = [4, 240], strides = [1, 1]} : vector<4x256xbf16> to vector<4x240xbf16>
    %50 = tpu.concatenate %48, %49 in 1 : vector<4x16xbf16>, vector<4x240xbf16> -> vector<4x256xbf16>
    %c4 = arith.constant 4 : index
    %c0_11 = arith.constant 0 : index
    %51 = vector.load %arg17[%c4, %c0_11] : memref<288x256xbf16, #tpu.memory_space<vmem>>, vector<4x256xbf16>
    tpu.vector_store %arg17[%c4, %c0_11], %50 {strides = array<i32>} : memref<288x256xbf16, #tpu.memory_space<vmem>>, vector<4x256xbf16>,
    %52 = vector.extract_strided_slice %43 {offsets = [0, 240], sizes = [4, 16], strides = [1, 1]} : vector<4x256xbf16> to vector<4x16xbf16>
    %53 = vector.extract_strided_slice %43 {offsets = [0, 0], sizes = [4, 240], strides = [1, 1]} : vector<4x256xbf16> to vector<4x240xbf16>
    %54 = tpu.concatenate %52, %53 in 1 : vector<4x16xbf16>, vector<4x240xbf16> -> vector<4x256xbf16>
    %c8 = arith.constant 8 : index
    %c0_12 = arith.constant 0 : index
    %55 = vector.load %arg17[%c8, %c0_12] : memref<288x256xbf16, #tpu.memory_space<vmem>>, vector<4x256xbf16>
    tpu.vector_store %arg17[%c8, %c0_12], %54 {strides = array<i32>} : memref<288x256xbf16, #tpu.memory_space<vmem>>, vector<4x256xbf16>,
    %c12 = arith.constant 12 : index
    %c0_13 = arith.constant 0 : index
    %56 = vector.load %arg17[%c12, %c0_13] : memref<288x256xbf16, #tpu.memory_space<vmem>>, vector<4x256xbf16>
    tpu.vector_store %arg17[%c12, %c0_13], %34 {strides = array<i32>} : memref<288x256xbf16, #tpu.memory_space<vmem>>, vector<4x256xbf16>,
    %c16 = arith.constant 16 : index
    %c0_14 = arith.constant 0 : index
    %57 = vector.load %arg17[%c16, %c0_14] : memref<288x256xbf16, #tpu.memory_space<vmem>>, vector<4x256xbf16>
    tpu.vector_store %arg17[%c16, %c0_14], %25 {strides = array<i32>} : memref<288x256xbf16, #tpu.memory_space<vmem>>, vector<4x256xbf16>,
    %c20 = arith.constant 20 : index
    %c0_15 = arith.constant 0 : index
    %58 = vector.load %arg17[%c20, %c0_15] : memref<288x256xbf16, #tpu.memory_space<vmem>>, vector<4x256xbf16>
    tpu.vector_store %arg17[%c20, %c0_15], %43 {strides = array<i32>} : memref<288x256xbf16, #tpu.memory_space<vmem>>, vector<4x256xbf16>,
    %59 = vector.extract_strided_slice %34 {offsets = [0, 16], sizes = [4, 240], strides = [1, 1]} : vector<4x256xbf16> to vector<4x240xbf16>
    %60 = vector.extract_strided_slice %34 {offsets = [0, 0], sizes = [4, 16], strides = [1, 1]} : vector<4x256xbf16> to vector<4x16xbf16>
    %61 = tpu.concatenate %59, %60 in 1 : vector<4x240xbf16>, vector<4x16xbf16> -> vector<4x256xbf16>
    %c24 = arith.constant 24 : index
    %c0_16 = arith.constant 0 : index
    %62 = vector.load %arg17[%c24, %c0_16] : memref<288x256xbf16, #tpu.memory_space<vmem>>, vector<4x256xbf16>
    tpu.vector_store %arg17[%c24, %c0_16], %61 {strides = array<i32>} : memref<288x256xbf16, #tpu.memory_space<vmem>>, vector<4x256xbf16>,
    %63 = vector.extract_strided_slice %25 {offsets = [0, 16], sizes = [4, 240], strides = [1, 1]} : vector<4x256xbf16> to vector<4x240xbf16>
    %64 = vector.extract_strided_slice %25 {offsets = [0, 0], sizes = [4, 16], strides = [1, 1]} : vector<4x256xbf16> to vector<4x16xbf16>
    %65 = tpu.concatenate %63, %64 in 1 : vector<4x240xbf16>, vector<4x16xbf16> -> vector<4x256xbf16>
    %c28 = arith.constant 28 : index
    %c0_17 = arith.constant 0 : index
    %66 = vector.load %arg17[%c28, %c0_17] : memref<288x256xbf16, #tpu.memory_space<vmem>>, vector<4x256xbf16>
    tpu.vector_store %arg17[%c28, %c0_17], %65 {strides = array<i32>} : memref<288x256xbf16, #tpu.memory_space<vmem>>, vector<4x256xbf16>,
    %67 = vector.extract_strided_slice %43 {offsets = [0, 16], sizes = [4, 240], strides = [1, 1]} : vector<4x256xbf16> to vector<4x240xbf16>
    %68 = vector.extract_strided_slice %43 {offsets = [0, 0], sizes = [4, 16], strides = [1, 1]} : vector<4x256xbf16> to vector<4x16xbf16>
    %69 = tpu.concatenate %67, %68 in 1 : vector<4x240xbf16>, vector<4x16xbf16> -> vector<4x256xbf16>
    %c32 = arith.constant 32 : index
    %c0_18 = arith.constant 0 : index
    %70 = vector.load %arg17[%c32, %c0_18] : memref<288x256xbf16, #tpu.memory_space<vmem>>, vector<4x256xbf16>
    tpu.vector_store %arg17[%c32, %c0_18], %69 {strides = array<i32>} : memref<288x256xbf16, #tpu.memory_space<vmem>>, vector<4x256xbf16>,
    %c0_19 = arith.constant 0 : index
    %c0_20 = arith.constant 0 : index
    %71 = vector.load %arg4[%c0_19, %c0_20] : memref<36x36xbf16, #tpu.memory_space<vmem>>, vector<36x36xbf16>
    %c0_21 = arith.constant 0 : index
    %c0_22 = arith.constant 0 : index
    %72 = vector.load %arg17[%c0_21, %c0_22] : memref<288x256xbf16, #tpu.memory_space<vmem>>, vector<36x256xbf16>
    %cst = arith.constant dense<0.000000e+00> : vector<36x256xf32>
    %73 = tpu.matmul %71, %72, %cst {dimension_numbers = #tpu.dot_dimension_numbers<[1], [0], [0], [1], [0, 0, 1, 1], [], []>} : vector<36x36xbf16>, vector<36x256xbf16>, vector<36x256xf32> -> vector<36x256xf32>
    %74 = vector.extract_strided_slice %73 {offsets = [0, 0], sizes = [32, 256], strides = [1, 1]} : vector<36x256xf32> to vector<32x256xf32>
    %75 = vector.extract_strided_slice %73 {offsets = [32, 0], sizes = [4, 256], strides = [1, 1]} : vector<36x256xf32> to vector<4x256xf32>
    %c0_23 = arith.constant 0 : index
    %c0_24 = arith.constant 0 : index
    %76 = vector.load %arg5[%c0_23, %c0_24] : memref<32x4xf32, #tpu.memory_space<vmem>>, vector<32x4xf32>
    %77 = vector.broadcast %22 : vector<1x4xf32> to vector<32x4xf32>
    %78 = arith.mulf %76, %77 : vector<32x4xf32>
    %cst_25 = arith.constant dense<0.000000e+00> : vector<32x256xf32>
    %79 = tpu.matmul %78, %75, %cst_25 {dimension_numbers = #tpu.dot_dimension_numbers<[1], [0], [0], [1], [0, 0, 1, 1], [], []>} : vector<32x4xf32>, vector<4x256xf32>, vector<32x256xf32> -> vector<32x256xf32>
    %80 = arith.addf %74, %79 : vector<32x256xf32>
    %c0_26 = arith.constant 0 : index
    %c0_27 = arith.constant 0 : index
    %81 = vector.load %arg6[%c0_26, %c0_27] : memref<32x1xf32, #tpu.memory_space<vmem>>, vector<32x1xf32>
    %82 = vector.broadcast %81 : vector<32x1xf32> to vector<32x256xf32>
    %83 = arith.addf %80, %82 : vector<32x256xf32>
    %c1_i32_28 = arith.constant 1 : i32
    %84 = arith.muli %arg0, %c1_i32_28 : i32
    %c0_i32_29 = arith.constant 0 : i32
    %85 = arith.addi %84, %c0_i32_29 : i32
    %86 = arith.index_cast %85 : i32 to index
    %c0_30 = arith.constant 0 : index
    %87 = memref.load %arg1[%86, %c0_30] : memref<2x3xf32, #tpu.memory_space<smem>>
    %88 = vector.broadcast %87 : f32 to vector<32x256xf32>
    %89 = arith.mulf %88, %83 : vector<32x256xf32>
    %90 = arith.negf %89 : vector<32x256xf32>
    %91 = math.exp %90 : vector<32x256xf32>
    %cst_31 = arith.constant 1.000000e+00 : f32
    %92 = vector.broadcast %cst_31 : f32 to vector<32x256xf32>
    %93 = arith.addf %92, %91 : vector<32x256xf32>
    %94 = arith.divf %92, %93 : vector<32x256xf32>
    %95 = arith.mulf %83, %94 : vector<32x256xf32>
    %96 = arith.truncf %95 : vector<32x256xf32> to vector<32x256xbf16>
    %97 = vector.extract_strided_slice %96 {offsets = [0, 255], sizes = [32, 1], strides = [1, 1]} : vector<32x256xbf16> to vector<32x1xbf16>
    %98 = vector.extract_strided_slice %96 {offsets = [0, 0], sizes = [32, 255], strides = [1, 1]} : vector<32x256xbf16> to vector<32x255xbf16>
    %99 = tpu.concatenate %97, %98 in 1 : vector<32x1xbf16>, vector<32x255xbf16> -> vector<32x256xbf16>
    %100 = vector.extract_strided_slice %96 {offsets = [0, 15], sizes = [32, 241], strides = [1, 1]} : vector<32x256xbf16> to vector<32x241xbf16>
    %101 = vector.extract_strided_slice %96 {offsets = [0, 0], sizes = [32, 15], strides = [1, 1]} : vector<32x256xbf16> to vector<32x15xbf16>
    %102 = tpu.concatenate %100, %101 in 1 : vector<32x241xbf16>, vector<32x15xbf16> -> vector<32x256xbf16>
    %103 = vector.shape_cast %18 : vector<1x256xi1> to vector<1x256xi1>
    %104 = vector.broadcast %103 : vector<1x256xi1> to vector<32x256xi1>
    %105 = arith.select %104, %102, %99 : vector<32x256xi1>, vector<32x256xbf16>
    %106 = vector.extract_strided_slice %96 {offsets = [0, 1], sizes = [32, 255], strides = [1, 1]} : vector<32x256xbf16> to vector<32x255xbf16>
    %107 = vector.extract_strided_slice %96 {offsets = [0, 0], sizes = [32, 1], strides = [1, 1]} : vector<32x256xbf16> to vector<32x1xbf16>
    %108 = tpu.concatenate %106, %107 in 1 : vector<32x255xbf16>, vector<32x1xbf16> -> vector<32x256xbf16>
    %109 = vector.extract_strided_slice %96 {offsets = [0, 241], sizes = [32, 15], strides = [1, 1]} : vector<32x256xbf16> to vector<32x15xbf16>
    %110 = vector.extract_strided_slice %96 {offsets = [0, 0], sizes = [32, 241], strides = [1, 1]} : vector<32x256xbf16> to vector<32x241xbf16>
    %111 = tpu.concatenate %109, %110 in 1 : vector<32x15xbf16>, vector<32x241xbf16> -> vector<32x256xbf16>
    %112 = vector.shape_cast %20 : vector<1x256xi1> to vector<1x256xi1>
    %113 = vector.broadcast %112 : vector<1x256xi1> to vector<32x256xi1>
    %114 = arith.select %113, %111, %108 : vector<32x256xi1>, vector<32x256xbf16>
    %115 = vector.extract_strided_slice %105 {offsets = [0, 240], sizes = [32, 16], strides = [1, 1]} : vector<32x256xbf16> to vector<32x16xbf16>
    %116 = vector.extract_strided_slice %105 {offsets = [0, 0], sizes = [32, 240], strides = [1, 1]} : vector<32x256xbf16> to vector<32x240xbf16>
    %117 = tpu.concatenate %115, %116 in 1 : vector<32x16xbf16>, vector<32x240xbf16> -> vector<32x256xbf16>
    %c0_32 = arith.constant 0 : index
    %c0_33 = arith.constant 0 : index
    %118 = vector.load %arg17[%c0_32, %c0_33] : memref<288x256xbf16, #tpu.memory_space<vmem>>, vector<32x256xbf16>
    tpu.vector_store %arg17[%c0_32, %c0_33], %117 {strides = array<i32>} : memref<288x256xbf16, #tpu.memory_space<vmem>>, vector<32x256xbf16>,
    %119 = vector.extract_strided_slice %96 {offsets = [0, 240], sizes = [32, 16], strides = [1, 1]} : vector<32x256xbf16> to vector<32x16xbf16>
    %120 = vector.extract_strided_slice %96 {offsets = [0, 0], sizes = [32, 240], strides = [1, 1]} : vector<32x256xbf16> to vector<32x240xbf16>
    %121 = tpu.concatenate %119, %120 in 1 : vector<32x16xbf16>, vector<32x240xbf16> -> vector<32x256xbf16>
    %c32_34 = arith.constant 32 : index
    %c0_35 = arith.constant 0 : index
    %122 = vector.load %arg17[%c32_34, %c0_35] : memref<288x256xbf16, #tpu.memory_space<vmem>>, vector<32x256xbf16>
    tpu.vector_store %arg17[%c32_34, %c0_35], %121 {strides = array<i32>} : memref<288x256xbf16, #tpu.memory_space<vmem>>, vector<32x256xbf16>,
    %123 = vector.extract_strided_slice %114 {offsets = [0, 240], sizes = [32, 16], strides = [1, 1]} : vector<32x256xbf16> to vector<32x16xbf16>
    %124 = vector.extract_strided_slice %114 {offsets = [0, 0], sizes = [32, 240], strides = [1, 1]} : vector<32x256xbf16> to vector<32x240xbf16>
    %125 = tpu.concatenate %123, %124 in 1 : vector<32x16xbf16>, vector<32x240xbf16> -> vector<32x256xbf16>
    %c64 = arith.constant 64 : index
    %c0_36 = arith.constant 0 : index
    %126 = vector.load %arg17[%c64, %c0_36] : memref<288x256xbf16, #tpu.memory_space<vmem>>, vector<32x256xbf16>
    tpu.vector_store %arg17[%c64, %c0_36], %125 {strides = array<i32>} : memref<288x256xbf16, #tpu.memory_space<vmem>>, vector<32x256xbf16>,
    %c96 = arith.constant 96 : index
    %c0_37 = arith.constant 0 : index
    %127 = vector.load %arg17[%c96, %c0_37] : memref<288x256xbf16, #tpu.memory_space<vmem>>, vector<32x256xbf16>
    tpu.vector_store %arg17[%c96, %c0_37], %105 {strides = array<i32>} : memref<288x256xbf16, #tpu.memory_space<vmem>>, vector<32x256xbf16>,
    %c128 = arith.constant 128 : index
    %c0_38 = arith.constant 0 : index
    %128 = vector.load %arg17[%c128, %c0_38] : memref<288x256xbf16, #tpu.memory_space<vmem>>, vector<32x256xbf16>
    tpu.vector_store %arg17[%c128, %c0_38], %96 {strides = array<i32>} : memref<288x256xbf16, #tpu.memory_space<vmem>>, vector<32x256xbf16>,
    %c160 = arith.constant 160 : index
    %c0_39 = arith.constant 0 : index
    %129 = vector.load %arg17[%c160, %c0_39] : memref<288x256xbf16, #tpu.memory_space<vmem>>, vector<32x256xbf16>
    tpu.vector_store %arg17[%c160, %c0_39], %114 {strides = array<i32>} : memref<288x256xbf16, #tpu.memory_space<vmem>>, vector<32x256xbf16>,
    %130 = vector.extract_strided_slice %105 {offsets = [0, 16], sizes = [32, 240], strides = [1, 1]} : vector<32x256xbf16> to vector<32x240xbf16>
    %131 = vector.extract_strided_slice %105 {offsets = [0, 0], sizes = [32, 16], strides = [1, 1]} : vector<32x256xbf16> to vector<32x16xbf16>
    %132 = tpu.concatenate %130, %131 in 1 : vector<32x240xbf16>, vector<32x16xbf16> -> vector<32x256xbf16>
    %c192 = arith.constant 192 : index
    %c0_40 = arith.constant 0 : index
    %133 = vector.load %arg17[%c192, %c0_40] : memref<288x256xbf16, #tpu.memory_space<vmem>>, vector<32x256xbf16>
    tpu.vector_store %arg17[%c192, %c0_40], %132 {strides = array<i32>} : memref<288x256xbf16, #tpu.memory_space<vmem>>, vector<32x256xbf16>,
    %134 = vector.extract_strided_slice %96 {offsets = [0, 16], sizes = [32, 240], strides = [1, 1]} : vector<32x256xbf16> to vector<32x240xbf16>
    %135 = vector.extract_strided_slice %96 {offsets = [0, 0], sizes = [32, 16], strides = [1, 1]} : vector<32x256xbf16> to vector<32x16xbf16>
    %136 = tpu.concatenate %134, %135 in 1 : vector<32x240xbf16>, vector<32x16xbf16> -> vector<32x256xbf16>
    %c224 = arith.constant 224 : index
    %c0_41 = arith.constant 0 : index
    %137 = vector.load %arg17[%c224, %c0_41] : memref<288x256xbf16, #tpu.memory_space<vmem>>, vector<32x256xbf16>
    tpu.vector_store %arg17[%c224, %c0_41], %136 {strides = array<i32>} : memref<288x256xbf16, #tpu.memory_space<vmem>>, vector<32x256xbf16>,
    %138 = vector.extract_strided_slice %114 {offsets = [0, 16], sizes = [32, 240], strides = [1, 1]} : vector<32x256xbf16> to vector<32x240xbf16>
    %139 = vector.extract_strided_slice %114 {offsets = [0, 0], sizes = [32, 16], strides = [1, 1]} : vector<32x256xbf16> to vector<32x16xbf16>
    %140 = tpu.concatenate %138, %139 in 1 : vector<32x240xbf16>, vector<32x16xbf16> -> vector<32x256xbf16>
    %c256 = arith.constant 256 : index
    %c0_42 = arith.constant 0 : index
    %141 = vector.load %arg17[%c256, %c0_42] : memref<288x256xbf16, #tpu.memory_space<vmem>>, vector<32x256xbf16>
    tpu.vector_store %arg17[%c256, %c0_42], %140 {strides = array<i32>} : memref<288x256xbf16, #tpu.memory_space<vmem>>, vector<32x256xbf16>,
    %c0_43 = arith.constant 0 : index
    %c0_44 = arith.constant 0 : index
    %142 = vector.load %arg7[%c0_43, %c0_44] : memref<36x288xbf16, #tpu.memory_space<vmem>>, vector<36x288xbf16>
    %c0_45 = arith.constant 0 : index
    %c0_46 = arith.constant 0 : index
    %143 = vector.load %arg17[%c0_45, %c0_46] : memref<288x256xbf16, #tpu.memory_space<vmem>>, vector<288x256xbf16>
    %cst_47 = arith.constant dense<0.000000e+00> : vector<36x256xf32>
    %144 = tpu.matmul %142, %143, %cst_47 {dimension_numbers = #tpu.dot_dimension_numbers<[1], [0], [0], [1], [0, 0, 1, 1], [], []>} : vector<36x288xbf16>, vector<288x256xbf16>, vector<36x256xf32> -> vector<36x256xf32>
    %145 = vector.extract_strided_slice %144 {offsets = [0, 0], sizes = [32, 256], strides = [1, 1]} : vector<36x256xf32> to vector<32x256xf32>
    %146 = vector.extract_strided_slice %144 {offsets = [32, 0], sizes = [4, 256], strides = [1, 1]} : vector<36x256xf32> to vector<4x256xf32>
    %c0_48 = arith.constant 0 : index
    %c0_49 = arith.constant 0 : index
    %147 = vector.load %arg8[%c0_48, %c0_49] : memref<32x4xf32, #tpu.memory_space<vmem>>, vector<32x4xf32>
    %148 = vector.broadcast %22 : vector<1x4xf32> to vector<32x4xf32>
    %149 = arith.mulf %147, %148 : vector<32x4xf32>
    %cst_50 = arith.constant dense<0.000000e+00> : vector<32x256xf32>
    %150 = tpu.matmul %149, %146, %cst_50 {dimension_numbers = #tpu.dot_dimension_numbers<[1], [0], [0], [1], [0, 0, 1, 1], [], []>} : vector<32x4xf32>, vector<4x256xf32>, vector<32x256xf32> -> vector<32x256xf32>
    %151 = arith.addf %145, %150 : vector<32x256xf32>
    %c0_51 = arith.constant 0 : index
    %c0_52 = arith.constant 0 : index
    %152 = vector.load %arg9[%c0_51, %c0_52] : memref<32x1xf32, #tpu.memory_space<vmem>>, vector<32x1xf32>
    %153 = vector.broadcast %152 : vector<32x1xf32> to vector<32x256xf32>
    %154 = arith.addf %151, %153 : vector<32x256xf32>
    %c1_i32_53 = arith.constant 1 : i32
    %155 = arith.muli %arg0, %c1_i32_53 : i32
    %c0_i32_54 = arith.constant 0 : i32
    %156 = arith.addi %155, %c0_i32_54 : i32
    %157 = arith.index_cast %156 : i32 to index
    %c1 = arith.constant 1 : index
    %158 = memref.load %arg1[%157, %c1] : memref<2x3xf32, #tpu.memory_space<smem>>
    %159 = vector.broadcast %158 : f32 to vector<32x256xf32>
    %160 = arith.mulf %159, %154 : vector<32x256xf32>
    %161 = arith.negf %160 : vector<32x256xf32>
    %162 = math.exp %161 : vector<32x256xf32>
    %cst_55 = arith.constant 1.000000e+00 : f32
    %163 = vector.broadcast %cst_55 : f32 to vector<32x256xf32>
    %164 = arith.addf %163, %162 : vector<32x256xf32>
    %165 = arith.divf %163, %164 : vector<32x256xf32>
    %166 = arith.mulf %154, %165 : vector<32x256xf32>
    %167 = arith.truncf %166 : vector<32x256xf32> to vector<32x256xbf16>
    %168 = vector.extract_strided_slice %167 {offsets = [0, 255], sizes = [32, 1], strides = [1, 1]} : vector<32x256xbf16> to vector<32x1xbf16>
    %169 = vector.extract_strided_slice %167 {offsets = [0, 0], sizes = [32, 255], strides = [1, 1]} : vector<32x256xbf16> to vector<32x255xbf16>
    %170 = tpu.concatenate %168, %169 in 1 : vector<32x1xbf16>, vector<32x255xbf16> -> vector<32x256xbf16>
    %171 = vector.extract_strided_slice %167 {offsets = [0, 15], sizes = [32, 241], strides = [1, 1]} : vector<32x256xbf16> to vector<32x241xbf16>
    %172 = vector.extract_strided_slice %167 {offsets = [0, 0], sizes = [32, 15], strides = [1, 1]} : vector<32x256xbf16> to vector<32x15xbf16>
    %173 = tpu.concatenate %171, %172 in 1 : vector<32x241xbf16>, vector<32x15xbf16> -> vector<32x256xbf16>
    %174 = vector.shape_cast %18 : vector<1x256xi1> to vector<1x256xi1>
    %175 = vector.broadcast %174 : vector<1x256xi1> to vector<32x256xi1>
    %176 = arith.select %175, %173, %170 : vector<32x256xi1>, vector<32x256xbf16>
    %177 = vector.extract_strided_slice %167 {offsets = [0, 1], sizes = [32, 255], strides = [1, 1]} : vector<32x256xbf16> to vector<32x255xbf16>
    %178 = vector.extract_strided_slice %167 {offsets = [0, 0], sizes = [32, 1], strides = [1, 1]} : vector<32x256xbf16> to vector<32x1xbf16>
    %179 = tpu.concatenate %177, %178 in 1 : vector<32x255xbf16>, vector<32x1xbf16> -> vector<32x256xbf16>
    %180 = vector.extract_strided_slice %167 {offsets = [0, 241], sizes = [32, 15], strides = [1, 1]} : vector<32x256xbf16> to vector<32x15xbf16>
    %181 = vector.extract_strided_slice %167 {offsets = [0, 0], sizes = [32, 241], strides = [1, 1]} : vector<32x256xbf16> to vector<32x241xbf16>
    %182 = tpu.concatenate %180, %181 in 1 : vector<32x15xbf16>, vector<32x241xbf16> -> vector<32x256xbf16>
    %183 = vector.shape_cast %20 : vector<1x256xi1> to vector<1x256xi1>
    %184 = vector.broadcast %183 : vector<1x256xi1> to vector<32x256xi1>
    %185 = arith.select %184, %182, %179 : vector<32x256xi1>, vector<32x256xbf16>
    %186 = vector.extract_strided_slice %176 {offsets = [0, 240], sizes = [32, 16], strides = [1, 1]} : vector<32x256xbf16> to vector<32x16xbf16>
    %187 = vector.extract_strided_slice %176 {offsets = [0, 0], sizes = [32, 240], strides = [1, 1]} : vector<32x256xbf16> to vector<32x240xbf16>
    %188 = tpu.concatenate %186, %187 in 1 : vector<32x16xbf16>, vector<32x240xbf16> -> vector<32x256xbf16>
    %c0_56 = arith.constant 0 : index
    %c0_57 = arith.constant 0 : index
    %189 = vector.load %arg17[%c0_56, %c0_57] : memref<288x256xbf16, #tpu.memory_space<vmem>>, vector<32x256xbf16>
    tpu.vector_store %arg17[%c0_56, %c0_57], %188 {strides = array<i32>} : memref<288x256xbf16, #tpu.memory_space<vmem>>, vector<32x256xbf16>,
    %190 = vector.extract_strided_slice %167 {offsets = [0, 240], sizes = [32, 16], strides = [1, 1]} : vector<32x256xbf16> to vector<32x16xbf16>
    %191 = vector.extract_strided_slice %167 {offsets = [0, 0], sizes = [32, 240], strides = [1, 1]} : vector<32x256xbf16> to vector<32x240xbf16>
    %192 = tpu.concatenate %190, %191 in 1 : vector<32x16xbf16>, vector<32x240xbf16> -> vector<32x256xbf16>
    %c32_58 = arith.constant 32 : index
    %c0_59 = arith.constant 0 : index
    %193 = vector.load %arg17[%c32_58, %c0_59] : memref<288x256xbf16, #tpu.memory_space<vmem>>, vector<32x256xbf16>
    tpu.vector_store %arg17[%c32_58, %c0_59], %192 {strides = array<i32>} : memref<288x256xbf16, #tpu.memory_space<vmem>>, vector<32x256xbf16>,
    %194 = vector.extract_strided_slice %185 {offsets = [0, 240], sizes = [32, 16], strides = [1, 1]} : vector<32x256xbf16> to vector<32x16xbf16>
    %195 = vector.extract_strided_slice %185 {offsets = [0, 0], sizes = [32, 240], strides = [1, 1]} : vector<32x256xbf16> to vector<32x240xbf16>
    %196 = tpu.concatenate %194, %195 in 1 : vector<32x16xbf16>, vector<32x240xbf16> -> vector<32x256xbf16>
    %c64_60 = arith.constant 64 : index
    %c0_61 = arith.constant 0 : index
    %197 = vector.load %arg17[%c64_60, %c0_61] : memref<288x256xbf16, #tpu.memory_space<vmem>>, vector<32x256xbf16>
    tpu.vector_store %arg17[%c64_60, %c0_61], %196 {strides = array<i32>} : memref<288x256xbf16, #tpu.memory_space<vmem>>, vector<32x256xbf16>,
    %c96_62 = arith.constant 96 : index
    %c0_63 = arith.constant 0 : index
    %198 = vector.load %arg17[%c96_62, %c0_63] : memref<288x256xbf16, #tpu.memory_space<vmem>>, vector<32x256xbf16>
    tpu.vector_store %arg17[%c96_62, %c0_63], %176 {strides = array<i32>} : memref<288x256xbf16, #tpu.memory_space<vmem>>, vector<32x256xbf16>,
    %c128_64 = arith.constant 128 : index
    %c0_65 = arith.constant 0 : index
    %199 = vector.load %arg17[%c128_64, %c0_65] : memref<288x256xbf16, #tpu.memory_space<vmem>>, vector<32x256xbf16>
    tpu.vector_store %arg17[%c128_64, %c0_65], %167 {strides = array<i32>} : memref<288x256xbf16, #tpu.memory_space<vmem>>, vector<32x256xbf16>,
    %c160_66 = arith.constant 160 : index
    %c0_67 = arith.constant 0 : index
    %200 = vector.load %arg17[%c160_66, %c0_67] : memref<288x256xbf16, #tpu.memory_space<vmem>>, vector<32x256xbf16>
    tpu.vector_store %arg17[%c160_66, %c0_67], %185 {strides = array<i32>} : memref<288x256xbf16, #tpu.memory_space<vmem>>, vector<32x256xbf16>,
    %201 = vector.extract_strided_slice %176 {offsets = [0, 16], sizes = [32, 240], strides = [1, 1]} : vector<32x256xbf16> to vector<32x240xbf16>
    %202 = vector.extract_strided_slice %176 {offsets = [0, 0], sizes = [32, 16], strides = [1, 1]} : vector<32x256xbf16> to vector<32x16xbf16>
    %203 = tpu.concatenate %201, %202 in 1 : vector<32x240xbf16>, vector<32x16xbf16> -> vector<32x256xbf16>
    %c192_68 = arith.constant 192 : index
    %c0_69 = arith.constant 0 : index
    %204 = vector.load %arg17[%c192_68, %c0_69] : memref<288x256xbf16, #tpu.memory_space<vmem>>, vector<32x256xbf16>
    tpu.vector_store %arg17[%c192_68, %c0_69], %203 {strides = array<i32>} : memref<288x256xbf16, #tpu.memory_space<vmem>>, vector<32x256xbf16>,
    %205 = vector.extract_strided_slice %167 {offsets = [0, 16], sizes = [32, 240], strides = [1, 1]} : vector<32x256xbf16> to vector<32x240xbf16>
    %206 = vector.extract_strided_slice %167 {offsets = [0, 0], sizes = [32, 16], strides = [1, 1]} : vector<32x256xbf16> to vector<32x16xbf16>
    %207 = tpu.concatenate %205, %206 in 1 : vector<32x240xbf16>, vector<32x16xbf16> -> vector<32x256xbf16>
    %c224_70 = arith.constant 224 : index
    %c0_71 = arith.constant 0 : index
    %208 = vector.load %arg17[%c224_70, %c0_71] : memref<288x256xbf16, #tpu.memory_space<vmem>>, vector<32x256xbf16>
    tpu.vector_store %arg17[%c224_70, %c0_71], %207 {strides = array<i32>} : memref<288x256xbf16, #tpu.memory_space<vmem>>, vector<32x256xbf16>,
    %209 = vector.extract_strided_slice %185 {offsets = [0, 16], sizes = [32, 240], strides = [1, 1]} : vector<32x256xbf16> to vector<32x240xbf16>
    %210 = vector.extract_strided_slice %185 {offsets = [0, 0], sizes = [32, 16], strides = [1, 1]} : vector<32x256xbf16> to vector<32x16xbf16>
    %211 = tpu.concatenate %209, %210 in 1 : vector<32x240xbf16>, vector<32x16xbf16> -> vector<32x256xbf16>
    %c256_72 = arith.constant 256 : index
    %c0_73 = arith.constant 0 : index
    %212 = vector.load %arg17[%c256_72, %c0_73] : memref<288x256xbf16, #tpu.memory_space<vmem>>, vector<32x256xbf16>
    tpu.vector_store %arg17[%c256_72, %c0_73], %211 {strides = array<i32>} : memref<288x256xbf16, #tpu.memory_space<vmem>>, vector<32x256xbf16>,
    %c0_74 = arith.constant 0 : index
    %c0_75 = arith.constant 0 : index
    %213 = vector.load %arg10[%c0_74, %c0_75] : memref<36x288xbf16, #tpu.memory_space<vmem>>, vector<36x288xbf16>
    %c0_76 = arith.constant 0 : index
    %c0_77 = arith.constant 0 : index
    %214 = vector.load %arg17[%c0_76, %c0_77] : memref<288x256xbf16, #tpu.memory_space<vmem>>, vector<288x256xbf16>
    %cst_78 = arith.constant dense<0.000000e+00> : vector<36x256xf32>
    %215 = tpu.matmul %213, %214, %cst_78 {dimension_numbers = #tpu.dot_dimension_numbers<[1], [0], [0], [1], [0, 0, 1, 1], [], []>} : vector<36x288xbf16>, vector<288x256xbf16>, vector<36x256xf32> -> vector<36x256xf32>
    %216 = vector.extract_strided_slice %215 {offsets = [0, 0], sizes = [32, 256], strides = [1, 1]} : vector<36x256xf32> to vector<32x256xf32>
    %217 = vector.extract_strided_slice %215 {offsets = [32, 0], sizes = [4, 256], strides = [1, 1]} : vector<36x256xf32> to vector<4x256xf32>
    %c0_79 = arith.constant 0 : index
    %c0_80 = arith.constant 0 : index
    %218 = vector.load %arg11[%c0_79, %c0_80] : memref<32x4xf32, #tpu.memory_space<vmem>>, vector<32x4xf32>
    %219 = vector.broadcast %22 : vector<1x4xf32> to vector<32x4xf32>
    %220 = arith.mulf %218, %219 : vector<32x4xf32>
    %cst_81 = arith.constant dense<0.000000e+00> : vector<32x256xf32>
    %221 = tpu.matmul %220, %217, %cst_81 {dimension_numbers = #tpu.dot_dimension_numbers<[1], [0], [0], [1], [0, 0, 1, 1], [], []>} : vector<32x4xf32>, vector<4x256xf32>, vector<32x256xf32> -> vector<32x256xf32>
    %222 = arith.addf %216, %221 : vector<32x256xf32>
    %c0_82 = arith.constant 0 : index
    %c0_83 = arith.constant 0 : index
    %223 = vector.load %arg12[%c0_82, %c0_83] : memref<32x1xf32, #tpu.memory_space<vmem>>, vector<32x1xf32>
    %224 = vector.broadcast %223 : vector<32x1xf32> to vector<32x256xf32>
    %225 = arith.addf %222, %224 : vector<32x256xf32>
    %c1_i32_84 = arith.constant 1 : i32
    %226 = arith.muli %arg0, %c1_i32_84 : i32
    %c0_i32_85 = arith.constant 0 : i32
    %227 = arith.addi %226, %c0_i32_85 : i32
    %228 = arith.index_cast %227 : i32 to index
    %c2 = arith.constant 2 : index
    %229 = memref.load %arg1[%228, %c2] : memref<2x3xf32, #tpu.memory_space<smem>>
    %230 = vector.broadcast %229 : f32 to vector<32x256xf32>
    %231 = arith.mulf %230, %225 : vector<32x256xf32>
    %232 = arith.negf %231 : vector<32x256xf32>
    %233 = math.exp %232 : vector<32x256xf32>
    %cst_86 = arith.constant 1.000000e+00 : f32
    %234 = vector.broadcast %cst_86 : f32 to vector<32x256xf32>
    %235 = arith.addf %234, %233 : vector<32x256xf32>
    %236 = arith.divf %234, %235 : vector<32x256xf32>
    %237 = arith.mulf %225, %236 : vector<32x256xf32>
    %238 = arith.truncf %237 : vector<32x256xf32> to vector<32x256xbf16>
    %239 = vector.extract_strided_slice %238 {offsets = [0, 255], sizes = [32, 1], strides = [1, 1]} : vector<32x256xbf16> to vector<32x1xbf16>
    %240 = vector.extract_strided_slice %238 {offsets = [0, 0], sizes = [32, 255], strides = [1, 1]} : vector<32x256xbf16> to vector<32x255xbf16>
    %241 = tpu.concatenate %239, %240 in 1 : vector<32x1xbf16>, vector<32x255xbf16> -> vector<32x256xbf16>
    %242 = vector.extract_strided_slice %238 {offsets = [0, 15], sizes = [32, 241], strides = [1, 1]} : vector<32x256xbf16> to vector<32x241xbf16>
    %243 = vector.extract_strided_slice %238 {offsets = [0, 0], sizes = [32, 15], strides = [1, 1]} : vector<32x256xbf16> to vector<32x15xbf16>
    %244 = tpu.concatenate %242, %243 in 1 : vector<32x241xbf16>, vector<32x15xbf16> -> vector<32x256xbf16>
    %245 = vector.shape_cast %18 : vector<1x256xi1> to vector<1x256xi1>
    %246 = vector.broadcast %245 : vector<1x256xi1> to vector<32x256xi1>
    %247 = arith.select %246, %244, %241 : vector<32x256xi1>, vector<32x256xbf16>
    %248 = vector.extract_strided_slice %238 {offsets = [0, 1], sizes = [32, 255], strides = [1, 1]} : vector<32x256xbf16> to vector<32x255xbf16>
    %249 = vector.extract_strided_slice %238 {offsets = [0, 0], sizes = [32, 1], strides = [1, 1]} : vector<32x256xbf16> to vector<32x1xbf16>
    %250 = tpu.concatenate %248, %249 in 1 : vector<32x255xbf16>, vector<32x1xbf16> -> vector<32x256xbf16>
    %251 = vector.extract_strided_slice %238 {offsets = [0, 241], sizes = [32, 15], strides = [1, 1]} : vector<32x256xbf16> to vector<32x15xbf16>
    %252 = vector.extract_strided_slice %238 {offsets = [0, 0], sizes = [32, 241], strides = [1, 1]} : vector<32x256xbf16> to vector<32x241xbf16>
    %253 = tpu.concatenate %251, %252 in 1 : vector<32x15xbf16>, vector<32x241xbf16> -> vector<32x256xbf16>
    %254 = vector.shape_cast %20 : vector<1x256xi1> to vector<1x256xi1>
    %255 = vector.broadcast %254 : vector<1x256xi1> to vector<32x256xi1>
    %256 = arith.select %255, %253, %250 : vector<32x256xi1>, vector<32x256xbf16>
    %257 = vector.extract_strided_slice %247 {offsets = [0, 240], sizes = [32, 16], strides = [1, 1]} : vector<32x256xbf16> to vector<32x16xbf16>
    %258 = vector.extract_strided_slice %247 {offsets = [0, 0], sizes = [32, 240], strides = [1, 1]} : vector<32x256xbf16> to vector<32x240xbf16>
    %259 = tpu.concatenate %257, %258 in 1 : vector<32x16xbf16>, vector<32x240xbf16> -> vector<32x256xbf16>
    %c0_87 = arith.constant 0 : index
    %c0_88 = arith.constant 0 : index
    %260 = vector.load %arg17[%c0_87, %c0_88] : memref<288x256xbf16, #tpu.memory_space<vmem>>, vector<32x256xbf16>
    tpu.vector_store %arg17[%c0_87, %c0_88], %259 {strides = array<i32>} : memref<288x256xbf16, #tpu.memory_space<vmem>>, vector<32x256xbf16>,
    %261 = vector.extract_strided_slice %238 {offsets = [0, 240], sizes = [32, 16], strides = [1, 1]} : vector<32x256xbf16> to vector<32x16xbf16>
    %262 = vector.extract_strided_slice %238 {offsets = [0, 0], sizes = [32, 240], strides = [1, 1]} : vector<32x256xbf16> to vector<32x240xbf16>
    %263 = tpu.concatenate %261, %262 in 1 : vector<32x16xbf16>, vector<32x240xbf16> -> vector<32x256xbf16>
    %c32_89 = arith.constant 32 : index
    %c0_90 = arith.constant 0 : index
    %264 = vector.load %arg17[%c32_89, %c0_90] : memref<288x256xbf16, #tpu.memory_space<vmem>>, vector<32x256xbf16>
    tpu.vector_store %arg17[%c32_89, %c0_90], %263 {strides = array<i32>} : memref<288x256xbf16, #tpu.memory_space<vmem>>, vector<32x256xbf16>,
    %265 = vector.extract_strided_slice %256 {offsets = [0, 240], sizes = [32, 16], strides = [1, 1]} : vector<32x256xbf16> to vector<32x16xbf16>
    %266 = vector.extract_strided_slice %256 {offsets = [0, 0], sizes = [32, 240], strides = [1, 1]} : vector<32x256xbf16> to vector<32x240xbf16>
    %267 = tpu.concatenate %265, %266 in 1 : vector<32x16xbf16>, vector<32x240xbf16> -> vector<32x256xbf16>
    %c64_91 = arith.constant 64 : index
    %c0_92 = arith.constant 0 : index
    %268 = vector.load %arg17[%c64_91, %c0_92] : memref<288x256xbf16, #tpu.memory_space<vmem>>, vector<32x256xbf16>
    tpu.vector_store %arg17[%c64_91, %c0_92], %267 {strides = array<i32>} : memref<288x256xbf16, #tpu.memory_space<vmem>>, vector<32x256xbf16>,
    %c96_93 = arith.constant 96 : index
    %c0_94 = arith.constant 0 : index
    %269 = vector.load %arg17[%c96_93, %c0_94] : memref<288x256xbf16, #tpu.memory_space<vmem>>, vector<32x256xbf16>
    tpu.vector_store %arg17[%c96_93, %c0_94], %247 {strides = array<i32>} : memref<288x256xbf16, #tpu.memory_space<vmem>>, vector<32x256xbf16>,
    %c128_95 = arith.constant 128 : index
    %c0_96 = arith.constant 0 : index
    %270 = vector.load %arg17[%c128_95, %c0_96] : memref<288x256xbf16, #tpu.memory_space<vmem>>, vector<32x256xbf16>
    tpu.vector_store %arg17[%c128_95, %c0_96], %238 {strides = array<i32>} : memref<288x256xbf16, #tpu.memory_space<vmem>>, vector<32x256xbf16>,
    %c160_97 = arith.constant 160 : index
    %c0_98 = arith.constant 0 : index
    %271 = vector.load %arg17[%c160_97, %c0_98] : memref<288x256xbf16, #tpu.memory_space<vmem>>, vector<32x256xbf16>
    tpu.vector_store %arg17[%c160_97, %c0_98], %256 {strides = array<i32>} : memref<288x256xbf16, #tpu.memory_space<vmem>>, vector<32x256xbf16>,
    %272 = vector.extract_strided_slice %247 {offsets = [0, 16], sizes = [32, 240], strides = [1, 1]} : vector<32x256xbf16> to vector<32x240xbf16>
    %273 = vector.extract_strided_slice %247 {offsets = [0, 0], sizes = [32, 16], strides = [1, 1]} : vector<32x256xbf16> to vector<32x16xbf16>
    %274 = tpu.concatenate %272, %273 in 1 : vector<32x240xbf16>, vector<32x16xbf16> -> vector<32x256xbf16>
    %c192_99 = arith.constant 192 : index
    %c0_100 = arith.constant 0 : index
    %275 = vector.load %arg17[%c192_99, %c0_100] : memref<288x256xbf16, #tpu.memory_space<vmem>>, vector<32x256xbf16>
    tpu.vector_store %arg17[%c192_99, %c0_100], %274 {strides = array<i32>} : memref<288x256xbf16, #tpu.memory_space<vmem>>, vector<32x256xbf16>,
    %276 = vector.extract_strided_slice %238 {offsets = [0, 16], sizes = [32, 240], strides = [1, 1]} : vector<32x256xbf16> to vector<32x240xbf16>
    %277 = vector.extract_strided_slice %238 {offsets = [0, 0], sizes = [32, 16], strides = [1, 1]} : vector<32x256xbf16> to vector<32x16xbf16>
    %278 = tpu.concatenate %276, %277 in 1 : vector<32x240xbf16>, vector<32x16xbf16> -> vector<32x256xbf16>
    %c224_101 = arith.constant 224 : index
    %c0_102 = arith.constant 0 : index
    %279 = vector.load %arg17[%c224_101, %c0_102] : memref<288x256xbf16, #tpu.memory_space<vmem>>, vector<32x256xbf16>
    tpu.vector_store %arg17[%c224_101, %c0_102], %278 {strides = array<i32>} : memref<288x256xbf16, #tpu.memory_space<vmem>>, vector<32x256xbf16>,
    %280 = vector.extract_strided_slice %256 {offsets = [0, 16], sizes = [32, 240], strides = [1, 1]} : vector<32x256xbf16> to vector<32x240xbf16>
    %281 = vector.extract_strided_slice %256 {offsets = [0, 0], sizes = [32, 16], strides = [1, 1]} : vector<32x256xbf16> to vector<32x16xbf16>
    %282 = tpu.concatenate %280, %281 in 1 : vector<32x240xbf16>, vector<32x16xbf16> -> vector<32x256xbf16>
    %c256_103 = arith.constant 256 : index
    %c0_104 = arith.constant 0 : index
    %283 = vector.load %arg17[%c256_103, %c0_104] : memref<288x256xbf16, #tpu.memory_space<vmem>>, vector<32x256xbf16>
    tpu.vector_store %arg17[%c256_103, %c0_104], %282 {strides = array<i32>} : memref<288x256xbf16, #tpu.memory_space<vmem>>, vector<32x256xbf16>,
    %c0_105 = arith.constant 0 : index
    %c0_106 = arith.constant 0 : index
    %284 = vector.load %arg13[%c0_105, %c0_106] : memref<8x288xbf16, #tpu.memory_space<vmem>>, vector<8x288xbf16>
    %c0_107 = arith.constant 0 : index
    %c0_108 = arith.constant 0 : index
    %285 = vector.load %arg17[%c0_107, %c0_108] : memref<288x256xbf16, #tpu.memory_space<vmem>>, vector<288x256xbf16>
    %cst_109 = arith.constant dense<0.000000e+00> : vector<8x256xf32>
    %286 = tpu.matmul %284, %285, %cst_109 {dimension_numbers = #tpu.dot_dimension_numbers<[1], [0], [0], [1], [0, 0, 1, 1], [], []>} : vector<8x288xbf16>, vector<288x256xbf16>, vector<8x256xf32> -> vector<8x256xf32>
    %287 = vector.extract_strided_slice %286 {offsets = [0, 0], sizes = [4, 256], strides = [1, 1]} : vector<8x256xf32> to vector<4x256xf32>
    %288 = vector.extract_strided_slice %286 {offsets = [4, 0], sizes = [4, 256], strides = [1, 1]} : vector<8x256xf32> to vector<4x256xf32>
    %c0_110 = arith.constant 0 : index
    %c0_111 = arith.constant 0 : index
    %289 = vector.load %arg14[%c0_110, %c0_111] : memref<4x4xf32, #tpu.memory_space<vmem>>, vector<4x4xf32>
    %290 = vector.broadcast %22 : vector<1x4xf32> to vector<4x4xf32>
    %291 = arith.mulf %289, %290 : vector<4x4xf32>
    %cst_112 = arith.constant dense<0.000000e+00> : vector<4x256xf32>
    %292 = tpu.matmul %291, %288, %cst_112 {dimension_numbers = #tpu.dot_dimension_numbers<[1], [0], [0], [1], [0, 0, 1, 1], [], []>} : vector<4x4xf32>, vector<4x256xf32>, vector<4x256xf32> -> vector<4x256xf32>
    %293 = arith.addf %287, %292 : vector<4x256xf32>
    %c0_113 = arith.constant 0 : index
    %c0_114 = arith.constant 0 : index
    %294 = vector.load %arg15[%c0_113, %c0_114] : memref<4x1xf32, #tpu.memory_space<vmem>>, vector<4x1xf32>
    %295 = vector.broadcast %294 : vector<4x1xf32> to vector<4x256xf32>
    %296 = arith.addf %293, %295 : vector<4x256xf32>
    %cst_115 = arith.constant 5.000000e-04 : f32
    %297 = vector.broadcast %cst_115 : f32 to vector<4x256xf32>
    %298 = arith.mulf %296, %297 : vector<4x256xf32>
    %c0_116 = arith.constant 0 : index
    %c0_117 = arith.constant 0 : index
    %c0_118 = arith.constant 0 : index
    %299 = vector.load %arg16[%c0_116, %c0_117, %c0_118] : memref<1x4x256xf32, #tpu.memory_space<vmem>>, vector<1x4x256xf32>
    %300 = vector.shape_cast %299 : vector<1x4x256xf32> to vector<4x256xf32>
    %301 = vector.shape_cast %298 : vector<4x256xf32> to vector<1x4x256xf32>
    tpu.vector_store %arg16[%c0_116, %c0_117, %c0_118], %301 {strides = array<i32>} : memref<1x4x256xf32, #tpu.memory_space<vmem>>, vector<1x4x256xf32>,
    return
  }
  func.func @transform_0(%arg0: i32, %arg1: memref<2x3xf32, #tpu.memory_space<smem>>) -> (i32, i32, i32) {
    %c0_i32 = arith.constant 0 : i32
    %c0_i32_0 = arith.constant 0 : i32
    %c0_i32_1 = arith.constant 0 : i32
    return %arg0, %c0_i32, %c0_i32_0 : i32, i32, i32
  }
  func.func @transform_1(%arg0: i32, %arg1: memref<2x3xf32, #tpu.memory_space<smem>>) -> (i32, i32, i32) {
    %c0_i32 = arith.constant 0 : i32
    %c0_i32_0 = arith.constant 0 : i32
    %c0_i32_1 = arith.constant 0 : i32
    return %arg0, %c0_i32, %c0_i32_0 : i32, i32, i32
  }
  func.func @transform_2(%arg0: i32, %arg1: memref<2x3xf32, #tpu.memory_space<smem>>) -> (i32, i32) {
    %c0_i32 = arith.constant 0 : i32
    %c0_i32_0 = arith.constant 0 : i32
    %c0_i32_1 = arith.constant 0 : i32
    return %c0_i32, %c0_i32_0 : i32, i32
  }
  func.func @transform_3(%arg0: i32, %arg1: memref<2x3xf32, #tpu.memory_space<smem>>) -> (i32, i32) {
    %c0_i32 = arith.constant 0 : i32
    %c0_i32_0 = arith.constant 0 : i32
    %c0_i32_1 = arith.constant 0 : i32
    return %c0_i32, %c0_i32_0 : i32, i32
  }
  func.func @transform_4(%arg0: i32, %arg1: memref<2x3xf32, #tpu.memory_space<smem>>) -> (i32, i32) {
    %c0_i32 = arith.constant 0 : i32
    %c0_i32_0 = arith.constant 0 : i32
    %c0_i32_1 = arith.constant 0 : i32
    return %c0_i32, %c0_i32_0 : i32, i32
  }
  func.func @transform_5(%arg0: i32, %arg1: memref<2x3xf32, #tpu.memory_space<smem>>) -> (i32, i32) {
    %c0_i32 = arith.constant 0 : i32
    %c0_i32_0 = arith.constant 0 : i32
    %c0_i32_1 = arith.constant 0 : i32
    return %c0_i32, %c0_i32_0 : i32, i32
  }
  func.func @transform_6(%arg0: i32, %arg1: memref<2x3xf32, #tpu.memory_space<smem>>) -> (i32, i32) {
    %c0_i32 = arith.constant 0 : i32
    %c0_i32_0 = arith.constant 0 : i32
    %c0_i32_1 = arith.constant 0 : i32
    return %c0_i32, %c0_i32_0 : i32, i32
  }
  func.func @transform_7(%arg0: i32, %arg1: memref<2x3xf32, #tpu.memory_space<smem>>) -> (i32, i32) {
    %c0_i32 = arith.constant 0 : i32
    %c0_i32_0 = arith.constant 0 : i32
    %c0_i32_1 = arith.constant 0 : i32
    return %c0_i32, %c0_i32_0 : i32, i32
  }
  func.func @transform_8(%arg0: i32, %arg1: memref<2x3xf32, #tpu.memory_space<smem>>) -> (i32, i32) {
    %c0_i32 = arith.constant 0 : i32
    %c0_i32_0 = arith.constant 0 : i32
    %c0_i32_1 = arith.constant 0 : i32
    return %c0_i32, %c0_i32_0 : i32, i32
  }
  func.func @transform_9(%arg0: i32, %arg1: memref<2x3xf32, #tpu.memory_space<smem>>) -> (i32, i32) {
    %c0_i32 = arith.constant 0 : i32
    %c0_i32_0 = arith.constant 0 : i32
    %c0_i32_1 = arith.constant 0 : i32
    return %c0_i32, %c0_i32_0 : i32, i32
  }
  func.func @transform_10(%arg0: i32, %arg1: memref<2x3xf32, #tpu.memory_space<smem>>) -> (i32, i32) {
    %c0_i32 = arith.constant 0 : i32
    %c0_i32_0 = arith.constant 0 : i32
    %c0_i32_1 = arith.constant 0 : i32
    return %c0_i32, %c0_i32_0 : i32, i32
  }
  func.func @transform_11(%arg0: i32, %arg1: memref<2x3xf32, #tpu.memory_space<smem>>) -> (i32, i32) {
    %c0_i32 = arith.constant 0 : i32
    %c0_i32_0 = arith.constant 0 : i32
    %c0_i32_1 = arith.constant 0 : i32
    return %c0_i32, %c0_i32_0 : i32, i32
  }
  func.func @transform_12(%arg0: i32, %arg1: memref<2x3xf32, #tpu.memory_space<smem>>) -> (i32, i32) {
    %c0_i32 = arith.constant 0 : i32
    %c0_i32_0 = arith.constant 0 : i32
    %c0_i32_1 = arith.constant 0 : i32
    return %c0_i32, %c0_i32_0 : i32, i32
  }
  func.func @transform_13(%arg0: i32, %arg1: memref<2x3xf32, #tpu.memory_space<smem>>) -> (i32, i32) {
    %c0_i32 = arith.constant 0 : i32
    %c0_i32_0 = arith.constant 0 : i32
    %c0_i32_1 = arith.constant 0 : i32
    return %c0_i32, %c0_i32_0 : i32, i32
  }
  func.func @transform_14(%arg0: i32, %arg1: memref<2x3xf32, #tpu.memory_space<smem>>) -> (i32, i32, i32) {
    %c0_i32 = arith.constant 0 : i32
    %c0_i32_0 = arith.constant 0 : i32
    %c0_i32_1 = arith.constant 0 : i32
    return %arg0, %c0_i32, %c0_i32_0 : i32, i32, i32
  }
}

</mosaic_0001>

<bundles_post_ra>
// kernel: tpu_custom_call.1
= control target key start
LH: loop header
LB: loop body
LE: loop exit
PB: predicated region body
PF: predicated region fallthrough
CT: control target
= control target key end

     0   :  { %6 = vsyncpa [#allocation3], 0  ;;  %s128_s0 = inlined_call_operand.hbm [shape: f32[8,128], index: 0, kind: input, shape index: {}]   ;;  %s129_s1 = inlined_call_operand.hbm [shape: f32[8,128], index: 1, kind: output, shape index: {}]  }
   0x1   :  { %7 = vsyncpa [#allocation4], 0  ;;  %s91_s6 = smov [#allocation2]   ;;  %s43_s10 = scalar_lea.hbm %s128_s0, 128 }
   0x2   :  { %s14_s7 = sshll.u32 %s91_s6, 4  ;;  %p44_p0 = scmp.ne.s32.totalorder %s128_s0, %s43_s10  ;;  %s15_s7 = int_to_ptr.vmem [resolvable:$true] %s14_s7 }
   0x3   :  { %p47_p1 = scmp.lt.u32.totalorder %s43_s10, %s128_s0 }
   0x5   :  { %p49_p2 = pnand %p47_p1, %p44_p0 }
   0x7   :  { %52 = shalt.err (!%p49_p2)
}
   0x8   :  { %s53_s15 = scalar_lea.vmem %s15_s7, 128  ;;  %p58_p4 = scmp.lt.s32.totalorder %s15_s7, %s15_s7 }
   0x9   :  { %p54_p3 = scmp.ne.s32.totalorder %s15_s7, %s53_s15  ;;  %p59_p5 = scmp.lt.s32.totalorder %s53_s15, %s53_s15 }
   0xb   :  { %p60_p6 = por %p59_p5, %p58_p4 }
   0xd   :  { %p61_p7 = pnand %p60_p6, %p54_p3 }
   0xf   :  { %64 = shalt.err (!%p61_p7)
}
  0x10   :  { %17 = dma.hbm_to_vmem [thread:$0]  %s128_s0, 128, %s15_s7, [#allocation3]  }
  0x11   :  { %87 = dma.done.wait [#allocation3], 128  }
  0x12   :  { %88 = vsyncadd [#allocation3], 4294967168  ;;  %v21_v0 = vld [vmem:[#allocation2] sm:$0xff]  ;;  %s92_s18 = smov 3   ;;  %s93_s19 = smov [#allocation5]  }
  0x13   :  { %22 = vrot.lane.b32.xlu0 %v21_v0, %s92_s18  ;;  %s31_s20 = sshll.u32 %s93_s19, 4  ;;  %s32_s20 = int_to_ptr.vmem [resolvable:$true] %s31_s20 }
  0x14   :  { %s65_s21 = scalar_lea.vmem %s32_s20, 128  ;;  %p70_p9 = scmp.lt.s32.totalorder %s32_s20, %s32_s20 }
  0x15   :  { %p66_p8 = scmp.ne.s32.totalorder %s32_s20, %s65_s21  ;;  %p71_p10 = scmp.lt.s32.totalorder %s65_s21, %s65_s21 }
  0x17   :  { %p72_p11 = por %p71_p10, %p70_p9 }
  0x19   :  { %p73_p12 = pnand %p72_p11, %p66_p8 }
  0x85   :  { %v23_v1 = vpop.permute.xlu0 %22 }
  0x86   :  { %24 = vst [vmem:[#allocation5] sm:$0xff] %v23_v1 }
  0x87   :  { %76 = shalt.err (!%p73_p12)
}
  0x88   :  { %s77_s0 = scalar_lea.hbm %s129_s1, 128 }
  0x89   :  { %p78_p13 = scmp.ne.s32.totalorder %s129_s1, %s77_s0  ;;  %p81_p0 = scmp.lt.u32.totalorder %s77_s0, %s129_s1 }
  0x8b   :  { %p83_p1 = pnand %p81_p0, %p78_p13 }
  0x8d   :  { %86 = shalt.err (!%p83_p1)
}
  0x8e   :  { %34 = dma.vmem_to_hbm [thread:$0]  %s32_s20, 128, %s129_s1, [#allocation4]  }
  0x8f   :  { %89 = dma.done.wait [#allocation4], 128  }
  0x90   :  { %90 = vsyncadd [#allocation4], 4294967168 }
  0x91   :  { %38 = vsyncpa [#allocation3], 1 }
  0x92   :  { %39 = vsyncpa [#allocation4], 1 }

// kernel: tpu_custom_call.1
= control target key start
LH: loop header
LB: loop body
LE: loop exit
PB: predicated region body
PF: predicated region fallthrough
CT: control target
= control target key end

     0   :  { %s4513_s0 = inlined_call_operand.vmem [shape: f32[2,3], index: 0, kind: input, shape index: {}]   ;;  %s4514_s1 = inlined_call_operand.vmem [shape: f32[2,1,4], index: 1, kind: input, shape index: {}]   ;;  %s4515_s2 = inlined_call_operand.vmem [shape: f32[2,4,256], index: 2, kind: input, shape index: {}]   ;;  %s4516_s3 = inlined_call_operand.vmem [shape: bf16[36,36], index: 3, kind: input, shape index: {}]   ;;  %s4517_s4 = inlined_call_operand.vmem [shape: f32[32,4], index: 4, kind: input, shape index: {}]   ;;  %s4518_s5 = inlined_call_operand.vmem [shape: f32[32,1], index: 5, kind: input, shape index: {}]   ;;  %s4519_s6 = inlined_call_operand.vmem [shape: bf16[36,288], index: 6, kind: input, shape index: {}]   ;;  %s4520_s7 = inlined_call_operand.vmem [shape: f32[32,4], index: 7, kind: input, shape index: {}]   ;;  %s4521_s8 = inlined_call_operand.vmem [shape: f32[32,1], index: 8, kind: input, shape index: {}]   ;;  %s4522_s9 = inlined_call_operand.vmem [shape: bf16[36,288], index: 9, kind: input, shape index: {}]   ;;  %s4523_s10 = inlined_call_operand.vmem [shape: f32[32,4], index: 10, kind: input, shape index: {}]   ;;  %s4524_s11 = inlined_call_operand.vmem [shape: f32[32,1], index: 11, kind: input, shape index: {}]   ;;  %s4525_s12 = inlined_call_operand.vmem [shape: bf16[8,288], index: 12, kind: input, shape index: {}]   ;;  %s4526_s13 = inlined_call_operand.vmem [shape: f32[4,4], index: 13, kind: input, shape index: {}]   ;;  %s4527_s14 = inlined_call_operand.vmem [shape: f32[4,1], index: 14, kind: input, shape index: {}]   ;;  %s4528_s15 = inlined_call_operand.hbm [shape: f32[2,4,256], index: 15, kind: output, shape index: {}]  }
   0x1   :  { %4546 = sst [smem:[#allocation14_spill]] %s4514_s1  ;;  %s20_s20 = sshll.u32 %s4513_s0, 4  ;;  %s21_s20 = int_to_ptr.vmem [resolvable:$true] %s20_s20 }
   0x2   :  { %4547 = sst [smem:[#allocation15_spill]] %s4515_s2  ;;  %s3328_s21 = scalar_lea.vmem %s21_s20, 32 }
   0x3   :  { %4548 = sst [smem:[#allocation16_spill]] %s4516_s3  ;;  %p3329_p0 = scmp.ne.s32.totalorder %s21_s20, %s3328_s21 }
   0x4   :  { %4549 = sst [smem:[#allocation17_spill]] %s4517_s4  ;;  %p3333_p1 = scmp.lt.s32.totalorder %s21_s20, %s21_s20 }
   0x5   :  { %4550 = sst [smem:[#allocation18_spill]] %s4518_s5  ;;  %p3334_p2 = scmp.lt.s32.totalorder %s3328_s21, %s3328_s21 }
   0x7   :  { %p3335_p3 = por %p3334_p2, %p3333_p1 }
   0x9   :  { %p3336_p4 = pnand %p3335_p3, %p3329_p0 }
   0xb   :  { %3339 = shalt.err (!%p3336_p4)  }
   0xc   :  { %s3406_s22 = smov [#allocation4]  }
   0xd   :  { %23 = dma.vmem_to_smem %s21_s20, 32, %s3406_s22, [#allocation3] }
   0xe   :  { %3384 = dma.done.wait [#allocation3], 32 }
   0xf   :  { %3385 = vsyncadd [#allocation3], 4294967264 }
  0x10   :  { %25 = sfence }
  0x11   :  { %26 = vsyncpa [#allocation6], 0 }
  0x12   :  { %28 = vsyncpa [#allocation6 + $0x1], 0  ;;  %s3499_s23 = smov 0   ;;  %s3501_s24 = smov 0  }
  0x13   :  { %s3503_s0 = smov 0   ;;  %s3505_s25 = smov 0  }
  0x14 LB: > { %4551 = sst [smem:[#allocation9_spill]] %s3392_s23  ;;  %s3520_s26 = sadd.s32 4294967295, %s3404_s25   ;;  %s3404_s25 = sphi %s3505_s25, %s4571_s25   ;;  %s3400_s0 = sphi %s3503_s0, %s4573_s0   ;;  %s3396_s24 = sphi %s3501_s24, %s4575_s24   ;;  %s3392_s23 = sphi %s3499_s23, %s4574_s23  }
  0x15   : > { %4552 = sst [smem:[#allocation10_spill]] %s3400_s0  ;;  %s3028_s27 = sadd.s32 4294967294, %s3404_s25  }
  0x16   : > { %s3524_s28 = sadd.s32 1, %s3404_s25   ;;  %s345_s29 = sadd.s32 1, %s3400_s0 }
  0x17   : > { %4553 = sst [smem:[#allocation11_spill]] %s3524_s28  ;;  %s342_s30 = ssub.s32 %s3404_s25, %s3524_s28 }
  0x18   : > { %p355_p5 = scmp.ne.s32.totalorder %s3400_s0, %s3396_s24  ;;  %p343_p6 = scmp.eq.s32.totalorder %s342_s30, 0 }
  0x19   : > { %p356_p7 = scmp.eq.s32.totalorder %s3520_s26, 1  ;;  %p361_p8 = scmp.ne.s32.totalorder %s3396_s24, %s3392_s23 }
  0x1a   : > { %p362_p9 = scmp.eq.s32.totalorder %s3028_s27, 1  ;;  %p3031_p12 = scmp.ge.s32.totalorder %s3404_s25, 1 }
  0x1b   : > { %s3535_s16 = scalar_select %p343_p6, %s3400_s0, %s345_s29  }
  0x1c   : > { %p3537_p10 = por %p356_p7, %p355_p5  ;;  %p3541_p11 = por %p362_p9, %p361_p8 }
  0x1d   : > { %4554 = sst [smem:[#allocation12_spill]] %s3535_s16  ;;  %p430_p13 = scmp.lt.s32.totalorder %s3404_s25, 3 }
  0x1e   : > { %s4556_s18 = scalar_select %p3541_p11, 1, 0 }
  0x1f   : > { %p431_p0 = pnand %p3031_p12, %p430_p13 }
  0x20   : > { %4557 = sst [smem:[#allocation13_spill]] %s4556_s18  ;;  %p479_p1 = scmp.lt.s32.totalorder (!%p431_p0), %s3520_s26, 1  ;;  %v3407_v0 = vmov (!%p431_p0), 0   ;;  %v490_v5 = vlaneseq (!%p431_p0)  ;;  %vm576_vm6 = vcmask (!%p431_p0), 1039360   ;;  %vm588_vm7 = vcmask (!%p431_p0), 121856  }
  0x21   : > { %434 = sbr.rel (%p431_p0) target bundleno = 3194 (0xc7a), region = 76  ;;  %793 = vmatprep.mubr.bf16.mxu0 (!%p431_p0), %v3407_v0  ;;  %3201 = vset.pattern.permute.xlu1 (!%p431_p0), %v3407_v0  ;;  %s4558_s2 = sld [smem:[#allocation15_spill]] (!%p431_p0)  ;;  %vm534_vm10 = vcmask (!%p431_p0), 7168   ;;  %vm546_vm11 = vcmask (!%p431_p0), 924672   ;;  %vm620_vm14 = vcmask (!%p431_p0), 130048   ;;  %vm680_vm15 = vcmask (!%p431_p0), 916480  }
  0x22   : > { %3200 = vset.pattern.permute.xlu0 (!%p431_p0), %v3407_v0  ;;  %s4533_s29 = smov (!%p431_p0), 15   ;;  %s4535_s30 = smov (!%p431_p0), 127   ;;  %v491_v6 = vand.u32 (!%p431_p0), 127, %v490_v5  ;;  %v561_v10 = vshrl.u32 (!%p431_p0), %v490_v5, 7 }
  0x23   : > { %s4537_s21 = smov (!%p431_p0), 1   ;;  %s4531_s22 = smov (!%p431_p0), 16  }
  0x24   : > { %v492_v7 = vadd.s32 (!%p431_p0), 128, %v491_v6  ;;  %v497_v8 = vand.u32 (!%p431_p0), 15, %v491_v6  ;;  %v566_v11 = vsub.s32 (!%p431_p0), 4, %v561_v10  ;;  %v562_v12 = vsub.s32 (!%p431_p0), 0, %v561_v10  ;;  %s4559_s3 = sld [smem:[#allocation16_spill]] (!%p431_p0)  ;;  %s4560_s5 = sld [smem:[#allocation18_spill]] (!%p431_p0) }
  0x25   : > { %s4561_s1 = sld [smem:[#allocation14_spill]] (!%p431_p0)  ;;  %s4562_s4 = sld [smem:[#allocation17_spill]] (!%p431_p0) }
  0x26   : > { %v504_v9 = vand.u32 (!%p431_p0), 15, %v492_v7  ;;  %vm519_vm0 = vcmp.ge.s32.totalorder (!%p431_p0), %v497_v8, 15  ;;  %vm517_vm3 = vcmp.lt.s32.totalorder (!%p431_p0), %v497_v8, 1 }
  0x28   : > { %s3551_s19 = scalar_select %p479_p1, %s3520_s26, 1  ;;  %vm520_vm1 = vcmp.ge.s32.totalorder %v504_v9, 15  ;;  %vm518_vm4 = vcmp.lt.s32.totalorder %v504_v9, 1 }
  0x29   : > { %vm600_vm2 = vmpackc.low %vm520_vm1, %vm519_vm0  ;;  %vm754_vm0 = vcmask 1041408   ;;  %vm744_vm1 = vcmask 293888  }
  0x2a   : > { %s3122_s20 = sshll.u32 %s3551_s19, 3  ;;  %v601_v15 = vsel %vm600_vm2, 65537, %v3407_v0  ;;  %vm558_vm5 = vmpackc.low %vm518_vm4, %vm517_vm3  ;;  %vm849_vm2 = vcmask 1043456   ;;  %vm836_vm3 = vcmask 31744   ;;  %vm1398_vm4 = vcmask 261120  }
  0x2b   : > { %s486_s27 = scalar_lea.vmem %s4558_s2, %s3122_s20  ;;  %s4539_s20 = smov 113   ;;  %v3585_v16 = vrot.slane %v601_v15, %v566_v11  ;;  %v3587_v17 = vrot.slane %v601_v15, %v562_v12  ;;  %v559_v20 = vsel %vm558_vm5, 65537, %v3407_v0 }
  0x2c   : > { %v522_v1 = vld [vmem:[%s486_s27] sm:$0xff]  ;;  %v3592_v21 = vrot.slane %v559_v20, %v566_v11  ;;  %v3594_v22 = vrot.slane %v559_v20, %v562_v12  ;;  %s4529_s27 = smov 112   ;;  %s3702_s2 = sshll.u32 %s3520_s26, 7 }
  0x2d   : > { %v3558_v2 = vpack.c.bf16 %v522_v1, %v522_v1  ;;  %v524_v3 = vcombine.high %v522_v1, %v522_v1  ;;  %vm611_vm8 = vcmp.ne.s16.totalorder %v3585_v16, 0  ;;  %vm610_vm9 = vcmp.ne.s16.totalorder %v3587_v17, 0  ;;  %s4563_s26 = smov 113   ;;  %s2384_s28 = sadd.s32 2, %s3702_s2  ;;  %v2930_v16 = vld [vmem:[%s4527_s14] sm:$0xf] }
  0x2e   : > { %vm569_vm12 = vcmp.ne.s16.totalorder %v3592_v21, 0  ;;  %vm568_vm13 = vcmp.ne.s16.totalorder %v3594_v22, 0  ;;  %s2385_s16 = sld [smem:[#allocation4 + %s2384_s28]]  ;;  %v4412_v17 = vld [vmem:[%s4525_s12] sm:$0xff]  ;;  %s4471_s0 = scalar_lea.hbm %s4528_s15, %s3702_s2 }
  0x2f   : > { %586 = vrot.lane.b32.xlu1 %v3558_v2, %s4533_s29  ;;  %668 = vst [vmem:[#allocation2 + $0x10] sm:$0x3] %v3558_v2  ;;  %572 = vrot.lane.b32.xlu0 %v3558_v2, %s4535_s30  ;;  %v3565_v4 = vpack.c.bf16 %v524_v3, %v524_v3 }
  0x31   : > { %669 = vst [vmem:[#allocation2 + $0x18] sm:$0x3] %v3565_v4 }
  0x33   : > { %532 = vrot.lane.b32.xlu1 %v3558_v2, %s4537_s21  ;;  %574 = vrot.lane.b32.xlu0 %v3565_v4, %s4535_s30  ;;  %s4564_s30 = smov 1  }
  0x37   : > { %584 = vrot.lane.b32.xlu1 %v3565_v4, %s4533_s29  ;;  %529 = vrot.lane.b32.xlu0 %v3565_v4, %s4537_s21  ;;  %s3667_s29 = scalar_lea.vmem %s4561_s1, %s3551_s19  ;;  %s4565_s19 = smov 127  }
  0x38   : > { %s4566_s21 = smov 15  }
  0x3b   : > { %544 = vrot.lane.b32.xlu1 %v3565_v4, %s4539_s20  ;;  %542 = vrot.lane.b32.xlu0 %v3558_v2, %s4539_s20  ;;  %s4567_s20 = smov 16  }
  0x3f   : > { %632 = vrot.lane.b32.xlu1 %v3558_v2, %s4531_s22  ;;  %630 = vrot.lane.b32.xlu0 %v3565_v4, %s4531_s22 }
  0xa1   : > { %v587_v13 = vpop.permute.xlu1 %586  ;;  %v573_v14 = vpop.permute.xlu0 %572 }
  0xa5   : > { %v533_v18 = vpop.permute.xlu1 %532  ;;  %v575_v19 = vpop.permute.xlu0 %574 }
  0xa6   : > { %v577_v25 = vsel %vm576_vm6, %v573_v14, %v575_v19  ;;  %v582_v26 = vsel %vm576_vm6, %v575_v19, %v573_v14 }
  0xa9   : > { %v585_v23 = vpop.permute.xlu1 %584  ;;  %v530_v24 = vpop.permute.xlu0 %529 }
  0xaa   : > { %v589_v27 = vsel %vm588_vm7, %v587_v13, %v585_v23  ;;  %v594_v28 = vsel %vm588_vm7, %v585_v23, %v587_v13  ;;  %v535_v35 = vsel %vm534_vm10, %v533_v18, %v530_v24  ;;  %v540_v36 = vsel %vm534_vm10, %v530_v24, %v533_v18  ;;  %v3203_v23 = vld [vmem:[%s4559_s3] sm:$0xff]   ;;  %v3204_v24 = vld [vmem:[%s4559_s3 + $0x8] sm:$0xff]  }
  0xab   : > { %v613_v29 = vsel %vm611_vm8, %v589_v27, %v582_v26  ;;  %v612_v30 = vsel %vm610_vm9, %v594_v28, %v577_v25  ;;  %v3205_v25 = vld [vmem:[%s4559_s3 + $0x10] ss:$0 sps:$4 sm:$0x33]   ;;  %v3414_v26 = vmov 0.0   ;;  %v953_v27 = vld [vmem:[%s4560_s5] sm:$0xff]  ;;  %v954_v28 = vld [vmem:[%s4560_s5 + $0x8] sm:$0xff] }
  0xac   : > { %646 = vrot.lane.b32.xlu0 %v613_v29, %s4531_s22  ;;  %v671_v31 = vrot.slane %v613_v29, 6  ;;  %649 = vrot.lane.b32.xlu1 %v612_v30, %s4531_s22  ;;  %v670_v32 = vrot.slane %v612_v30, 6  ;;  %s986_s3 = sld [smem:[#allocation4 + %s3702_s2]] }
  0xad   : > { %v545_v33 = vpop.permute.xlu1 %544  ;;  %v543_v34 = vpop.permute.xlu0 %542  ;;  %920 = vmatprep.mubr.f32.mxu1 %v3414_v26 }
  0xae   : > { %675 = vst [vmem:[#allocation2 + $0x18] sm:$0xc] %v671_v31  ;;  %674 = vst [vmem:[#allocation2 + $0x10] sm:$0xc] %v670_v32  ;;  %v547_v37 = vsel %vm546_vm11, %v543_v34, %v545_v33  ;;  %v552_v38 = vsel %vm546_vm11, %v545_v33, %v543_v34 }
  0xaf   : > { %v571_v39 = vsel %vm569_vm12, %v552_v38, %v535_v35  ;;  %v570_v40 = vsel %vm568_vm13, %v547_v37, %v540_v36 }
  0xb0   : > { %615 = vrot.lane.b32.xlu0 %v571_v39, %s4531_s22  ;;  %v663_v41 = vrot.slane %v571_v39, 2  ;;  %618 = vrot.lane.b32.xlu1 %v570_v40, %s4531_s22  ;;  %v662_v42 = vrot.slane %v570_v40, 2  ;;  %s4568_s22 = smov 112  }
  0xb1   : > { %v633_v43 = vpop.permute.xlu1 %632  ;;  %v631_v44 = vpop.permute.xlu0 %630 }
  0xb2   : > { %667 = vst [vmem:[#allocation2 + $0x8] sm:$0xc0] %v663_v41  ;;  %666 = vst [vmem:[#allocation2] sm:$0xc0] %v662_v42  ;;  %v634_v45 = vsel %vm620_vm14, %v633_v43, %v631_v44  ;;  %v637_v46 = vsel %vm620_vm14, %v631_v44, %v633_v43  ;;  %v823_v44 = vld [vmem:[%s4562_s4 + $0x8] sm:$0xff] }
  0xb3   : > { %v639_v47 = vrot.slane %v637_v46, 6  ;;  %v640_v48 = vrot.slane %v634_v45, 6 }
  0xb4   : > { %676 = vrot.lane.b32.xlu0 %v570_v40, %s4529_s27  ;;  %678 = vrot.lane.b32.xlu1 %v571_v39, %s4529_s27  ;;  %v3674_v39 = vld [vmem:[%s3667_s29] ss:$0 sm:$0xff] }
  0xb5   : > { %643 = vst [vmem:[#allocation2] sm:$0xc] %v639_v47  ;;  %644 = vst [vmem:[#allocation2 + $0x8] sm:$0xc] %v640_v48  ;;  %v822_v40 = vld [vmem:[%s4562_s4] sm:$0xff]  ;;  %v833_v47 = vmul.f32 %v3674_v39, %v823_v44  ;;  %v824_v48 = vld [vmem:[%s4562_s4 + $0x10] sm:$0xff] }
  0xb6   : > { %v832_v42 = vmul.f32 %v3674_v39, %v822_v40 }
  0xb8   : > { %693 = vrot.lane.b32.xlu0 %v3558_v2, %s4529_s27  ;;  %695 = vrot.lane.b32.xlu1 %v3565_v4, %s4529_s27 }
  0xbc   : > { %708 = vrot.lane.b32.xlu0 %v612_v30, %s4529_s27  ;;  %710 = vrot.lane.b32.xlu1 %v613_v29, %s4529_s27  ;;  %v956_v29 = vld [vmem:[%s4560_s5 + $0x18] sm:$0xff]  ;;  %v955_v30 = vld [vmem:[%s4560_s5 + $0x10] sm:$0xff]  ;;  %s1685_s5 = sadd.s32 1, %s3702_s2 }
  0xbd   : > { %s1686_s23 = sld [smem:[#allocation4 + %s1685_s5]] }
  0xc0   : > { %959 = vperm.xlu0 %3200, %v953_v27   ;;  %964 = vperm.xlu1 %3201, %v954_v28  }
  0xc4   : > { %974 = vperm.xlu0 %3200, %v956_v29   ;;  %969 = vperm.xlu1 %3201, %v955_v30  }
 0x11e   : > { %v650_v49 = vpop.permute.xlu1 %649  ;;  %v647_v50 = vpop.permute.xlu0 %646 }
 0x11f   : > { %v651_v51 = vsel %vm620_vm14, %v650_v49, %v647_v50  ;;  %v654_v52 = vsel %vm620_vm14, %v647_v50, %v650_v49  ;;  %v834_v49 = vmul.f32 %v3674_v39, %v824_v48  ;;  %v825_v50 = vld [vmem:[%s4562_s4 + $0x18] sm:$0xff] }
 0x120   : > { %v656_v53 = vrot.slane %v654_v52, 4  ;;  %v657_v54 = vrot.slane %v651_v51, 4  ;;  %v835_v51 = vmul.f32 %v3674_v39, %v825_v50 }
 0x122   : > { %660 = vst [vmem:[#allocation2] sm:$0x30] %v656_v53  ;;  %661 = vst [vmem:[#allocation2 + $0x8] sm:$0x30] %v657_v54  ;;  %v619_v55 = vpop.permute.xlu1 %618  ;;  %v616_v56 = vpop.permute.xlu0 %615 }
 0x123   : > { %v621_v57 = vsel %vm620_vm14, %v619_v55, %v616_v56  ;;  %v626_v58 = vsel %vm620_vm14, %v616_v56, %v619_v55 }
 0x124   : > { %628 = vst [vmem:[#allocation2] sm:$0x3] %v626_v58  ;;  %629 = vst [vmem:[#allocation2 + $0x8] sm:$0x3] %v621_v57  ;;  %v987_v57 = vstv %s986_s3  ;;  %s476_s3 = sand.u32 1, %s3396_s24  }
 0x125   : > { %s3032_s1 = sshll.u32 %s476_s3, 3  ;;  %s2946_s28 = scalar_lea.sflag [#allocation6], %s476_s3 }
 0x126   : > { %v679_v59 = vpop.permute.xlu1 %678  ;;  %v677_v60 = vpop.permute.xlu0 %676  ;;  %s478_s4 = scalar_lea.vmem [#allocation5], %s3032_s1 }
 0x127   : > { %v681_v61 = vsel %vm680_vm15, %v677_v60, %v679_v59  ;;  %v685_v62 = vsel %vm680_vm15, %v679_v59, %v677_v60 }
 0x128   : > { %v687_v63 = vrot.slane %v681_v61, 4  ;;  %v688_v1 = vrot.slane %v685_v62, 4 }
 0x12a   : > { %691 = vst [vmem:[#allocation2 + $0x10] sm:$0x30] %v687_v63  ;;  %692 = vst [vmem:[#allocation2 + $0x18] sm:$0x30] %v688_v1  ;;  %v696_v2 = vpop.permute.xlu1 %695  ;;  %v694_v3 = vpop.permute.xlu0 %693 }
 0x12b   : > { %v697_v4 = vsel %vm680_vm15, %v694_v3, %v696_v2  ;;  %v700_v5 = vsel %vm680_vm15, %v696_v2, %v694_v3  ;;  %v726_v6 = vld [vmem:[#allocation2 + $0x8] sm:$0xff]  ;;  %v725_v7 = vld [vmem:[#allocation2] sm:$0xff] }
 0x12c   : > { %v702_v8 = vrot.slane %v697_v4, 2  ;;  %v703_v9 = vrot.slane %v700_v5, 2  ;;  %761 = vmatprep.subr.bf16.mxu0 %v726_v6 }
 0x12d   : > { %762 = vmatpush1.bf16.msra.mxu0 %v725_v7 }
 0x12e   : > { %706 = vst [vmem:[#allocation2 + $0x10] sm:$0xc0] %v702_v8  ;;  %707 = vst [vmem:[#allocation2 + $0x18] sm:$0xc0] %v703_v9  ;;  %v711_v10 = vpop.permute.xlu1 %710  ;;  %v709_v11 = vpop.permute.xlu0 %708 }
 0x12f   : > { %v712_v12 = vsel %vm680_vm15, %v709_v11, %v711_v10  ;;  %v716_v13 = vsel %vm680_vm15, %v711_v10, %v709_v11 }
 0x130   : > { %718 = vst [vmem:[#allocation2 + $0x20] sm:$0x3] %v712_v12  ;;  %719 = vst [vmem:[#allocation2 + $0x28] sm:$0x3] %v716_v13 }
 0x135   : > { %v728_v14 = vld [vmem:[#allocation2 + $0x18] sm:$0xff]  ;;  %v727_v15 = vld [vmem:[#allocation2 + $0x10] sm:$0xff] }
 0x136   : > { %763 = vmatprep.subr.bf16.mxu0 %v728_v14 }
 0x137   : > { %764 = vmatpush1.bf16.msra.mxu0 %v727_v15  ;;  %v730_v18 = vld [vmem:[#allocation2 + $0x28] sm:$0x3]  ;;  %v729_v19 = vld [vmem:[#allocation2 + $0x20] sm:$0x3] }
 0x138   : > { %3038 = vmatprep.subr.msk.bf16.mxu0 %vm754_vm0, %v730_v18  ;;  %v756_v20 = vsel %vm754_vm0, %v729_v19, 0 }
 0x13b   : > { %766 = vmatpush1.bf16.msra.mxu0 %v756_v20 }
 0x13e   : > { %3039 = vmatmul.mubr.msk.bf16.vlgmr.msra.gmra.mrb[0].mxu0 %vm744_vm1, %v3203_v23 }
 0x13f   : > { %803 = vmatprep.mubr.bf16.mxu0 %v3407_v0  ;;  %v960_v53 = vpop.permute.xlu0 %959  ;;  %v965_v59 = vpop.permute.xlu1 %964 }
 0x143   : > { %v970_v13 = vpop.permute.xlu1 %969  ;;  %v975_v28 = vpop.permute.xlu0 %974 }
 0x146   : > { %3040 = vmatmul.mubr.msk.bf16.gmra.mrb[4].mxu0 %vm744_vm1, %v3204_v24 }
 0x147   : > { %813 = vmatprep.mubr.bf16.mxu0 %v3407_v0 }
 0x14e   : > { %3041 = vmatmul.mubr.msk.bf16.gmra.mrb[8].mxu0 %vm744_vm1, %v3205_v25 }
 0x14f   : > { %1620 = vmatprep.mubr.f32.mxu0 %v3414_v26 }
 0x211   : > { %v795_v31 = vpop.f32.mrb[0].mxu0 }
 0x212   : > { %v797_v32 = vpop.f32.mrb[1].mxu0 }
 0x213   : > { %v799_v33 = vpop.f32.mrb[2].mxu0 }
 0x214   : > { %v801_v34 = vpop.f32.mrb[3].mxu0 }
 0x219   : > { %v805_v35 = vpop.f32.mrb[4].mxu0 }
 0x21a   : > { %v807_v36 = vpop.f32.mrb[5].mxu0 }
 0x21b   : > { %v3669_v37 = vpop.f32.mrb[6].mxu0 }
 0x21c   : > { %v3671_v38 = vpop.f32.mrb[7].mxu0 }
 0x221   : > { %v815_v41 = vpop.f32.mrb[8].mxu0 }
 0x222   : > { %v817_v43 = vpop.f32.mrb[9].mxu0 }
 0x223   : > { %v819_v45 = vpop.f32.mrb[10].mxu0  ;;  %3043 = vmatprep.subr.msk.mxu1 %vm849_vm2, %v817_v43 }
 0x224   : > { %v820_v46 = vpop.f32.mrb[11].mxu0  ;;  %3044 = vmatpush1.msk.msra.mxu1 %vm849_vm2, %v815_v41 }
 0x225   : > { %3045 = vmatmul.mubr.msk.f32.vlgmr.msra.gmra.mrb[0].mxu1 %vm836_vm3, %v832_v42 }
 0x226   : > { %926 = vmatprep.mubr.f32.mxu1 %v3414_v26 }
 0x229   : > { %3046 = vmatmul.mubr.msk.f32.gmra.mrb[2].mxu1 %vm836_vm3, %v833_v47 }
 0x22a   : > { %932 = vmatprep.mubr.f32.mxu1 %v3414_v26 }
 0x22d   : > { %3047 = vmatmul.mubr.msk.f32.gmra.mrb[4].mxu1 %vm836_vm3, %v834_v49 }
 0x22e   : > { %938 = vmatprep.mubr.f32.mxu1 %v3414_v26 }
 0x231   : > { %3048 = vmatmul.mubr.msk.f32.gmra.mrb[6].mxu1 %vm836_vm3, %v835_v51 }
 0x2f8   : > { %v922_v52 = vpop.f32.mrb[0].mxu1 }
 0x2f9   : > { %v945_v54 = vadd.f32 %v922_v52, %v795_v31  ;;  %v924_v55 = vpop.f32.mrb[1].mxu1 }
 0x2fa   : > { %v946_v56 = vadd.f32 %v924_v55, %v797_v32 }
 0x2fb   : > { %v3705_v58 = vadd.f32 %v960_v53, %v945_v54 }
 0x2fc   : > { %v3707_v60 = vadd.f32 %v960_v53, %v946_v56  ;;  %v928_v61 = vpop.f32.mrb[2].mxu1 }
 0x2fd   : > { %v988_v62 = vmul.f32 %v987_v57, %v3705_v58  ;;  %v947_v63 = vadd.f32 %v928_v61, %v799_v33  ;;  %v930_v1 = vpop.f32.mrb[3].mxu1 }
 0x2fe   : > { %v989_v2 = vmul.f32 %v987_v57, %v3707_v60  ;;  %v948_v3 = vadd.f32 %v930_v1, %v801_v34 }
 0x2ff   : > { %v3050_v4 = vmul.f32 -1.442695, %v988_v62  ;;  %v3711_v5 = vadd.f32 %v965_v59, %v947_v63 }
 0x300   : > { %v3051_v6 = vmul.f32 -1.442695, %v989_v2  ;;  %v3713_v7 = vadd.f32 %v965_v59, %v948_v3  ;;  %v934_v8 = vpop.f32.mrb[4].mxu1 }
 0x301   : > { %3231 = vpow2.f32 %v3050_v4  ;;  %v990_v9 = vmul.f32 %v987_v57, %v3711_v5  ;;  %v949_v10 = vadd.f32 %v934_v8, %v805_v35  ;;  %v936_v11 = vpop.f32.mrb[5].mxu1 }
 0x302   : > { %3233 = vpow2.f32 %v3051_v6  ;;  %v991_v12 = vmul.f32 %v987_v57, %v3713_v7  ;;  %v950_v14 = vadd.f32 %v936_v11, %v807_v36 }
 0x303   : > { %v3052_v15 = vmul.f32 -1.442695, %v990_v9  ;;  %v3717_v18 = vadd.f32 %v970_v13, %v949_v10 }
 0x304   : > { %v3053_v19 = vmul.f32 -1.442695, %v991_v12  ;;  %v3719_v20 = vadd.f32 %v970_v13, %v950_v14  ;;  %v940_v23 = vpop.f32.mrb[6].mxu1 }
 0x305   : > { %3235 = vpow2.f32 %v3052_v15  ;;  %v992_v24 = vmul.f32 %v987_v57, %v3717_v18  ;;  %v951_v25 = vadd.f32 %v940_v23, %v3669_v37  ;;  %v942_v27 = vpop.f32.mrb[7].mxu1 }
 0x306   : > { %3237 = vpow2.f32 %v3053_v19  ;;  %v993_v29 = vmul.f32 %v987_v57, %v3719_v20  ;;  %v952_v30 = vadd.f32 %v942_v27, %v3671_v38 }
 0x307   : > { %v3054_v31 = vmul.f32 -1.442695, %v992_v24  ;;  %v983_v32 = vadd.f32 %v975_v28, %v951_v25 }
 0x308   : > { %v3055_v33 = vmul.f32 -1.442695, %v993_v29  ;;  %v984_v34 = vadd.f32 %v975_v28, %v952_v30 }
 0x309   : > { %3239 = vpow2.f32 %v3054_v31  ;;  %v994_v35 = vmul.f32 %v987_v57, %v983_v32 }
 0x30a   : > { %3241 = vpow2.f32 %v3055_v33  ;;  %v995_v36 = vmul.f32 %v987_v57, %v984_v34 }
 0x30b   : > { %v3232_v40 = vpop.eup %3231  ;;  %v3056_v41 = vmul.f32 -1.442695, %v994_v35 }
 0x30c   : > { %v3234_v42 = vpop.eup %3233  ;;  %v1020_v43 = vadd.f32 1.0, %v3232_v40  ;;  %v3057_v37 = vmul.f32 -1.442695, %v995_v36 }
 0x30d   : > { %v1021_v44 = vadd.f32 1.0, %v3234_v42  ;;  %3243 = vpow2.f32 %v3056_v41 }
 0x30e   : > { %3245 = vrcp.f32 %v1020_v43 }
 0x30f   : > { %v3236_v45 = vpop.eup %3235  ;;  %3247 = vpow2.f32 %v3057_v37 }
 0x310   : > { %v3238_v46 = vpop.eup %3237  ;;  %v1022_v47 = vadd.f32 1.0, %v3236_v45  ;;  %3249 = vrcp.f32 %v1021_v44 }
 0x311   : > { %v1023_v38 = vadd.f32 1.0, %v3238_v46 }
 0x312   : > { %3251 = vrcp.f32 %v1022_v47 }
 0x313   : > { %v3240_v48 = vpop.eup %3239  ;;  %3253 = vrcp.f32 %v1023_v38 }
 0x314   : > { %v3242_v49 = vpop.eup %3241  ;;  %v1024_v50 = vadd.f32 1.0, %v3240_v48 }
 0x315   : > { %v1025_v52 = vadd.f32 1.0, %v3242_v49 }
 0x316   : > { %3255 = vrcp.f32 %v1024_v50 }
 0x317   : > { %v3244_v51 = vpop.eup %3243 }
 0x318   : > { %v1026_v53 = vadd.f32 1.0, %v3244_v51  ;;  %v3246_v54 = vpop.eup %3245 }
 0x319   : > { %v3248_v55 = vpop.eup %3247  ;;  %v1044_v62 = vmul.f32 %v3246_v54, %v3705_v58 }
 0x31a   : > { %3257 = vrcp.f32 %v1026_v53  ;;  %v3250_v56 = vpop.eup %3249  ;;  %v1027_v57 = vadd.f32 1.0, %v3248_v55 }
 0x31b   : > { %3259 = vrcp.f32 %v1025_v52  ;;  %v1045_v1 = vmul.f32 %v3250_v56, %v3707_v60 }
 0x31c   : > { %v3252_v59 = vpop.eup %3251  ;;  %3261 = vrcp.f32 %v1027_v57 }
 0x31d   : > { %v3254_v61 = vpop.eup %3253  ;;  %v1046_v63 = vmul.f32 %v3252_v59, %v3711_v5 }
 0x31e   : > { %v1047_v2 = vmul.f32 %v3254_v61, %v3713_v7  ;;  %v1654_v61 = vld [vmem:[%s4521_s8 + $0x8] sm:$0xff] }
 0x31f   : > { %v3729_v3 = vpack.c.bf16 %v1046_v63, %v1044_v62  ;;  %v1653_v62 = vld [vmem:[%s4521_s8] sm:$0xff]  ;;  %v1656_v63 = vld [vmem:[%s4521_s8 + $0x18] sm:$0xff] }
 0x320   : > { %v3731_v4 = vpack.c.bf16 %v1047_v2, %v1045_v1  ;;  %v3256_v6 = vpop.eup %3255  ;;  %v1655_v1 = vld [vmem:[%s4521_s8 + $0x10] sm:$0xff] }
 0x321   : > { %1080 = vrot.lane.b32.xlu1 %v3729_v3, %s4563_s26  ;;  %1064 = vrot.lane.b32.xlu0 %v3729_v3, %s4564_s30  ;;  %v1048_v5 = vmul.f32 %v3256_v6, %v3717_v18  ;;  %v3208_v2 = vld [vmem:[%s4519_s6 + $0x4] ss:$12 sps:$4 sm:$0xff]  }
 0x322   : > { %1440 = vmatprep.mubr.bf16.mxu1 %v3208_v2  ;;  %v3216_v2 = vld [vmem:[%s4519_s6 + $0x38] ss:$0 sps:$4 sm:$0x33]  }
 0x324   : > { %v3258_v8 = vpop.eup %3257 }
 0x325   : > { %v3260_v58 = vpop.eup %3259  ;;  %v1050_v9 = vmul.f32 %v3258_v8, %v983_v32  ;;  %1082 = vrot.lane.b32.xlu0 %v3731_v4, %s4563_s26  ;;  %1058 = vrot.lane.b32.xlu1 %v3731_v4, %s4564_s30 }
 0x326   : > { %v3262_v60 = vpop.eup %3261  ;;  %v1049_v10 = vmul.f32 %v3260_v58, %v3719_v20 }
 0x327   : > { %v3742_v7 = vpack.c.bf16 %v1050_v9, %v1048_v5  ;;  %v1051_v11 = vmul.f32 %v3262_v60, %v984_v34 }
 0x329   : > { %1084 = vrot.lane.b32.xlu1 %v3742_v7, %s4563_s26  ;;  %1066 = vrot.lane.b32.xlu0 %v3742_v7, %s4564_s30  ;;  %v3749_v12 = vpack.c.bf16 %v1051_v11, %v1049_v10 }
 0x32d   : > { %1086 = vrot.lane.b32.xlu0 %v3749_v12, %s4563_s26  ;;  %1060 = vrot.lane.b32.xlu1 %v3749_v12, %s4564_s30 }
 0x331   : > { %1106 = vrot.lane.b32.xlu0 %v3731_v4, %s4565_s19  ;;  %1104 = vrot.lane.b32.xlu1 %v3729_v3, %s4565_s19 }
 0x335   : > { %1128 = vrot.lane.b32.xlu0 %v3729_v3, %s4566_s21  ;;  %1124 = vrot.lane.b32.xlu1 %v3731_v4, %s4566_s21 }
 0x339   : > { %1110 = vrot.lane.b32.xlu0 %v3749_v12, %s4565_s19  ;;  %1108 = vrot.lane.b32.xlu1 %v3742_v7, %s4565_s19 }
 0x33d   : > { %1130 = vrot.lane.b32.xlu0 %v3742_v7, %s4566_s21  ;;  %1126 = vrot.lane.b32.xlu1 %v3749_v12, %s4566_s21 }
 0x393   : > { %v1081_v13 = vpop.permute.xlu1 %1080  ;;  %v1065_v14 = vpop.permute.xlu0 %1064 }
 0x397   : > { %v1083_v15 = vpop.permute.xlu0 %1082  ;;  %v1059_v18 = vpop.permute.xlu1 %1058 }
 0x398   : > { %v1088_v19 = vsel %vm546_vm11, %v1081_v13, %v1083_v15  ;;  %v1094_v20 = vsel %vm546_vm11, %v1083_v15, %v1081_v13  ;;  %v1068_v23 = vsel %vm534_vm10, %v1065_v14, %v1059_v18  ;;  %v1074_v24 = vsel %vm534_vm10, %v1059_v18, %v1065_v14 }
 0x399   : > { %v3777_v25 = vsel %vm568_vm13, %v1088_v19, %v1074_v24  ;;  %v3781_v27 = vsel %vm569_vm12, %v1094_v20, %v1068_v23 }
 0x39a   : > { %1156 = vrot.lane.b32.xlu0 %v3777_v25, %s4567_s20  ;;  %1150 = vrot.lane.b32.xlu1 %v3781_v27, %s4567_s20 }
 0x39b   : > { %v1085_v28 = vpop.permute.xlu1 %1084  ;;  %v1067_v29 = vpop.permute.xlu0 %1066 }
 0x39f   : > { %v1087_v30 = vpop.permute.xlu0 %1086  ;;  %v1061_v31 = vpop.permute.xlu1 %1060 }
 0x3a0   : > { %v1089_v32 = vsel %vm546_vm11, %v1085_v28, %v1087_v30  ;;  %v1098_v33 = vsel %vm546_vm11, %v1087_v30, %v1085_v28  ;;  %v1069_v34 = vsel %vm534_vm10, %v1067_v29, %v1061_v31  ;;  %v1078_v35 = vsel %vm534_vm10, %v1061_v31, %v1067_v29 }
 0x3a1   : > { %v3793_v36 = vsel %vm568_vm13, %v1089_v32, %v1078_v35  ;;  %v3797_v40 = vsel %vm569_vm12, %v1098_v33, %v1069_v34 }
 0x3a2   : > { %1158 = vrot.lane.b32.xlu0 %v3793_v36, %s4567_s20  ;;  %1152 = vrot.lane.b32.xlu1 %v3797_v40, %s4567_s20 }
 0x3a3   : > { %v1107_v41 = vpop.permute.xlu0 %1106  ;;  %v1105_v42 = vpop.permute.xlu1 %1104 }
 0x3a4   : > { %v1112_v38 = vsel %vm576_vm6, %v1105_v42, %v1107_v41  ;;  %v1118_v48 = vsel %vm576_vm6, %v1107_v41, %v1105_v42 }
 0x3a6   : > { %1180 = vrot.lane.b32.xlu0 %v3729_v3, %s4567_s20  ;;  %1176 = vrot.lane.b32.xlu1 %v3731_v4, %s4567_s20 }
 0x3a7   : > { %v1129_v43 = vpop.permute.xlu0 %1128  ;;  %v1125_v37 = vpop.permute.xlu1 %1124 }
 0x3a8   : > { %v1132_v44 = vsel %vm588_vm7, %v1129_v43, %v1125_v37  ;;  %v1138_v45 = vsel %vm588_vm7, %v1125_v37, %v1129_v43 }
 0x3a9   : > { %v3817_v49 = vsel %vm610_vm9, %v1138_v45, %v1112_v38  ;;  %v3821_v50 = vsel %vm611_vm8, %v1132_v44, %v1118_v48 }
 0x3aa   : > { %1182 = vrot.lane.b32.xlu0 %v3742_v7, %s4567_s20  ;;  %1178 = vrot.lane.b32.xlu1 %v3749_v12, %s4567_s20 }
 0x3ab   : > { %v1111_v46 = vpop.permute.xlu0 %1110  ;;  %v1109_v47 = vpop.permute.xlu1 %1108 }
 0x3ac   : > { %v1113_v53 = vsel %vm576_vm6, %v1109_v47, %v1111_v46  ;;  %v1122_v54 = vsel %vm576_vm6, %v1111_v46, %v1109_v47 }
 0x3ae   : > { %1208 = vrot.lane.b32.xlu0 %v3817_v49, %s4567_s20  ;;  %1202 = vrot.lane.b32.xlu1 %v3821_v50, %s4567_s20 }
 0x3af   : > { %v1131_v51 = vpop.permute.xlu0 %1130  ;;  %v1127_v52 = vpop.permute.xlu1 %1126 }
 0x3b0   : > { %v1133_v55 = vsel %vm588_vm7, %v1131_v51, %v1127_v52  ;;  %v1142_v56 = vsel %vm588_vm7, %v1127_v52, %v1131_v51  ;;  %v3209_v51 = vld [vmem:[%s4519_s6 + $0x1c] ss:$12 sps:$4 sm:$0xff]  }
 0x3b1   : > { %v3833_v57 = vsel %vm610_vm9, %v1142_v56, %v1113_v53  ;;  %v3837_v59 = vsel %vm611_vm8, %v1133_v55, %v1122_v54  ;;  %v1320_v56 = vld [vmem:[%s4519_s6 + $0x30] sm:$0x33] }
 0x3b2   : > { %1210 = vrot.lane.b32.xlu0 %v3833_v57, %s4567_s20  ;;  %1204 = vrot.lane.b32.xlu1 %v3837_v59, %s4567_s20 }
 0x3b6   : > { %1242 = vrot.lane.b32.xlu0 %v3781_v27, %s4568_s22  ;;  %1240 = vrot.lane.b32.xlu1 %v3777_v25, %s4568_s22 }
 0x3ba   : > { %1246 = vrot.lane.b32.xlu0 %v3797_v40, %s4568_s22  ;;  %1244 = vrot.lane.b32.xlu1 %v3793_v36, %s4568_s22 }
 0x3be   : > { %1266 = vrot.lane.b32.xlu0 %v3731_v4, %s4568_s22  ;;  %1264 = vrot.lane.b32.xlu1 %v3729_v3, %s4568_s22 }
 0x3c2   : > { %1270 = vrot.lane.b32.xlu0 %v3749_v12, %s4568_s22  ;;  %1268 = vrot.lane.b32.xlu1 %v3742_v7, %s4568_s22 }
 0x3c6   : > { %1290 = vrot.lane.b32.xlu0 %v3821_v50, %s4568_s22  ;;  %1288 = vrot.lane.b32.xlu1 %v3817_v49, %s4568_s22 }
 0x3ca   : > { %1294 = vrot.lane.b32.xlu0 %v3837_v59, %s4568_s22  ;;  %1292 = vrot.lane.b32.xlu1 %v3833_v57, %s4568_s22 }
 0x3ce   : > { %1664 = vperm.xlu0 %3200, %v1654_v61   ;;  %1659 = vperm.xlu1 %3201, %v1653_v62   ;;  %v3065_v61 = vcombine.high %v1320_v56, %v1320_v56  ;;  %v3064_v62 = vcombine.low %v1320_v56, %v1320_v56 }
 0x3d2   : > { %1674 = vperm.xlu0 %3200, %v1656_v63   ;;  %1669 = vperm.xlu1 %3201, %v1655_v1   ;;  %v3214_v63 = vld [vmem:[%s4519_s6 + $0x8] ss:$12 sps:$4 sm:$0xff]   ;;  %v3215_v1 = vld [vmem:[%s4519_s6 + $0x20] ss:$12 sps:$4 sm:$0xff]  }
 0x40c   : > { %v1157_v6 = vpop.permute.xlu0 %1156  ;;  %v1151_v8 = vpop.permute.xlu1 %1150 }
 0x40d   : > { %v1160_v58 = vsel %vm620_vm14, %v1157_v6, %v1151_v8  ;;  %v1166_v5 = vsel %vm620_vm14, %v1151_v8, %v1157_v6 }
 0x40e   : > { %1408 = vmatprep.subr.bf16.mxu1 %v1160_v58 }
 0x40f   : > { %1409 = vmatpush1.bf16.msra.mxu1 %v1166_v5 }
 0x414   : > { %v1159_v9 = vpop.permute.xlu0 %1158  ;;  %v1153_v60 = vpop.permute.xlu1 %1152 }
 0x415   : > { %v1161_v10 = vsel %vm620_vm14, %v1159_v9, %v1153_v60  ;;  %v1170_v11 = vsel %vm620_vm14, %v1153_v60, %v1159_v9 }
 0x416   : > { %1410 = vmatprep.subr.bf16.mxu1 %v1161_v10 }
 0x417   : > { %1411 = vmatpush1.bf16.msra.mxu1 %v1170_v11 }
 0x418   : > { %v1181_v13 = vpop.permute.xlu0 %1180  ;;  %v1177_v14 = vpop.permute.xlu1 %1176 }
 0x419   : > { %v1184_v15 = vsel %vm620_vm14, %v1181_v13, %v1177_v14  ;;  %v1190_v18 = vsel %vm620_vm14, %v1177_v14, %v1181_v13  ;;  %v1530_v13 = vld [vmem:[%s4520_s7] sm:$0xff] }
 0x41a   : > { %1412 = vmatprep.subr.bf16.mxu1 %v1184_v15  ;;  %v1534_v15 = vmul.f32 %v3674_v39, %v1530_v13 }
 0x41b   : > { %1413 = vmatpush1.bf16.msra.mxu1 %v1190_v18 }
 0x41c   : > { %v1183_v19 = vpop.permute.xlu0 %1182  ;;  %v1179_v20 = vpop.permute.xlu1 %1178 }
 0x41d   : > { %v1185_v23 = vsel %vm620_vm14, %v1183_v19, %v1179_v20  ;;  %v1194_v24 = vsel %vm620_vm14, %v1179_v20, %v1183_v19  ;;  %v1531_v19 = vld [vmem:[%s4520_s7 + $0x8] sm:$0xff] }
 0x41e   : > { %1414 = vmatprep.subr.bf16.mxu1 %v1185_v23 }
 0x41f   : > { %1415 = vmatpush1.bf16.msra.mxu1 %v1194_v24  ;;  %v1535_v24 = vmul.f32 %v3674_v39, %v1531_v19 }
 0x420   : > { %v1209_v28 = vpop.permute.xlu0 %1208  ;;  %v1203_v29 = vpop.permute.xlu1 %1202 }
 0x421   : > { %v1212_v30 = vsel %vm620_vm14, %v1209_v28, %v1203_v29  ;;  %v1218_v31 = vsel %vm620_vm14, %v1203_v29, %v1209_v28  ;;  %v1532_v28 = vld [vmem:[%s4520_s7 + $0x10] sm:$0xff] }
 0x422   : > { %1416 = vmatprep.subr.bf16.mxu1 %v1212_v30  ;;  %v1536_v29 = vmul.f32 %v3674_v39, %v1532_v28  ;;  %v1533_v30 = vld [vmem:[%s4520_s7 + $0x18] sm:$0xff] }
 0x423   : > { %1417 = vmatpush1.bf16.msra.mxu1 %v1218_v31  ;;  %v1537_v31 = vmul.f32 %v3674_v39, %v1533_v30 }
 0x424   : > { %v1211_v32 = vpop.permute.xlu0 %1210  ;;  %v1205_v33 = vpop.permute.xlu1 %1204 }
 0x425   : > { %v1213_v34 = vsel %vm620_vm14, %v1211_v32, %v1205_v33  ;;  %v1222_v35 = vsel %vm620_vm14, %v1205_v33, %v1211_v32 }
 0x426   : > { %1418 = vmatprep.subr.bf16.mxu1 %v1213_v34 }
 0x427   : > { %1419 = vmatpush1.bf16.msra.mxu1 %v1222_v35 }
 0x428   : > { %1420 = vmatprep.subr.bf16.mxu1 %v3781_v27  ;;  %v1243_v41 = vpop.permute.xlu0 %1242  ;;  %v1241_v42 = vpop.permute.xlu1 %1240 }
 0x42b   : > { %1421 = vmatpush1.bf16.msra.mxu1 %v3777_v25 }
 0x42c   : > { %1422 = vmatprep.subr.bf16.mxu1 %v3797_v40  ;;  %v1247_v43 = vpop.permute.xlu0 %1246  ;;  %v1245_v37 = vpop.permute.xlu1 %1244 }
 0x42d   : > { %v1249_v40 = vsel %vm680_vm15, %v1245_v37, %v1247_v43 }
 0x42f   : > { %1423 = vmatpush1.bf16.msra.mxu1 %v3793_v36 }
 0x430   : > { %1424 = vmatprep.subr.bf16.mxu1 %v3731_v4  ;;  %v1267_v25 = vpop.permute.xlu0 %1266  ;;  %v1265_v27 = vpop.permute.xlu1 %1264  ;;  %v1254_v4 = vsel %vm680_vm15, %v1243_v41, %v1241_v42 }
 0x431   : > { %v1278_v44 = vsel %vm680_vm15, %v1267_v25, %v1265_v27  ;;  %v1272_v45 = vsel %vm680_vm15, %v1265_v27, %v1267_v25 }
 0x433   : > { %1425 = vmatpush1.bf16.msra.mxu1 %v3729_v3  ;;  %v1248_v3 = vsel %vm680_vm15, %v1241_v42, %v1243_v41  ;;  %v1687_v41 = vstv %s1686_s23 }
 0x434   : > { %1426 = vmatprep.subr.bf16.mxu1 %v3749_v12  ;;  %v1258_v12 = vsel %vm680_vm15, %v1247_v43, %v1245_v37  ;;  %v1269_v36 = vpop.permute.xlu1 %1268 }
 0x437   : > { %1427 = vmatpush1.bf16.msra.mxu1 %v3742_v7  ;;  %v1271_v7 = vpop.permute.xlu0 %1270 }
 0x438   : > { %1428 = vmatprep.subr.bf16.mxu1 %v3821_v50  ;;  %v1289_v47 = vpop.permute.xlu1 %1288  ;;  %v1282_v38 = vsel %vm680_vm15, %v1271_v7, %v1269_v36  ;;  %v1273_v48 = vsel %vm680_vm15, %v1269_v36, %v1271_v7 }
 0x43b   : > { %1429 = vmatpush1.bf16.msra.mxu1 %v3817_v49  ;;  %v1291_v46 = vpop.permute.xlu0 %1290  ;;  %v3206_v49 = vld [vmem:[%s4519_s6] ss:$12 sps:$4 sm:$0xff]  }
 0x43c   : > { %1430 = vmatprep.subr.bf16.mxu1 %v3837_v59  ;;  %v1302_v50 = vsel %vm680_vm15, %v1291_v46, %v1289_v47  ;;  %v1293_v53 = vpop.permute.xlu1 %1292  ;;  %v1296_v54 = vsel %vm680_vm15, %v1289_v47, %v1291_v46  ;;  %v3211_v59 = vld [vmem:[%s4519_s6 + $0x18] ss:$12 sps:$4 sm:$0xff]  }
 0x43f   : > { %1431 = vmatpush1.bf16.msra.mxu1 %v3833_v57  ;;  %v1295_v52 = vpop.permute.xlu0 %1294 }
 0x440   : > { %1432 = vmatprep.subr.bf16.mxu1 %v1254_v4  ;;  %v1306_v55 = vsel %vm680_vm15, %v1295_v52, %v1293_v53  ;;  %v1297_v57 = vsel %vm680_vm15, %v1293_v53, %v1295_v52 }
 0x443   : > { %1433 = vmatpush1.bf16.msra.mxu1 %v1248_v3 }
 0x444   : > { %1434 = vmatprep.subr.bf16.mxu1 %v1258_v12 }
 0x447   : > { %1435 = vmatpush1.bf16.msra.mxu1 %v1249_v40 }
 0x448   : > { %1436 = vmatprep.subr.bf16.mxu1 %v1278_v44 }
 0x44b   : > { %1437 = vmatpush1.bf16.msra.mxu1 %v1272_v45 }
 0x44c   : > { %1438 = vmatprep.subr.bf16.mxu1 %v1282_v38 }
 0x44d   : > { %v1660_v35 = vpop.permute.xlu1 %1659  ;;  %v1665_v3 = vpop.permute.xlu0 %1664 }
 0x44f   : > { %1439 = vmatpush1.bf16.msra.mxu1 %v1273_v48 }
 0x450   : > { %1469 = vmatprep.subr.bf16.mxu1 %v1302_v50 }
 0x452   : > { %1441 = vmatmul.mubr.bf16.vlgmr.msra.gmra.mrb[8].mxu1 %v3206_v49  ;;  %v1670_v49 = vpop.permute.xlu1 %1669 }
 0x453   : > { %1470 = vmatpush1.bf16.msra.mxu1 %v1296_v54  ;;  %1450 = vmatprep.mubr.bf16.mxu1 %v3209_v51 }
 0x454   : > { %1471 = vmatprep.subr.bf16.mxu1 %v1306_v55 }
 0x457   : > { %1472 = vmatpush1.bf16.msra.mxu1 %v1297_v57 }
 0x45a   : > { %1451 = vmatmul.mubr.bf16.gmra.mrb[12].mxu1 %v3211_v59 }
 0x45b   : > { %1460 = vmatprep.mubr.bf16.mxu1 %v3065_v61 }
 0x462   : > { %1461 = vmatmul.mubr.bf16.gmra.mrb[16].mxu1 %v3064_v62  ;;  %v1675_v62 = vpop.permute.xlu0 %1674 }
 0x463   : > { %1501 = vmatprep.mubr.bf16.mxu1 %v3407_v0 }
 0x46a   : > { %3067 = vmatmul.mubr.msk.bf16.vlgmr.msra.gmra.mrb[8].mxu1 %vm1398_vm4, %v3214_v63 }
 0x46b   : > { %1511 = vmatprep.mubr.bf16.mxu1 %v3407_v0 }
 0x472   : > { %3068 = vmatmul.mubr.msk.bf16.gmra.mrb[12].mxu1 %vm1398_vm4, %v3215_v1 }
 0x473   : > { %1521 = vmatprep.mubr.bf16.mxu1 %v3407_v0 }
 0x47a   : > { %3069 = vmatmul.mubr.msk.bf16.gmra.mrb[16].mxu1 %vm1398_vm4, %v3216_v2 }
 0x53d   : > { %v1503_v6 = vpop.f32.mrb[8].mxu1 }
 0x53e   : > { %v1505_v8 = vpop.f32.mrb[9].mxu1 }
 0x53f   : > { %v1507_v58 = vpop.f32.mrb[10].mxu1 }
 0x540   : > { %v1509_v5 = vpop.f32.mrb[11].mxu1 }
 0x545   : > { %v1513_v9 = vpop.f32.mrb[12].mxu1 }
 0x546   : > { %v1515_v60 = vpop.f32.mrb[13].mxu1 }
 0x547   : > { %v1517_v10 = vpop.f32.mrb[14].mxu1 }
 0x548   : > { %v3945_v11 = vpop.f32.mrb[15].mxu1 }
 0x54d   : > { %v1523_v14 = vpop.f32.mrb[16].mxu1 }
 0x54e   : > { %v1525_v18 = vpop.f32.mrb[17].mxu1 }
 0x54f   : > { %v1527_v20 = vpop.f32.mrb[18].mxu1  ;;  %3070 = vmatprep.subr.msk.mxu0 %vm849_vm2, %v1525_v18 }
 0x550   : > { %v1528_v23 = vpop.f32.mrb[19].mxu1  ;;  %3071 = vmatpush1.msk.msra.mxu0 %vm849_vm2, %v1523_v14 }
 0x551   : > { %3072 = vmatmul.mubr.msk.f32.vlgmr.msra.gmra.mrb[12].mxu0 %vm836_vm3, %v1534_v15 }
 0x552   : > { %1626 = vmatprep.mubr.f32.mxu0 %v3414_v26 }
 0x555   : > { %3073 = vmatmul.mubr.msk.f32.gmra.mrb[14].mxu0 %vm836_vm3, %v1535_v24 }
 0x556   : > { %1632 = vmatprep.mubr.f32.mxu0 %v3414_v26 }
 0x559   : > { %3074 = vmatmul.mubr.msk.f32.gmra.mrb[16].mxu0 %vm836_vm3, %v1536_v29 }
 0x55a   : > { %1638 = vmatprep.mubr.f32.mxu0 %v3414_v26 }
 0x55d   : > { %3075 = vmatmul.mubr.msk.f32.gmra.mrb[18].mxu0 %vm836_vm3, %v1537_v31 }
 0x624   : > { %v1622_v32 = vpop.f32.mrb[12].mxu0 }
 0x625   : > { %v1645_v33 = vadd.f32 %v1622_v32, %v1503_v6  ;;  %v1624_v34 = vpop.f32.mrb[13].mxu0 }
 0x626   : > { %v1646_v42 = vadd.f32 %v1624_v34, %v1505_v8 }
 0x627   : > { %v3973_v43 = vadd.f32 %v1660_v35, %v1645_v33 }
 0x628   : > { %v3975_v37 = vadd.f32 %v1660_v35, %v1646_v42  ;;  %v1628_v25 = vpop.f32.mrb[14].mxu0 }
 0x629   : > { %v1688_v27 = vmul.f32 %v1687_v41, %v3973_v43  ;;  %v1647_v39 = vadd.f32 %v1628_v25, %v1507_v58  ;;  %v1630_v4 = vpop.f32.mrb[15].mxu0 }
 0x62a   : > { %v1689_v12 = vmul.f32 %v1687_v41, %v3975_v37  ;;  %v1648_v7 = vadd.f32 %v1630_v4, %v1509_v5 }
 0x62b   : > { %v3076_v36 = vmul.f32 -1.442695, %v1688_v27  ;;  %v3979_v40 = vadd.f32 %v1665_v3, %v1647_v39 }
 0x62c   : > { %v3077_v44 = vmul.f32 -1.442695, %v1689_v12  ;;  %v3981_v45 = vadd.f32 %v1665_v3, %v1648_v7  ;;  %v1634_v46 = vpop.f32.mrb[16].mxu0 }
 0x62d   : > { %3263 = vpow2.f32 %v3076_v36  ;;  %v1690_v47 = vmul.f32 %v1687_v41, %v3979_v40  ;;  %v1649_v38 = vadd.f32 %v1634_v46, %v1513_v9  ;;  %v1636_v48 = vpop.f32.mrb[17].mxu0 }
 0x62e   : > { %3265 = vpow2.f32 %v3077_v44  ;;  %v1691_v50 = vmul.f32 %v1687_v41, %v3981_v45  ;;  %v1650_v51 = vadd.f32 %v1636_v48, %v1515_v60 }
 0x62f   : > { %v3078_v52 = vmul.f32 -1.442695, %v1690_v47  ;;  %v3985_v53 = vadd.f32 %v1670_v49, %v1649_v38 }
 0x630   : > { %v3079_v54 = vmul.f32 -1.442695, %v1691_v50  ;;  %v3987_v55 = vadd.f32 %v1670_v49, %v1650_v51  ;;  %v1640_v56 = vpop.f32.mrb[18].mxu0 }
 0x631   : > { %3267 = vpow2.f32 %v3078_v52  ;;  %v1692_v57 = vmul.f32 %v1687_v41, %v3985_v53  ;;  %v1651_v59 = vadd.f32 %v1640_v56, %v1517_v10  ;;  %v1642_v61 = vpop.f32.mrb[19].mxu0 }
 0x632   : > { %3269 = vpow2.f32 %v3079_v54  ;;  %v1693_v63 = vmul.f32 %v1687_v41, %v3987_v55  ;;  %v1652_v1 = vadd.f32 %v1642_v61, %v3945_v11 }
 0x633   : > { %v3080_v2 = vmul.f32 -1.442695, %v1692_v57  ;;  %v1683_v6 = vadd.f32 %v1675_v62, %v1651_v59 }
 0x634   : > { %v3081_v8 = vmul.f32 -1.442695, %v1693_v63  ;;  %v1684_v58 = vadd.f32 %v1675_v62, %v1652_v1 }
 0x635   : > { %3271 = vpow2.f32 %v3080_v2  ;;  %v1694_v5 = vmul.f32 %v1687_v41, %v1683_v6 }
 0x636   : > { %3273 = vpow2.f32 %v3081_v8  ;;  %v1695_v9 = vmul.f32 %v1687_v41, %v1684_v58 }
 0x637   : > { %v3264_v60 = vpop.eup %3263  ;;  %v3082_v13 = vmul.f32 -1.442695, %v1694_v5 }
 0x638   : > { %v3266_v14 = vpop.eup %3265  ;;  %v1720_v15 = vadd.f32 1.0, %v3264_v60  ;;  %v3083_v10 = vmul.f32 -1.442695, %v1695_v9 }
 0x639   : > { %v1721_v18 = vadd.f32 1.0, %v3266_v14  ;;  %3275 = vpow2.f32 %v3082_v13 }
 0x63a   : > { %3277 = vrcp.f32 %v1720_v15 }
 0x63b   : > { %v3268_v19 = vpop.eup %3267  ;;  %3279 = vpow2.f32 %v3083_v10 }
 0x63c   : > { %v3270_v20 = vpop.eup %3269  ;;  %v1722_v23 = vadd.f32 1.0, %v3268_v19  ;;  %3281 = vrcp.f32 %v1721_v18 }
 0x63d   : > { %v1723_v11 = vadd.f32 1.0, %v3270_v20 }
 0x63e   : > { %3283 = vrcp.f32 %v1722_v23 }
 0x63f   : > { %v3272_v24 = vpop.eup %3271  ;;  %3285 = vrcp.f32 %v1723_v11 }
 0x640   : > { %v3274_v28 = vpop.eup %3273  ;;  %v1724_v29 = vadd.f32 1.0, %v3272_v24 }
 0x641   : > { %v1725_v31 = vadd.f32 1.0, %v3274_v28 }
 0x642   : > { %3287 = vrcp.f32 %v1724_v29 }
 0x643   : > { %v3276_v30 = vpop.eup %3275 }
 0x644   : > { %v1726_v32 = vadd.f32 1.0, %v3276_v30  ;;  %v3278_v33 = vpop.eup %3277 }
 0x645   : > { %v3280_v34 = vpop.eup %3279  ;;  %v1744_v27 = vmul.f32 %v3278_v33, %v3973_v43 }
 0x646   : > { %3289 = vrcp.f32 %v1726_v32  ;;  %v3282_v35 = vpop.eup %3281  ;;  %v1727_v41 = vadd.f32 1.0, %v3280_v34 }
 0x647   : > { %3291 = vrcp.f32 %v1725_v31  ;;  %v1745_v4 = vmul.f32 %v3282_v35, %v3975_v37 }
 0x648   : > { %v3284_v42 = vpop.eup %3283  ;;  %3293 = vrcp.f32 %v1727_v41 }
 0x649   : > { %v3286_v25 = vpop.eup %3285  ;;  %v1746_v39 = vmul.f32 %v3284_v42, %v3979_v40  ;;  %v2353_v42 = vld [vmem:[%s4524_s11 + $0x8] sm:$0xff] }
 0x64a   : > { %v1747_v3 = vmul.f32 %v3286_v25, %v3981_v45  ;;  %v2352_v25 = vld [vmem:[%s4524_s11] sm:$0xff] }
 0x64b   : > { %v3996_v12 = vpack.c.bf16 %v1746_v39, %v1744_v27  ;;  %v2355_v27 = vld [vmem:[%s4524_s11 + $0x18] sm:$0xff]  ;;  %v2354_v39 = vld [vmem:[%s4524_s11 + $0x10] sm:$0xff] }
 0x64c   : > { %v3998_v7 = vpack.c.bf16 %v1747_v3, %v1745_v4  ;;  %v3288_v36 = vpop.eup %3287  ;;  %v3219_v4 = vld [vmem:[%s4522_s9 + $0x4] ss:$12 sps:$4 sm:$0xff]  }
 0x64d   : > { %1780 = vrot.lane.b32.xlu1 %v3996_v12, %s4563_s26  ;;  %1764 = vrot.lane.b32.xlu0 %v3996_v12, %s4564_s30  ;;  %v1748_v40 = vmul.f32 %v3288_v36, %v3985_v53 }
 0x64e   : > { %2139 = vmatprep.mubr.bf16.mxu0 %v3219_v4 }
 0x650   : > { %v3290_v44 = vpop.eup %3289 }
 0x651   : > { %v3292_v43 = vpop.eup %3291  ;;  %v1750_v46 = vmul.f32 %v3290_v44, %v1683_v6  ;;  %1782 = vrot.lane.b32.xlu0 %v3998_v7, %s4563_s26  ;;  %1758 = vrot.lane.b32.xlu1 %v3998_v7, %s4564_s30 }
 0x652   : > { %v3294_v37 = vpop.eup %3293  ;;  %v1749_v47 = vmul.f32 %v3292_v43, %v3987_v55 }
 0x653   : > { %v4009_v45 = vpack.c.bf16 %v1750_v46, %v1748_v40  ;;  %v1751_v38 = vmul.f32 %v3294_v37, %v1684_v58 }
 0x655   : > { %1784 = vrot.lane.b32.xlu1 %v4009_v45, %s4563_s26  ;;  %1766 = vrot.lane.b32.xlu0 %v4009_v45, %s4564_s30  ;;  %v4016_v48 = vpack.c.bf16 %v1751_v38, %v1749_v47 }
 0x659   : > { %1786 = vrot.lane.b32.xlu0 %v4016_v48, %s4563_s26  ;;  %1760 = vrot.lane.b32.xlu1 %v4016_v48, %s4564_s30 }
 0x65d   : > { %1806 = vrot.lane.b32.xlu0 %v3998_v7, %s4565_s19  ;;  %1804 = vrot.lane.b32.xlu1 %v3996_v12, %s4565_s19 }
 0x661   : > { %1828 = vrot.lane.b32.xlu0 %v3996_v12, %s4566_s21  ;;  %1824 = vrot.lane.b32.xlu1 %v3998_v7, %s4566_s21 }
 0x665   : > { %1810 = vrot.lane.b32.xlu0 %v4016_v48, %s4565_s19  ;;  %1808 = vrot.lane.b32.xlu1 %v4009_v45, %s4565_s19 }
 0x669   : > { %1830 = vrot.lane.b32.xlu0 %v4009_v45, %s4566_s21  ;;  %1826 = vrot.lane.b32.xlu1 %v4016_v48, %s4566_s21 }
 0x6bf   : > { %v1781_v49 = vpop.permute.xlu1 %1780  ;;  %v1765_v50 = vpop.permute.xlu0 %1764 }
 0x6c3   : > { %v1783_v51 = vpop.permute.xlu0 %1782  ;;  %v1759_v52 = vpop.permute.xlu1 %1758 }
 0x6c4   : > { %v1788_v53 = vsel %vm546_vm11, %v1781_v49, %v1783_v51  ;;  %v1794_v54 = vsel %vm546_vm11, %v1783_v51, %v1781_v49  ;;  %v1768_v55 = vsel %vm534_vm10, %v1765_v50, %v1759_v52  ;;  %v1774_v56 = vsel %vm534_vm10, %v1759_v52, %v1765_v50 }
 0x6c5   : > { %v4044_v57 = vsel %vm568_vm13, %v1788_v53, %v1774_v56  ;;  %v4048_v59 = vsel %vm569_vm12, %v1794_v54, %v1768_v55 }
 0x6c6   : > { %1856 = vrot.lane.b32.xlu0 %v4044_v57, %s4567_s20  ;;  %1850 = vrot.lane.b32.xlu1 %v4048_v59, %s4567_s20 }
 0x6c7   : > { %v1785_v61 = vpop.permute.xlu1 %1784  ;;  %v1767_v62 = vpop.permute.xlu0 %1766 }
 0x6cb   : > { %v1787_v63 = vpop.permute.xlu0 %1786  ;;  %v1761_v1 = vpop.permute.xlu1 %1760 }
 0x6cc   : > { %v1789_v2 = vsel %vm546_vm11, %v1785_v61, %v1787_v63  ;;  %v1798_v6 = vsel %vm546_vm11, %v1787_v63, %v1785_v61  ;;  %v1769_v8 = vsel %vm534_vm10, %v1767_v62, %v1761_v1  ;;  %v1778_v58 = vsel %vm534_vm10, %v1761_v1, %v1767_v62 }
 0x6cd   : > { %v4060_v5 = vsel %vm568_vm13, %v1789_v2, %v1778_v58  ;;  %v4064_v9 = vsel %vm569_vm12, %v1798_v6, %v1769_v8 }
 0x6ce   : > { %1858 = vrot.lane.b32.xlu0 %v4060_v5, %s4567_s20  ;;  %1852 = vrot.lane.b32.xlu1 %v4064_v9, %s4567_s20 }
 0x6cf   : > { %v1807_v60 = vpop.permute.xlu0 %1806  ;;  %v1805_v13 = vpop.permute.xlu1 %1804 }
 0x6d0   : > { %v1812_v23 = vsel %vm576_vm6, %v1805_v13, %v1807_v60  ;;  %v1818_v11 = vsel %vm576_vm6, %v1807_v60, %v1805_v13 }
 0x6d2   : > { %1880 = vrot.lane.b32.xlu0 %v3996_v12, %s4567_s20  ;;  %1876 = vrot.lane.b32.xlu1 %v3998_v7, %s4567_s20 }
 0x6d3   : > { %v1829_v14 = vpop.permute.xlu0 %1828  ;;  %v1825_v15 = vpop.permute.xlu1 %1824 }
 0x6d4   : > { %v1832_v10 = vsel %vm588_vm7, %v1829_v14, %v1825_v15  ;;  %v1838_v18 = vsel %vm588_vm7, %v1825_v15, %v1829_v14 }
 0x6d5   : > { %v4084_v24 = vsel %vm610_vm9, %v1838_v18, %v1812_v23  ;;  %v4088_v28 = vsel %vm611_vm8, %v1832_v10, %v1818_v11  ;;  %v3217_v11 = vld [vmem:[%s4522_s9] ss:$12 sps:$4 sm:$0xff]  }
 0x6d6   : > { %1882 = vrot.lane.b32.xlu0 %v4009_v45, %s4567_s20  ;;  %1878 = vrot.lane.b32.xlu1 %v4016_v48, %s4567_s20 }
 0x6d7   : > { %v1811_v19 = vpop.permute.xlu0 %1810  ;;  %v1809_v20 = vpop.permute.xlu1 %1808 }
 0x6d8   : > { %v1813_v31 = vsel %vm576_vm6, %v1809_v20, %v1811_v19  ;;  %v1822_v32 = vsel %vm576_vm6, %v1811_v19, %v1809_v20 }
 0x6da   : > { %1908 = vrot.lane.b32.xlu0 %v4084_v24, %s4567_s20  ;;  %1902 = vrot.lane.b32.xlu1 %v4088_v28, %s4567_s20 }
 0x6db   : > { %v1831_v29 = vpop.permute.xlu0 %1830  ;;  %v1827_v30 = vpop.permute.xlu1 %1826 }
 0x6dc   : > { %v1833_v33 = vsel %vm588_vm7, %v1831_v29, %v1827_v30  ;;  %v1842_v34 = vsel %vm588_vm7, %v1827_v30, %v1831_v29 }
 0x6dd   : > { %v4100_v35 = vsel %vm610_vm9, %v1842_v34, %v1813_v31  ;;  %v4104_v41 = vsel %vm611_vm8, %v1833_v33, %v1822_v32  ;;  %v2020_v33 = vld [vmem:[%s4522_s9 + $0x30] sm:$0x33] }
 0x6de   : > { %1910 = vrot.lane.b32.xlu0 %v4100_v35, %s4567_s20  ;;  %1904 = vrot.lane.b32.xlu1 %v4104_v41, %s4567_s20 }
 0x6e2   : > { %1942 = vrot.lane.b32.xlu0 %v4048_v59, %s4568_s22  ;;  %1940 = vrot.lane.b32.xlu1 %v4044_v57, %s4568_s22 }
 0x6e6   : > { %1946 = vrot.lane.b32.xlu0 %v4064_v9, %s4568_s22  ;;  %1944 = vrot.lane.b32.xlu1 %v4060_v5, %s4568_s22 }
 0x6ea   : > { %1966 = vrot.lane.b32.xlu0 %v3998_v7, %s4568_s22  ;;  %1964 = vrot.lane.b32.xlu1 %v3996_v12, %s4568_s22 }
 0x6ee   : > { %1970 = vrot.lane.b32.xlu0 %v4016_v48, %s4568_s22  ;;  %1968 = vrot.lane.b32.xlu1 %v4009_v45, %s4568_s22 }
 0x6f2   : > { %1990 = vrot.lane.b32.xlu0 %v4088_v28, %s4568_s22  ;;  %1988 = vrot.lane.b32.xlu1 %v4084_v24, %s4568_s22 }
 0x6f6   : > { %1994 = vrot.lane.b32.xlu0 %v4104_v41, %s4568_s22  ;;  %1992 = vrot.lane.b32.xlu1 %v4100_v35, %s4568_s22 }
 0x6fa   : > { %2363 = vperm.xlu0 %3200, %v2353_v42   ;;  %2358 = vperm.xlu1 %3201, %v2352_v25   ;;  %v3090_v42 = vcombine.low %v2020_v33, %v2020_v33  ;;  %v3225_v25 = vld [vmem:[%s4522_s9 + $0x8] ss:$12 sps:$4 sm:$0xff]  }
 0x6fe   : > { %2373 = vperm.xlu0 %3200, %v2355_v27   ;;  %2368 = vperm.xlu1 %3201, %v2354_v39   ;;  %v3226_v27 = vld [vmem:[%s4522_s9 + $0x20] ss:$12 sps:$4 sm:$0xff]   ;;  %v3227_v39 = vld [vmem:[%s4522_s9 + $0x38] ss:$0 sps:$4 sm:$0x33]  }
 0x738   : > { %v1857_v3 = vpop.permute.xlu0 %1856  ;;  %v1851_v36 = vpop.permute.xlu1 %1850 }
 0x739   : > { %v1860_v44 = vsel %vm620_vm14, %v1857_v3, %v1851_v36  ;;  %v1866_v43 = vsel %vm620_vm14, %v1851_v36, %v1857_v3 }
 0x73a   : > { %2107 = vmatprep.subr.bf16.mxu0 %v1860_v44 }
 0x73b   : > { %2108 = vmatpush1.bf16.msra.mxu0 %v1866_v43 }
 0x740   : > { %v1859_v40 = vpop.permute.xlu0 %1858  ;;  %v1853_v46 = vpop.permute.xlu1 %1852 }
 0x741   : > { %v1861_v37 = vsel %vm620_vm14, %v1859_v40, %v1853_v46  ;;  %v1870_v47 = vsel %vm620_vm14, %v1853_v46, %v1859_v40 }
 0x742   : > { %2109 = vmatprep.subr.bf16.mxu0 %v1861_v37 }
 0x743   : > { %2110 = vmatpush1.bf16.msra.mxu0 %v1870_v47  ;;  %v2229_v47 = vld [vmem:[%s4523_s10] sm:$0xff] }
 0x744   : > { %v1881_v38 = vpop.permute.xlu0 %1880  ;;  %v1877_v49 = vpop.permute.xlu1 %1876 }
 0x745   : > { %v1884_v50 = vsel %vm620_vm14, %v1881_v38, %v1877_v49  ;;  %v1890_v51 = vsel %vm620_vm14, %v1877_v49, %v1881_v38  ;;  %v4219_v49 = vld [vmem:[%s3667_s29] ss:$0 sm:$0xff]  ;;  %s2960_s29 = sshll.u32 %s478_s4, 4  ;;  %s4473_s29 = int_to_ptr.vmem [resolvable:$true] %s2960_s29 }
 0x746   : > { %2111 = vmatprep.subr.bf16.mxu0 %v1884_v50  ;;  %v2233_v50 = vmul.f32 %v4219_v49, %v2229_v47 }
 0x747   : > { %2112 = vmatpush1.bf16.msra.mxu0 %v1890_v51 }
 0x748   : > { %v1883_v52 = vpop.permute.xlu0 %1882  ;;  %v1879_v53 = vpop.permute.xlu1 %1878 }
 0x749   : > { %v1885_v54 = vsel %vm620_vm14, %v1883_v52, %v1879_v53  ;;  %v1894_v55 = vsel %vm620_vm14, %v1879_v53, %v1883_v52  ;;  %v2230_v52 = vld [vmem:[%s4523_s10 + $0x8] sm:$0xff] }
 0x74a   : > { %2113 = vmatprep.subr.bf16.mxu0 %v1885_v54 }
 0x74b   : > { %2114 = vmatpush1.bf16.msra.mxu0 %v1894_v55  ;;  %v2234_v55 = vmul.f32 %v4219_v49, %v2230_v52 }
 0x74c   : > { %v1909_v56 = vpop.permute.xlu0 %1908  ;;  %v1903_v61 = vpop.permute.xlu1 %1902 }
 0x74d   : > { %v1912_v62 = vsel %vm620_vm14, %v1909_v56, %v1903_v61  ;;  %v1918_v63 = vsel %vm620_vm14, %v1903_v61, %v1909_v56  ;;  %v2231_v56 = vld [vmem:[%s4523_s10 + $0x10] sm:$0xff] }
 0x74e   : > { %2115 = vmatprep.subr.bf16.mxu0 %v1912_v62  ;;  %v2235_v61 = vmul.f32 %v4219_v49, %v2231_v56  ;;  %v2232_v62 = vld [vmem:[%s4523_s10 + $0x18] sm:$0xff] }
 0x74f   : > { %2116 = vmatpush1.bf16.msra.mxu0 %v1918_v63  ;;  %v2236_v63 = vmul.f32 %v4219_v49, %v2232_v62 }
 0x750   : > { %v1911_v1 = vpop.permute.xlu0 %1910  ;;  %v1905_v2 = vpop.permute.xlu1 %1904 }
 0x751   : > { %v1913_v6 = vsel %vm620_vm14, %v1911_v1, %v1905_v2  ;;  %v1922_v8 = vsel %vm620_vm14, %v1905_v2, %v1911_v1 }
 0x752   : > { %2117 = vmatprep.subr.bf16.mxu0 %v1913_v6 }
 0x753   : > { %2118 = vmatpush1.bf16.msra.mxu0 %v1922_v8 }
 0x754   : > { %2119 = vmatprep.subr.bf16.mxu0 %v4048_v59  ;;  %v1943_v58 = vpop.permute.xlu0 %1942  ;;  %v1941_v60 = vpop.permute.xlu1 %1940 }
 0x757   : > { %2120 = vmatpush1.bf16.msra.mxu0 %v4044_v57 }
 0x758   : > { %2121 = vmatprep.subr.bf16.mxu0 %v4064_v9  ;;  %v1947_v13 = vpop.permute.xlu0 %1946  ;;  %v1945_v14 = vpop.permute.xlu1 %1944 }
 0x759   : > { %v1949_v9 = vsel %vm680_vm15, %v1945_v14, %v1947_v13 }
 0x75b   : > { %2122 = vmatpush1.bf16.msra.mxu0 %v4060_v5 }
 0x75c   : > { %2123 = vmatprep.subr.bf16.mxu0 %v3998_v7  ;;  %v1967_v57 = vpop.permute.xlu0 %1966  ;;  %v1965_v59 = vpop.permute.xlu1 %1964  ;;  %v1954_v7 = vsel %vm680_vm15, %v1943_v58, %v1941_v60 }
 0x75d   : > { %v1978_v15 = vsel %vm680_vm15, %v1967_v57, %v1965_v59  ;;  %v1972_v10 = vsel %vm680_vm15, %v1965_v59, %v1967_v57 }
 0x75f   : > { %2124 = vmatpush1.bf16.msra.mxu0 %v3996_v12  ;;  %v1948_v12 = vsel %vm680_vm15, %v1941_v60, %v1943_v58  ;;  %v2386_v58 = vstv %s2385_s16  ;;  %s3340_s16 = scalar_lea.vmem %s4473_s29, 128 }
 0x760   : > { %2125 = vmatprep.subr.bf16.mxu0 %v4016_v48  ;;  %v1958_v48 = vsel %vm680_vm15, %v1947_v13, %v1945_v14  ;;  %v1969_v5 = vpop.permute.xlu1 %1968  ;;  %p3341_p2 = scmp.ne.s32.totalorder %s4473_s29, %s3340_s16 }
 0x762   : > { %p3342_p3 = pnand %p3341_p2, %p3537_p10 }
 0x763   : > { %2126 = vmatpush1.bf16.msra.mxu0 %v4009_v45  ;;  %v1971_v45 = vpop.permute.xlu0 %1970 }
 0x764   : > { %2127 = vmatprep.subr.bf16.mxu0 %v4088_v28  ;;  %v1989_v19 = vpop.permute.xlu1 %1988  ;;  %v1982_v20 = vsel %vm680_vm15, %v1971_v45, %v1969_v5  ;;  %v1973_v23 = vsel %vm680_vm15, %v1969_v5, %v1971_v45  ;;  %v3220_v28 = vld [vmem:[%s4522_s9 + $0x1c] ss:$12 sps:$4 sm:$0xff]   ;;  %p3343_p4 = pneg %p3342_p3 }
 0x767   : > { %2128 = vmatpush1.bf16.msra.mxu0 %v4084_v24  ;;  %v1991_v18 = vpop.permute.xlu0 %1990 }
 0x768   : > { %2129 = vmatprep.subr.bf16.mxu0 %v4104_v41  ;;  %v2002_v24 = vsel %vm680_vm15, %v1991_v18, %v1989_v19  ;;  %v1993_v30 = vpop.permute.xlu1 %1992  ;;  %v1996_v31 = vsel %vm680_vm15, %v1989_v19, %v1991_v18  ;;  %v3091_v41 = vcombine.high %v2020_v33, %v2020_v33 }
 0x76b   : > { %2130 = vmatpush1.bf16.msra.mxu0 %v4100_v35  ;;  %v1995_v29 = vpop.permute.xlu0 %1994  ;;  %v3222_v35 = vld [vmem:[%s4522_s9 + $0x18] ss:$12 sps:$4 sm:$0xff]  }
 0x76c   : > { %2131 = vmatprep.subr.bf16.mxu0 %v1954_v7  ;;  %v2006_v32 = vsel %vm680_vm15, %v1995_v29, %v1993_v30  ;;  %v1997_v34 = vsel %vm680_vm15, %v1993_v30, %v1995_v29 }
 0x76f   : > { %2132 = vmatpush1.bf16.msra.mxu0 %v1948_v12 }
 0x770   : > { %2133 = vmatprep.subr.bf16.mxu0 %v1958_v48 }
 0x773   : > { %2134 = vmatpush1.bf16.msra.mxu0 %v1949_v9 }
 0x774   : > { %2135 = vmatprep.subr.bf16.mxu0 %v1978_v15 }
 0x777   : > { %2136 = vmatpush1.bf16.msra.mxu0 %v1972_v10 }
 0x778   : > { %2137 = vmatprep.subr.bf16.mxu0 %v1982_v20 }
 0x779   : > { %v2359_v8 = vpop.permute.xlu1 %2358  ;;  %v2364_v48 = vpop.permute.xlu0 %2363 }
 0x77b   : > { %2138 = vmatpush1.bf16.msra.mxu0 %v1973_v23 }
 0x77c   : > { %2168 = vmatprep.subr.bf16.mxu0 %v2002_v24 }
 0x77e   : > { %2140 = vmatmul.mubr.bf16.vlgmr.msra.gmra.mrb[20].mxu0 %v3217_v11  ;;  %v2369_v11 = vpop.permute.xlu1 %2368 }
 0x77f   : > { %2169 = vmatpush1.bf16.msra.mxu0 %v1996_v31  ;;  %2149 = vmatprep.mubr.bf16.mxu0 %v3220_v28 }
 0x780   : > { %2170 = vmatprep.subr.bf16.mxu0 %v2006_v32 }
 0x783   : > { %2171 = vmatpush1.bf16.msra.mxu0 %v1997_v34 }
 0x786   : > { %2150 = vmatmul.mubr.bf16.gmra.mrb[24].mxu0 %v3222_v35 }
 0x787   : > { %2159 = vmatprep.mubr.bf16.mxu0 %v3091_v41 }
 0x78e   : > { %2160 = vmatmul.mubr.bf16.gmra.mrb[28].mxu0 %v3090_v42  ;;  %v2374_v42 = vpop.permute.xlu0 %2373 }
 0x78f   : > { %2200 = vmatprep.mubr.bf16.mxu0 %v3407_v0 }
 0x796   : > { %3093 = vmatmul.mubr.msk.bf16.vlgmr.msra.gmra.mrb[20].mxu0 %vm1398_vm4, %v3225_v25 }
 0x797   : > { %2210 = vmatprep.mubr.bf16.mxu0 %v3407_v0 }
 0x79e   : > { %3094 = vmatmul.mubr.msk.bf16.gmra.mrb[24].mxu0 %vm1398_vm4, %v3226_v27 }
 0x79f   : > { %2220 = vmatprep.mubr.bf16.mxu0 %v3407_v0 }
 0x7a6   : > { %3095 = vmatmul.mubr.msk.bf16.gmra.mrb[28].mxu0 %vm1398_vm4, %v3227_v39 }
 0x7a7   : > { %2319 = vmatprep.mubr.f32.mxu0 %v3414_v26 }
 0x869   : > { %v2202_v4 = vpop.f32.mrb[20].mxu0 }
 0x86a   : > { %v2204_v3 = vpop.f32.mrb[21].mxu0 }
 0x86b   : > { %v2206_v36 = vpop.f32.mrb[22].mxu0 }
 0x86c   : > { %v2208_v44 = vpop.f32.mrb[23].mxu0 }
 0x871   : > { %v2212_v43 = vpop.f32.mrb[24].mxu0 }
 0x872   : > { %v2214_v40 = vpop.f32.mrb[25].mxu0 }
 0x873   : > { %v2216_v46 = vpop.f32.mrb[26].mxu0 }
 0x874   : > { %v4213_v37 = vpop.f32.mrb[27].mxu0 }
 0x879   : > { %v2222_v38 = vpop.f32.mrb[28].mxu0 }
 0x87a   : > { %v2224_v51 = vpop.f32.mrb[29].mxu0 }
 0x87b   : > { %v2226_v53 = vpop.f32.mrb[30].mxu0  ;;  %3096 = vmatprep.subr.msk.mxu0 %vm849_vm2, %v2224_v51 }
 0x87c   : > { %v2227_v54 = vpop.f32.mrb[31].mxu0  ;;  %3097 = vmatpush1.msk.msra.mxu0 %vm849_vm2, %v2222_v38 }
 0x87d   : > { %3098 = vmatmul.mubr.msk.f32.vlgmr.msra.gmra.mrb[32].mxu0 %vm836_vm3, %v2233_v50 }
 0x87e   : > { %2325 = vmatprep.mubr.f32.mxu0 %v3414_v26 }
 0x881   : > { %3099 = vmatmul.mubr.msk.f32.gmra.mrb[34].mxu0 %vm836_vm3, %v2234_v55 }
 0x882   : > { %2331 = vmatprep.mubr.f32.mxu0 %v3414_v26 }
 0x885   : > { %3100 = vmatmul.mubr.msk.f32.gmra.mrb[36].mxu0 %vm836_vm3, %v2235_v61 }
 0x886   : > { %2337 = vmatprep.mubr.f32.mxu0 %v3414_v26 }
 0x889   : > { %3101 = vmatmul.mubr.msk.f32.gmra.mrb[38].mxu0 %vm836_vm3, %v2236_v63 }
 0x88a   : > { %2921 = vmatprep.mubr.f32.mxu0 %v3414_v26 }
 0x950   : > { %v2321_v1 = vpop.f32.mrb[32].mxu0 }
 0x951   : > { %v2344_v2 = vadd.f32 %v2321_v1, %v2202_v4  ;;  %v2323_v6 = vpop.f32.mrb[33].mxu0 }
 0x952   : > { %v2345_v60 = vadd.f32 %v2323_v6, %v2204_v3 }
 0x953   : > { %v4245_v13 = vadd.f32 %v2359_v8, %v2344_v2 }
 0x954   : > { %v4247_v14 = vadd.f32 %v2359_v8, %v2345_v60  ;;  %v2327_v57 = vpop.f32.mrb[34].mxu0 }
 0x955   : > { %v2387_v59 = vmul.f32 %v2386_v58, %v4245_v13  ;;  %v2346_v7 = vadd.f32 %v2327_v57, %v2206_v36  ;;  %v2329_v12 = vpop.f32.mrb[35].mxu0 }
 0x956   : > { %v2388_v26 = vmul.f32 %v2386_v58, %v4247_v14  ;;  %v2347_v45 = vadd.f32 %v2329_v12, %v2208_v44 }
 0x957   : > { %v3102_v5 = vmul.f32 -1.442695, %v2387_v59  ;;  %v4251_v9 = vadd.f32 %v2364_v48, %v2346_v7 }
 0x958   : > { %v3103_v15 = vmul.f32 -1.442695, %v2388_v26  ;;  %v4253_v10 = vadd.f32 %v2364_v48, %v2347_v45  ;;  %v2333_v18 = vpop.f32.mrb[36].mxu0 }
 0x959   : > { %3295 = vpow2.f32 %v3102_v5  ;;  %v2389_v19 = vmul.f32 %v2386_v58, %v4251_v9  ;;  %v2348_v20 = vadd.f32 %v2333_v18, %v2212_v43  ;;  %v2335_v23 = vpop.f32.mrb[37].mxu0 }
 0x95a   : > { %3297 = vpow2.f32 %v3103_v15  ;;  %v2390_v24 = vmul.f32 %v2386_v58, %v4253_v10  ;;  %v2349_v28 = vadd.f32 %v2335_v23, %v2214_v40 }
 0x95b   : > { %v3104_v29 = vmul.f32 -1.442695, %v2389_v19  ;;  %v4257_v30 = vadd.f32 %v2369_v11, %v2348_v20 }
 0x95c   : > { %v3105_v31 = vmul.f32 -1.442695, %v2390_v24  ;;  %v4259_v32 = vadd.f32 %v2369_v11, %v2349_v28  ;;  %v2339_v33 = vpop.f32.mrb[38].mxu0 }
 0x95d   : > { %3299 = vpow2.f32 %v3104_v29  ;;  %v2391_v34 = vmul.f32 %v2386_v58, %v4257_v30  ;;  %v2350_v35 = vadd.f32 %v2339_v33, %v2216_v46  ;;  %v2341_v41 = vpop.f32.mrb[39].mxu0 }
 0x95e   : > { %3301 = vpow2.f32 %v3105_v31  ;;  %v2392_v25 = vmul.f32 %v2386_v58, %v4259_v32  ;;  %v2351_v27 = vadd.f32 %v2341_v41, %v4213_v37 }
 0x95f   : > { %v3106_v39 = vmul.f32 -1.442695, %v2391_v34  ;;  %v2382_v4 = vadd.f32 %v2374_v42, %v2350_v35 }
 0x960   : > { %v3107_v3 = vmul.f32 -1.442695, %v2392_v25  ;;  %v2383_v36 = vadd.f32 %v2374_v42, %v2351_v27 }
 0x961   : > { %3303 = vpow2.f32 %v3106_v39  ;;  %v2393_v44 = vmul.f32 %v2386_v58, %v2382_v4 }
 0x962   : > { %3305 = vpow2.f32 %v3107_v3  ;;  %v2394_v43 = vmul.f32 %v2386_v58, %v2383_v36 }
 0x963   : > { %v3296_v40 = vpop.eup %3295  ;;  %v3108_v47 = vmul.f32 -1.442695, %v2393_v44 }
 0x964   : > { %v3298_v38 = vpop.eup %3297  ;;  %v2419_v50 = vadd.f32 1.0, %v3296_v40  ;;  %v3109_v46 = vmul.f32 -1.442695, %v2394_v43 }
 0x965   : > { %v2420_v51 = vadd.f32 1.0, %v3298_v38  ;;  %3307 = vpow2.f32 %v3108_v47 }
 0x966   : > { %3309 = vrcp.f32 %v2419_v50 }
 0x967   : > { %v3300_v52 = vpop.eup %3299  ;;  %3311 = vpow2.f32 %v3109_v46 }
 0x968   : > { %v3302_v53 = vpop.eup %3301  ;;  %v2421_v54 = vadd.f32 1.0, %v3300_v52  ;;  %3313 = vrcp.f32 %v2420_v51 }
 0x969   : > { %v2422_v37 = vadd.f32 1.0, %v3302_v53 }
 0x96a   : > { %3315 = vrcp.f32 %v2421_v54 }
 0x96b   : > { %v3304_v55 = vpop.eup %3303  ;;  %3317 = vrcp.f32 %v2422_v37 }
 0x96c   : > { %v3306_v56 = vpop.eup %3305  ;;  %v2423_v61 = vadd.f32 1.0, %v3304_v55 }
 0x96d   : > { %v2424_v63 = vadd.f32 1.0, %v3306_v56 }
 0x96e   : > { %3319 = vrcp.f32 %v2423_v61 }
 0x96f   : > { %v3308_v62 = vpop.eup %3307 }
 0x970   : > { %v2425_v1 = vadd.f32 1.0, %v3308_v62  ;;  %v3310_v2 = vpop.eup %3309 }
 0x971   : > { %v3312_v6 = vpop.eup %3311  ;;  %v2443_v59 = vmul.f32 %v3310_v2, %v4245_v13 }
 0x972   : > { %3321 = vrcp.f32 %v2425_v1  ;;  %v3314_v8 = vpop.eup %3313  ;;  %v2426_v58 = vadd.f32 1.0, %v3312_v6 }
 0x973   : > { %3323 = vrcp.f32 %v2424_v63  ;;  %v2444_v12 = vmul.f32 %v3314_v8, %v4247_v14  ;;  %v3111_v8 = vcombine.high %v4412_v17, %v4412_v17 }
 0x974   : > { %v3316_v60 = vpop.eup %3315  ;;  %3325 = vrcp.f32 %v2426_v58 }
 0x975   : > { %v3318_v57 = vpop.eup %3317  ;;  %v2445_v7 = vmul.f32 %v3316_v60, %v4251_v9  ;;  %2794 = vmatprep.mubr.bf16.mxu1 %v3111_v8 }
 0x976   : > { %v2446_v48 = vmul.f32 %v3318_v57, %v4253_v10 }
 0x977   : > { %v4268_v26 = vpack.c.bf16 %v2445_v7, %v2443_v59 }
 0x978   : > { %v4270_v45 = vpack.c.bf16 %v2446_v48, %v2444_v12  ;;  %v3320_v5 = vpop.eup %3319 }
 0x979   : > { %2479 = vrot.lane.b32.xlu1 %v4268_v26, %s4563_s26  ;;  %2463 = vrot.lane.b32.xlu0 %v4268_v26, %s4564_s30  ;;  %v2447_v9 = vmul.f32 %v3320_v5, %v4257_v30 }
 0x97c   : > { %v3322_v15 = vpop.eup %3321 }
 0x97d   : > { %v3324_v13 = vpop.eup %3323  ;;  %v2449_v18 = vmul.f32 %v3322_v15, %v2382_v4  ;;  %2481 = vrot.lane.b32.xlu0 %v4270_v45, %s4563_s26  ;;  %2457 = vrot.lane.b32.xlu1 %v4270_v45, %s4564_s30 }
 0x97e   : > { %v3326_v14 = vpop.eup %3325  ;;  %v2448_v19 = vmul.f32 %v3324_v13, %v4259_v32 }
 0x97f   : > { %v4281_v10 = vpack.c.bf16 %v2449_v18, %v2447_v9  ;;  %v2450_v20 = vmul.f32 %v3326_v14, %v2383_v36 }
 0x981   : > { %2483 = vrot.lane.b32.xlu1 %v4281_v10, %s4563_s26  ;;  %2465 = vrot.lane.b32.xlu0 %v4281_v10, %s4564_s30  ;;  %v4288_v23 = vpack.c.bf16 %v2450_v20, %v2448_v19 }
 0x985   : > { %2485 = vrot.lane.b32.xlu0 %v4288_v23, %s4563_s26  ;;  %2459 = vrot.lane.b32.xlu1 %v4288_v23, %s4564_s30  ;;  %s3415_s26 = smov [#allocation5]  }
 0x986   : > { %s3344_s30 = sshll.u32 %s3415_s26, 4  ;;  %s3345_s30 = int_to_ptr.vmem [resolvable:$false] %s3344_s30 }
 0x987   : > { %p3347_p5 = scmp.lt.s32.totalorder %s4473_s29, %s3345_s30 }
 0x989   : > { %2505 = vrot.lane.b32.xlu0 %v4270_v45, %s4565_s19  ;;  %2503 = vrot.lane.b32.xlu1 %v4268_v26, %s4565_s19 }
 0x98d   : > { %2527 = vrot.lane.b32.xlu0 %v4268_v26, %s4566_s21  ;;  %2523 = vrot.lane.b32.xlu1 %v4270_v45, %s4566_s21 }
 0x991   : > { %2509 = vrot.lane.b32.xlu0 %v4288_v23, %s4565_s19  ;;  %2507 = vrot.lane.b32.xlu1 %v4281_v10, %s4565_s19  ;;  %s3346_s19 = scalar_lea.vmem %s3345_s30, 256 }
 0x992   : > { %p3348_p6 = scmp.lt.s32.totalorder %s3346_s19, %s3340_s16 }
 0x994   : > { %p3349_p7 = por %p3348_p6, %p3347_p5 }
 0x995   : > { %2529 = vrot.lane.b32.xlu0 %v4281_v10, %s4566_s21  ;;  %2525 = vrot.lane.b32.xlu1 %v4288_v23, %s4566_s21 }
 0x996   : > { %p3350_p8 = pnand %p3349_p7, %p3343_p4 }
 0x9eb   : > { %v2480_v11 = vpop.permute.xlu1 %2479  ;;  %v2464_v24 = vpop.permute.xlu0 %2463 }
 0x9ef   : > { %v2482_v28 = vpop.permute.xlu0 %2481  ;;  %v2458_v29 = vpop.permute.xlu1 %2457 }
 0x9f0   : > { %v2487_v30 = vsel %vm546_vm11, %v2480_v11, %v2482_v28  ;;  %v2493_v31 = vsel %vm546_vm11, %v2482_v28, %v2480_v11  ;;  %v2467_v32 = vsel %vm534_vm10, %v2464_v24, %v2458_v29  ;;  %v2473_v33 = vsel %vm534_vm10, %v2458_v29, %v2464_v24 }
 0x9f1   : > { %v4316_v34 = vsel %vm568_vm13, %v2487_v30, %v2473_v33  ;;  %v4320_v35 = vsel %vm569_vm12, %v2493_v31, %v2467_v32 }
 0x9f2   : > { %2555 = vrot.lane.b32.xlu0 %v4316_v34, %s4567_s20  ;;  %2549 = vrot.lane.b32.xlu1 %v4320_v35, %s4567_s20 }
 0x9f3   : > { %v2484_v41 = vpop.permute.xlu1 %2483  ;;  %v2466_v42 = vpop.permute.xlu0 %2465 }
 0x9f7   : > { %v2486_v25 = vpop.permute.xlu0 %2485  ;;  %v2460_v27 = vpop.permute.xlu1 %2459 }
 0x9f8   : > { %v2488_v39 = vsel %vm546_vm11, %v2484_v41, %v2486_v25  ;;  %v2497_v4 = vsel %vm546_vm11, %v2486_v25, %v2484_v41  ;;  %v2468_v3 = vsel %vm534_vm10, %v2466_v42, %v2460_v27  ;;  %v2477_v36 = vsel %vm534_vm10, %v2460_v27, %v2466_v42 }
 0x9f9   : > { %v4332_v44 = vsel %vm568_vm13, %v2488_v39, %v2477_v36  ;;  %v4336_v43 = vsel %vm569_vm12, %v2497_v4, %v2468_v3 }
 0x9fa   : > { %2557 = vrot.lane.b32.xlu0 %v4332_v44, %s4567_s20  ;;  %2551 = vrot.lane.b32.xlu1 %v4336_v43, %s4567_s20 }
 0x9fb   : > { %v2506_v40 = vpop.permute.xlu0 %2505  ;;  %v2504_v47 = vpop.permute.xlu1 %2503 }
 0x9fc   : > { %v2511_v21 = vsel %vm576_vm6, %v2504_v47, %v2506_v40  ;;  %v2517_v50 = vsel %vm576_vm6, %v2506_v40, %v2504_v47 }
 0x9fe   : > { %2579 = vrot.lane.b32.xlu0 %v4268_v26, %s4567_s20  ;;  %2575 = vrot.lane.b32.xlu1 %v4270_v45, %s4567_s20 }
 0x9ff   : > { %v2528_v22 = vpop.permute.xlu0 %2527  ;;  %v2524_v38 = vpop.permute.xlu1 %2523 }
 0xa00   : > { %v2531_v46 = vsel %vm588_vm7, %v2528_v22, %v2524_v38  ;;  %v2537_v51 = vsel %vm588_vm7, %v2524_v38, %v2528_v22 }
 0xa01   : > { %v4352_v52 = vsel %vm610_vm9, %v2537_v51, %v2511_v21  ;;  %v4356_v53 = vsel %vm611_vm8, %v2531_v46, %v2517_v50 }
 0xa02   : > { %2581 = vrot.lane.b32.xlu0 %v4281_v10, %s4567_s20  ;;  %2577 = vrot.lane.b32.xlu1 %v4288_v23, %s4567_s20 }
 0xa03   : > { %v2510_v54 = vpop.permute.xlu0 %2509  ;;  %v2508_v37 = vpop.permute.xlu1 %2507 }
 0xa04   : > { %v2512_v61 = vsel %vm576_vm6, %v2508_v37, %v2510_v54  ;;  %v2521_v62 = vsel %vm576_vm6, %v2510_v54, %v2508_v37 }
 0xa06   : > { %2607 = vrot.lane.b32.xlu0 %v4352_v52, %s4567_s20  ;;  %2601 = vrot.lane.b32.xlu1 %v4356_v53, %s4567_s20 }
 0xa07   : > { %v2530_v55 = vpop.permute.xlu0 %2529  ;;  %v2526_v56 = vpop.permute.xlu1 %2525 }
 0xa08   : > { %v2532_v63 = vsel %vm588_vm7, %v2530_v55, %v2526_v56  ;;  %v2541_v1 = vsel %vm588_vm7, %v2526_v56, %v2530_v55 }
 0xa09   : > { %v4372_v2 = vsel %vm610_vm9, %v2541_v1, %v2512_v61  ;;  %v4376_v6 = vsel %vm611_vm8, %v2532_v63, %v2521_v62 }
 0xa0a   : > { %2609 = vrot.lane.b32.xlu0 %v4372_v2, %s4567_s20  ;;  %2603 = vrot.lane.b32.xlu1 %v4376_v6, %s4567_s20 }
 0xa0e   : > { %2641 = vrot.lane.b32.xlu0 %v4320_v35, %s4568_s22  ;;  %2639 = vrot.lane.b32.xlu1 %v4316_v34, %s4568_s22 }
 0xa12   : > { %2645 = vrot.lane.b32.xlu0 %v4336_v43, %s4568_s22  ;;  %2643 = vrot.lane.b32.xlu1 %v4332_v44, %s4568_s22 }
 0xa16   : > { %2665 = vrot.lane.b32.xlu0 %v4270_v45, %s4568_s22  ;;  %2663 = vrot.lane.b32.xlu1 %v4268_v26, %s4568_s22 }
 0xa1a   : > { %2669 = vrot.lane.b32.xlu0 %v4288_v23, %s4568_s22  ;;  %2667 = vrot.lane.b32.xlu1 %v4281_v10, %s4568_s22 }
 0xa1e   : > { %2689 = vrot.lane.b32.xlu0 %v4356_v53, %s4568_s22  ;;  %2687 = vrot.lane.b32.xlu1 %v4352_v52, %s4568_s22 }
 0xa22   : > { %2693 = vrot.lane.b32.xlu0 %v4376_v6, %s4568_s22  ;;  %2691 = vrot.lane.b32.xlu1 %v4372_v2, %s4568_s22 }
 0xa26   : > { %2933 = vperm.xlu1 %3201, %v2930_v16  }
 0xa64   : > { %v2556_v58 = vpop.permute.xlu0 %2555  ;;  %v2550_v60 = vpop.permute.xlu1 %2549 }
 0xa65   : > { %v2559_v57 = vsel %vm620_vm14, %v2556_v58, %v2550_v60  ;;  %v2565_v59 = vsel %vm620_vm14, %v2550_v60, %v2556_v58 }
 0xa66   : > { %2571 = vst [vmem:[#allocation2] sm:$0xff] %v2565_v59  ;;  %2572 = vst [vmem:[#allocation2 + $0x8] sm:$0xff] %v2559_v57  ;;  %2762 = vmatprep.subr.bf16.mxu1 %v2559_v57 }
 0xa67   : > { %2763 = vmatpush1.bf16.msra.mxu1 %v2565_v59 }
 0xa6c   : > { %v2558_v7 = vpop.permute.xlu0 %2557  ;;  %v2552_v12 = vpop.permute.xlu1 %2551 }
 0xa6d   : > { %v2560_v48 = vsel %vm620_vm14, %v2558_v7, %v2552_v12  ;;  %v2569_v5 = vsel %vm620_vm14, %v2552_v12, %v2558_v7 }
 0xa6e   : > { %2573 = vst [vmem:[#allocation2 + $0x10] sm:$0xff] %v2569_v5  ;;  %2574 = vst [vmem:[#allocation2 + $0x18] sm:$0xff] %v2560_v48  ;;  %2764 = vmatprep.subr.bf16.mxu1 %v2560_v48 }
 0xa6f   : > { %2765 = vmatpush1.bf16.msra.mxu1 %v2569_v5 }
 0xa70   : > { %v2580_v15 = vpop.permute.xlu0 %2579  ;;  %v2576_v13 = vpop.permute.xlu1 %2575 }
 0xa71   : > { %v2583_v9 = vsel %vm620_vm14, %v2580_v15, %v2576_v13  ;;  %v2589_v18 = vsel %vm620_vm14, %v2576_v13, %v2580_v15 }
 0xa72   : > { %2595 = vst [vmem:[#allocation2 + $0x20] sm:$0xff] %v2589_v18  ;;  %2596 = vst [vmem:[#allocation2 + $0x28] sm:$0xff] %v2583_v9  ;;  %2766 = vmatprep.subr.bf16.mxu1 %v2583_v9 }
 0xa73   : > { %2767 = vmatpush1.bf16.msra.mxu1 %v2589_v18 }
 0xa74   : > { %v2582_v14 = vpop.permute.xlu0 %2581  ;;  %v2578_v19 = vpop.permute.xlu1 %2577 }
 0xa75   : > { %v2584_v20 = vsel %vm620_vm14, %v2582_v14, %v2578_v19  ;;  %v2593_v11 = vsel %vm620_vm14, %v2578_v19, %v2582_v14 }
 0xa76   : > { %2768 = vmatprep.subr.bf16.mxu1 %v2584_v20 }
 0xa77   : > { %2769 = vmatpush1.bf16.msra.mxu1 %v2593_v11 }
 0xa78   : > { %v2608_v24 = vpop.permute.xlu0 %2607  ;;  %v2602_v28 = vpop.permute.xlu1 %2601 }
 0xa79   : > { %v2611_v29 = vsel %vm620_vm14, %v2608_v24, %v2602_v28  ;;  %v2617_v30 = vsel %vm620_vm14, %v2602_v28, %v2608_v24 }
 0xa7a   : > { %2770 = vmatprep.subr.bf16.mxu1 %v2611_v29 }
 0xa7b   : > { %2771 = vmatpush1.bf16.msra.mxu1 %v2617_v30 }
 0xa7c   : > { %v2610_v31 = vpop.permute.xlu0 %2609  ;;  %v2604_v32 = vpop.permute.xlu1 %2603 }
 0xa7d   : > { %v2612_v33 = vsel %vm620_vm14, %v2610_v31, %v2604_v32  ;;  %v2621_v41 = vsel %vm620_vm14, %v2604_v32, %v2610_v31 }
 0xa7e   : > { %2772 = vmatprep.subr.bf16.mxu1 %v2612_v33 }
 0xa7f   : > { %2773 = vmatpush1.bf16.msra.mxu1 %v2621_v41 }
 0xa80   : > { %v2642_v42 = vpop.permute.xlu0 %2641  ;;  %v2640_v25 = vpop.permute.xlu1 %2639  ;;  %2774 = vmatprep.subr.bf16.mxu1 %v4320_v35 }
 0xa81   : > { %v2647_v27 = vsel %vm680_vm15, %v2640_v25, %v2642_v42  ;;  %v2653_v39 = vsel %vm680_vm15, %v2642_v42, %v2640_v25 }
 0xa83   : > { %2775 = vmatpush1.bf16.msra.mxu1 %v4316_v34 }
 0xa84   : > { %v2646_v4 = vpop.permute.xlu0 %2645  ;;  %v2644_v3 = vpop.permute.xlu1 %2643  ;;  %2776 = vmatprep.subr.bf16.mxu1 %v4336_v43 }
 0xa85   : > { %v2648_v36 = vsel %vm680_vm15, %v2644_v3, %v2646_v4  ;;  %v2657_v40 = vsel %vm680_vm15, %v2646_v4, %v2644_v3 }
 0xa87   : > { %2777 = vmatpush1.bf16.msra.mxu1 %v4332_v44 }
 0xa88   : > { %v2666_v47 = vpop.permute.xlu0 %2665  ;;  %v2664_v22 = vpop.permute.xlu1 %2663  ;;  %2778 = vmatprep.subr.bf16.mxu1 %v4270_v45 }
 0xa89   : > { %v2671_v35 = vsel %vm680_vm15, %v2664_v22, %v2666_v47  ;;  %v2677_v38 = vsel %vm680_vm15, %v2666_v47, %v2664_v22 }
 0xa8b   : > { %2779 = vmatpush1.bf16.msra.mxu1 %v4268_v26 }
 0xa8c   : > { %v2670_v34 = vpop.permute.xlu0 %2669  ;;  %v2668_v21 = vpop.permute.xlu1 %2667  ;;  %2780 = vmatprep.subr.bf16.mxu1 %v4288_v23 }
 0xa8d   : > { %v2672_v43 = vsel %vm680_vm15, %v2668_v21, %v2670_v34  ;;  %v2681_v50 = vsel %vm680_vm15, %v2670_v34, %v2668_v21 }
 0xa8f   : > { %2781 = vmatpush1.bf16.msra.mxu1 %v4281_v10  ;;  %v3110_v10 = vcombine.low %v4412_v17, %v4412_v17 }
 0xa90   : > { %v2690_v44 = vpop.permute.xlu0 %2689  ;;  %v2688_v46 = vpop.permute.xlu1 %2687  ;;  %2782 = vmatprep.subr.bf16.mxu1 %v4356_v53  ;;  %v2844_v53 = vld [vmem:[%s4526_s13] sm:$0xf] }
 0xa91   : > { %v2695_v45 = vsel %vm680_vm15, %v2688_v46, %v2690_v44  ;;  %v2701_v51 = vsel %vm680_vm15, %v2690_v44, %v2688_v46  ;;  %v2845_v63 = vmul.f32 %v4219_v49, %v2844_v53 }
 0xa93   : > { %2783 = vmatpush1.bf16.msra.mxu1 %v4352_v52  ;;  %v3230_v52 = vld [vmem:[%s4525_s12 + $0x8] ss:$0 sps:$4 sm:$0xff]  }
 0xa94   : > { %v2694_v26 = vpop.permute.xlu0 %2693  ;;  %v2692_v54 = vpop.permute.xlu1 %2691  ;;  %2784 = vmatprep.subr.bf16.mxu1 %v4376_v6 }
 0xa95   : > { %v2696_v23 = vsel %vm680_vm15, %v2692_v54, %v2694_v26  ;;  %v2705_v37 = vsel %vm680_vm15, %v2694_v26, %v2692_v54 }
 0xa97   : > { %2785 = vmatpush1.bf16.msra.mxu1 %v4372_v2 }
 0xa98   : > { %2786 = vmatprep.subr.bf16.mxu1 %v2653_v39 }
 0xa9b   : > { %2787 = vmatpush1.bf16.msra.mxu1 %v2647_v27 }
 0xa9c   : > { %2788 = vmatprep.subr.bf16.mxu1 %v2657_v40 }
 0xa9f   : > { %2789 = vmatpush1.bf16.msra.mxu1 %v2648_v36 }
 0xaa0   : > { %2790 = vmatprep.subr.bf16.mxu1 %v2677_v38 }
 0xaa3   : > { %2791 = vmatpush1.bf16.msra.mxu1 %v2671_v35 }
 0xaa4   : > { %2792 = vmatprep.subr.bf16.mxu1 %v2681_v50 }
 0xaa5   : > { %v2934_v17 = vpop.permute.xlu1 %2933 }
 0xaa7   : > { %2793 = vmatpush1.bf16.msra.mxu1 %v2672_v43 }
 0xaa8   : > { %2803 = vmatprep.subr.bf16.mxu1 %v2701_v51 }
 0xaaa   : > { %2795 = vmatmul.mubr.bf16.vlgmr.msra.gmra.mrb[20].mxu1 %v3110_v10 }
 0xaab   : > { %2804 = vmatpush1.bf16.msra.mxu1 %v2695_v45  ;;  %2835 = vmatprep.mubr.bf16.mxu1 %v3407_v0 }
 0xaac   : > { %2805 = vmatprep.subr.bf16.mxu1 %v2705_v37 }
 0xaaf   : > { %2806 = vmatpush1.bf16.msra.mxu1 %v2696_v23 }
 0xab6   : > { %3113 = vmatmul.mubr.msk.bf16.vlgmr.msra.gmra.mrb[20].mxu1 %vm1398_vm4, %v3230_v52 }
 0xb89   : > { %v2837_v55 = vpop.f32.mrb[20].mxu1 }
 0xb8a   : > { %v2839_v56 = vpop.f32.mrb[21].mxu1  ;;  %v2848_v0 = vrot.slane %v2837_v55, 4 }
 0xb8b   : > { %v2849_v61 = vrot.slane %v2839_v56, 4  ;;  %v2841_v62 = vpop.f32.mrb[22].mxu1 }
 0xb8c   : > { %v2842_v1 = vpop.f32.mrb[23].mxu1 }
 0xb8d   : > { %3114 = vmatprep.subr.msk.mxu0 %vm849_vm2, %v2849_v61 }
 0xb8e   : > { %3115 = vmatpush1.msk.msra.mxu0 %vm849_vm2, %v2848_v0 }
 0xb8f   : > { %3116 = vmatmul.mubr.msk.f32.vlgmr.msra.gmra.mrb[40].mxu0 %vm836_vm3, %v2845_v63 }
 0xc62   : > { %v2923_v2 = vpop.f32.mrb[40].mxu0 }
 0xc63   : > { %v2928_v6 = vadd.f32 %v2923_v2, %v2837_v55  ;;  %v2925_v16 = vpop.f32.mrb[41].mxu0 }
 0xc64   : > { %v2929_v8 = vadd.f32 %v2925_v16, %v2839_v56 }
 0xc65   : > { %v2936_v58 = vadd.f32 %v2934_v17, %v2928_v6 }
 0xc66   : > { %v2937_v60 = vadd.f32 %v2934_v17, %v2929_v8 }
 0xc67   : > { %v2938_v49 = vmul.f32 0.0005, %v2936_v58 }
 0xc68   : > { %v2939_v57 = vmul.f32 0.0005, %v2937_v60 }
 0xc6a   : > { %v2942_v59 = vcombine.low %v2938_v49, %v2939_v57 }
 0xc6c   : > { %2944 = vst [vmem:[%s478_s4] sm:$0xff] %v2942_v59 }
 0xc6d   : > { %3353 = shalt.err (!%p3350_p8)
}
 0xc6e   : > { %s3354_s2 = scalar_lea.hbm %s4471_s0, 128  ;;  %s3358_s22 = scalar_lea.hbm %s4528_s15, 256 }
 0xc6f   : > { %p3355_p9 = scmp.ne.s32.totalorder %s4471_s0, %s3354_s2  ;;  %p3359_p0 = scmp.lt.u32.totalorder %s4471_s0, %s4528_s15 }
 0xc70   : > { %p3360_p1 = scmp.lt.u32.totalorder %s3358_s22, %s3354_s2  ;;  %p3362_p3 = scmp.lt.u32.totalorder %s3354_s2, %s4471_s0 }
 0xc71   : > { %p3356_p12 = pnand %p3355_p9, %p3537_p10 }
 0xc72   : > { %p3361_p2 = por %p3360_p1, %p3359_p0 }
 0xc73   : > { %p3357_p13 = pneg %p3356_p12 }
 0xc74   : > { %p3363_p4 = por %p3362_p3, %p3361_p2 }
 0xc76   : > { %p3364_p5 = pnand %p3363_p4, %p3357_p13 }
 0xc78   : > { %3367 = shalt.err (!%p3364_p5)
}
 0xc79   : > { %3152 = dma.vmem_to_hbm [thread:$0]  (%p3537_p10), %s4473_s29, 128, %s4471_s0, %s2946_s28  }
 0xc7a PF: > { %s4569_s3 = sld [smem:[#allocation9_spill]]  ;;  %p3158_p6 = scmp.ge.s32.totalorder %s3404_s25, 2 }
 0xc7c   : > { %p3155_p7 = pnand %p3158_p6, %p3541_p11 }
 0xc80   : > { %s2972_s4 = sand.u32 1, %s4569_s3  }
 0xc81   : > { %s2973_s5 = scalar_lea.sflag [#allocation6], %s2972_s4 }
 0xc82   : > { %3387 = dma.done.wait (!%p3155_p7), %s2973_s5, 128  }
 0xc83   : > { %3389 = vsyncadd (!%p3155_p7), %s2973_s5, 4294967168  ;;  %s4571_s25 = sld [smem:[#allocation11_spill]]  ;;  %s4572_s16 = sld [smem:[#allocation10_spill]] }
 0xc84   : > { %s4573_s0 = sld [smem:[#allocation12_spill]]  ;;  %s4574_s23 = smov %s3396_s24 }
 0xc89   : > { %p31_p8 = scmp.ge.s32.totalorder %s4571_s25, 4   ;;  %s4575_s24 = smov %s4572_s16 }
 0xc8b   :  { %33 = sbr.rel (!%p31_p8) target bundleno = 20 (0x14), region = 114 }
 0xc92   :  { %2978 = vsyncpa [#allocation6], 1 }
 0xc93   :  { %2980 = vsyncpa [#allocation6 + $0x1], 1 }

</bundles_post_ra>
